<compile_context>
chip_gen: v7x
topology: tpu7x:2x2x1
jax: 0.10.0
libtpu: 0.0.40
codegen_flags: <defaults>
</compile_context>

<pallas_src>
import numpy as np
import jax
import jax.numpy as jnp
from jax.experimental import pallas as pl
from jax.experimental.pallas import tpu as pltpu

# ---------------- module hyper-params (small, consistent with the nn.Module) ----------
DIM = 32
HEADS = 4
HEAD_DIM = 8
INNER = HEADS * HEAD_DIM          # 32
WS = 4                            # window_size
WS2 = WS * WS                     # tokens per window
SHIFTED = True
SCALE = HEAD_DIM ** (-0.5)
EPS = 1e-5                        # nn.LayerNorm default eps

B, NH, NW = 2, 8, 8               # batch, spatial height, spatial width
NW_H, NW_W = NH // WS, NW // WS
NUM_WIN = NW_H * NW_W
N_TOK = NH * NW                   # 64 tokens per batch element
ROWS = B * N_TOK                  # 128 rows after batch folding
DISP = WS // 2
BIG_NEG = -1e9                    # finite "minus infinity" (NaN-robust, exp -> exactly 0)


# ---------------- helpers mirroring the torch code -----------------------------------
def create_mask(window_size, displacement, upper_lower, left_right):
    mask = np.zeros((window_size ** 2, window_size ** 2), dtype=np.float32)
    if upper_lower:
        mask[-displacement * window_size:, :-displacement * window_size] = -np.inf
        mask[:-displacement * window_size, -displacement * window_size:] = -np.inf
    if left_right:
        mask = mask.reshape(window_size, window_size, window_size, window_size)
        mask[:, -displacement:, :, :-displacement] = -np.inf
        mask[:, :-displacement, :, -displacement:] = -np.inf
        mask = mask.reshape(window_size ** 2, window_size ** 2)
    return mask


def get_relative_distances(window_size):
    indices = np.array([[x, y] for x in range(window_size) for y in range(window_size)])
    return indices[None, :, :] - indices[:, None, :]


def build_window_bias_rolled(rel_bias, ul_mask, lr_mask):
    """(N_TOK, N_TOK) additive bias (window block-mask + rel-pos bias + shift masks)
    in flattened (h, w) row-major token order of the ROLLED feature map."""
    full = np.full((N_TOK, N_TOK), -np.inf, dtype=np.float32)
    for ih in range(NW_H):
        for iw in range(NW_W):
            hs = np.arange(ih * WS, (ih + 1) * WS)
            ws = np.arange(iw * WS, (iw + 1) * WS)
            gidx = (hs[:, None] * NW + ws[None, :]).reshape(-1)   # local order = ws_h*WS+ws_w
            wb = rel_bias.astype(np.float32).copy()
            if SHIFTED:
                if ih == NW_H - 1:
                    wb = wb + ul_mask
                if iw == NW_W - 1:
                    wb = wb + lr_mask
            full[np.ix_(gidx, gidx)] = wb
    return full


def build_batched_bias(rel_bias, ul_mask, lr_mask):
    """(ROWS, ROWS) bias in ORIGINAL (unshifted) token order, batch block-diagonal.

    The cyclic shift is baked in by permuting rows/cols of the rolled-order bias
    with the roll permutation; attention is permutation-equivariant so the kernel
    never needs jnp.roll."""
    full_rolled = build_window_bias_rolled(rel_bias, ul_mask, lr_mask)
    if SHIFTED:
        # perm[rolled_flat_index] = original_flat_index of that token.
        h = np.arange(NH)
        w = np.arange(NW)
        perm = (((h[:, None] + DISP) % NH) * NW + (w[None, :] + DISP) % NW).reshape(-1)
        full = np.empty_like(full_rolled)
        full[np.ix_(perm, perm)] = full_rolled
    else:
        full = full_rolled
    big = np.full((ROWS, ROWS), -np.inf, dtype=np.float32)
    for b in range(B):
        big[b * N_TOK:(b + 1) * N_TOK, b * N_TOK:(b + 1) * N_TOK] = full
    # replace every -inf (cross-window / cross-batch / shift mask) by a large finite negative
    return np.maximum(big, BIG_NEG).astype(np.float32)


def prepare_operands(gamma, beta, w_qkv, w_out, b_out, rel_bias, ul_mask, lr_mask):
    """One-time (host-side) parameter folding — kept OUT of the jitted call path."""
    gamma = np.asarray(gamma, np.float32).reshape(DIM, 1)
    beta = np.asarray(beta, np.float32).reshape(1, DIM)
    w_qkv = np.asarray(w_qkv, np.float32)
    # LayerNorm gamma folded into the QKV weights, beta into an additive qkv bias.
    w_qkv_eff = gamma * w_qkv                                    # (DIM, 3*INNER)
    qkv_bias = beta @ w_qkv                                      # (1, 3*INNER)
    bvec = np.concatenate([qkv_bias, np.asarray(b_out, np.float32).reshape(1, DIM)],
                          axis=-1)                               # (1, 3*INNER + DIM) = (1,128)
    attn_bias = build_batched_bias(np.asarray(rel_bias), ul_mask, lr_mask)
    return (jnp.asarray(w_qkv_eff), jnp.asarray(w_out, jnp.float32),
            jnp.asarray(bvec), jnp.asarray(attn_bias))


# ---------------- Pallas kernel -------------------------------------------------------
def prenorm_window_attn_kernel(x_ref, wqkv_ref, wout_ref, bvec_ref, bias_ref, o_ref):
    # x_ref:    (ROWS, DIM)            all batches, original token order
    # wqkv_ref: (DIM, 3*INNER)         LN-gamma-folded fused qkv weights
    # wout_ref: (INNER, DIM)           output-projection weights
    # bvec_ref: (1, 3*INNER + DIM)     [qkv bias (from LN beta) | output bias]
    # bias_ref: (ROWS, ROWS)           batch-block-diagonal window bias (shift baked in)
    # o_ref:    (ROWS, DIM)
    x = x_ref[...]                                                # (128, 32)

    # ---- PreNorm: LayerNorm statistics (gamma/beta folded into weights/bias) ----
    mu = jnp.mean(x, axis=-1, keepdims=True)
    xc = x - mu
    var = jnp.mean(xc * xc, axis=-1, keepdims=True)
    xhat = xc * jax.lax.rsqrt(var + EPS)                          # (128, 32)

    bvec = bvec_ref[...]                                          # (1, 128)
    qkv_b = bvec[0, :3 * INNER]                                   # (96,)
    out_b = bvec[0, 3 * INNER:]                                   # (32,)

    # ---- fused QKV projection: one full-width MXU matmul ----
    qkv = jnp.dot(xhat, wqkv_ref[...],
                  preferred_element_type=jnp.float32) + qkv_b     # (128, 96)

    bias = bias_ref[...]                                          # (128, 128)

    acc = jnp.zeros((ROWS, DIM), jnp.float32)
    for h in range(HEADS):                                        # static unroll (4)
        q = qkv[:, h * HEAD_DIM:(h + 1) * HEAD_DIM]               # (128, 8) lane slices
        k = qkv[:, INNER + h * HEAD_DIM:INNER + (h + 1) * HEAD_DIM]
        v = qkv[:, 2 * INNER + h * HEAD_DIM:2 * INNER + (h + 1) * HEAD_DIM]

        s = jax.lax.dot_general(q, k, (((1,), (1,)), ((), ())),
                                preferred_element_type=jnp.float32)       # (128, 128)
        s = s * SCALE + bias
        m = jnp.max(s, axis=-1, keepdims=True)
        p = jnp.exp(s - m)                                        # masked entries underflow to 0
        d = jnp.sum(p, axis=-1, keepdims=True)
        r = pl.reciprocal(d, approx=True)                         # EUP rcp seed
        r = r * (2.0 - d * r)                                     # one Newton step -> f32 exact
        attn = p * r

        hv = jnp.dot(attn, v, preferred_element_type=jnp.float32)            # (128, 8)
        acc = acc + jnp.dot(hv, wout_ref[h * HEAD_DIM:(h + 1) * HEAD_DIM, :],
                            preferred_element_type=jnp.float32)              # (128, 32)

    o_ref[...] = acc + out_b


@jax.jit
def prenorm_window_attention_pallas(x, w_qkv_eff, w_out, bvec, attn_bias):
    """x: (B, NH, NW, DIM); all params pre-folded by prepare_operands()."""
    x_flat = x.reshape(ROWS, DIM)                                 # contiguous, no roll/transpose

    flops = (2 * ROWS * DIM * 3 * INNER
             + HEADS * (2 * ROWS * ROWS * HEAD_DIM * 2 + 2 * ROWS * HEAD_DIM * DIM))
    transcendentals = HEADS * ROWS * ROWS + HEADS * ROWS + ROWS
    bytes_accessed = 4 * (2 * ROWS * DIM + DIM * 3 * INNER + INNER * DIM
                          + (3 * INNER + DIM) + ROWS * ROWS)

    out_flat = pl.pallas_call(
        prenorm_window_attn_kernel,
        out_shape=jax.ShapeDtypeStruct((ROWS, DIM), jnp.float32),
        grid_spec=pltpu.PrefetchScalarGridSpec(
            num_scalar_prefetch=0,
            grid=(1,),                                            # single step, batch on sublanes
            in_specs=[
                pl.BlockSpec((ROWS, DIM), lambda i: (0, 0)),
                pl.BlockSpec((DIM, 3 * INNER), lambda i: (0, 0)),
                pl.BlockSpec((INNER, DIM), lambda i: (0, 0)),
                pl.BlockSpec((1, 3 * INNER + DIM), lambda i: (0, 0)),
                pl.BlockSpec((ROWS, ROWS), lambda i: (0, 0)),
            ],
            out_specs=pl.BlockSpec((ROWS, DIM), lambda i: (0, 0)),
        ),
        compiler_params=pltpu.CompilerParams(
            dimension_semantics=("arbitrary",)),
        cost_estimate=pl.CostEstimate(flops=flops,
                                      transcendentals=transcendentals,
                                      bytes_accessed=bytes_accessed),
    )(x_flat, w_qkv_eff, w_out, bvec, attn_bias)

    return out_flat.reshape(B, NH, NW, DIM)                       # already in original order


# ---------------- pure-JAX reference (for correctness check) --------------------------
def prenorm_window_attention_ref(x, gamma, beta, w_qkv, w_out, b_out,
                                 rel_bias, ul_mask, lr_mask):
    # PreNorm
    mu = jnp.mean(x, axis=-1, keepdims=True)
    var = jnp.mean((x - mu) ** 2, axis=-1, keepdims=True)
    xn = (x - mu) / jnp.sqrt(var + EPS) * gamma[0] + beta[0]
    # WindowAttention (fn)
    xs = jnp.roll(xn, shift=(-DISP, -DISP), axis=(1, 2)) if SHIFTED else xn
    qkv = xs @ w_qkv                                     # (B, NH, NW, 3*INNER)
    q, k, v = jnp.split(qkv, 3, axis=-1)

    def to_windows(t):
        t = t.reshape(B, NW_H, WS, NW_W, WS, HEADS, HEAD_DIM)
        t = t.transpose(0, 5, 1, 3, 2, 4, 6)
        return t.reshape(B, HEADS, NUM_WIN, WS2, HEAD_DIM)

    q, k, v = map(to_windows, (q, k, v))
    dots = jnp.einsum('bhwid,bhwjd->bhwij', q, k) * SCALE + rel_bias
    if SHIFTED:
        dots = dots.at[:, :, -NW_W:].add(ul_mask)
        dots = dots.at[:, :, NW_W - 1::NW_W].add(lr_mask)
    attn = jax.nn.softmax(dots, axis=-1)
    out = jnp.einsum('bhwij,bhwjd->bhwid', attn, v)
    out = out.reshape(B, HEADS, NW_H, NW_W, WS, WS, HEAD_DIM)
    out = out.transpose(0, 2, 4, 3, 5, 1, 6).reshape(B, NH, NW, INNER)
    out = out @ w_out + b_out[0]
    if SHIFTED:
        out = jnp.roll(out, shift=(DISP, DISP), axis=(1, 2))
    return out


# ---------------- main ----------------------------------------------------------------
if __name__ == "__main__":
    key = jax.random.PRNGKey(0)
    k_x, k_qkv, k_out, k_bout, k_pos, k_g, k_b = jax.random.split(key, 7)

    # deterministic synthetic inputs / parameters (shapes implied by the module)
    x = jax.random.normal(k_x, (B, NH, NW, DIM), dtype=jnp.float32)
    gamma = 1.0 + 0.1 * jax.random.normal(k_g, (1, DIM), dtype=jnp.float32)   # LN weight
    beta = 0.1 * jax.random.normal(k_b, (1, DIM), dtype=jnp.float32)          # LN bias
    w_qkv = jax.random.normal(k_qkv, (DIM, 3 * INNER), dtype=jnp.float32) * 0.1
    w_out = jax.random.normal(k_out, (INNER, DIM), dtype=jnp.float32) * 0.1
    b_out = jax.random.normal(k_bout, (1, DIM), dtype=jnp.float32) * 0.1
    pos_embedding = jax.random.normal(k_pos, (2 * WS - 1, 2 * WS - 1), dtype=jnp.float32)
    # TODO(synk): PreNorm's `fn` is an arbitrary callable; realized here as the shifted
    # WindowAttention it wraps in main.py (unused params of that fn are not materialized).

    # relative position bias (ws2, ws2), gathered from pos_embedding
    rel_idx = get_relative_distances(WS) + WS - 1                # (WS2, WS2, 2)
    rel_bias = np.asarray(pos_embedding)[rel_idx[:, :, 0], rel_idx[:, :, 1]]

    # shift masks (torch-identical, -inf)
    ul_mask = create_mask(WS, DISP, upper_lower=True, left_right=False)
    lr_mask = create_mask(WS, DISP, upper_lower=False, left_right=True)

    # one-time parameter folding (LN gamma/beta into weights, shift baked into bias)
    w_qkv_eff, w_out_j, bvec, attn_bias = prepare_operands(
        gamma, beta, w_qkv, w_out, b_out, rel_bias, ul_mask, lr_mask)

    out = prenorm_window_attention_pallas(x, w_qkv_eff, w_out_j, bvec, attn_bias)
    out = jax.block_until_ready(out)

    ref = prenorm_window_attention_ref(x, gamma, beta, w_qkv, w_out, b_out,
                                       jnp.asarray(rel_bias), jnp.asarray(ul_mask),
                                       jnp.asarray(lr_mask))
    ref = jax.block_until_ready(ref)

    np.testing.assert_allclose(np.asarray(out), np.asarray(ref), rtol=1e-4, atol=1e-4)
    print("KERNEL_OK")
</pallas_src>

<mosaic_0001>
module attributes {stable_mosaic.version = 11 : i64} {
  func.func @prenorm_window_attn_kernel(%arg0: i32, %arg1: memref<128x32xf32, #tpu.memory_space<vmem>>, %arg2: memref<32x96xf32, #tpu.memory_space<vmem>>, %arg3: memref<32x32xf32, #tpu.memory_space<vmem>>, %arg4: memref<1x128xf32, #tpu.memory_space<vmem>>, %arg5: memref<128x128xf32, #tpu.memory_space<vmem>>, %arg6: memref<128x32xf32, #tpu.memory_space<vmem>>) attributes {dimension_semantics = [#tpu.dimension_semantics<arbitrary>], iteration_bounds = array<i64: 1>, scalar_prefetch = 0 : i64, scratch_operands = 0 : i64, tpu.core_type = #tpu.core_type<tc>, window_params = [{pipeline_mode = #tpu.pipeline_mode<synchronous>, transform_indices = @transform_0, window_bounds = array<i64: 128, 32>}, {pipeline_mode = #tpu.pipeline_mode<synchronous>, transform_indices = @transform_1, window_bounds = array<i64: 32, 96>}, {pipeline_mode = #tpu.pipeline_mode<synchronous>, transform_indices = @transform_2, window_bounds = array<i64: 32, 32>}, {pipeline_mode = #tpu.pipeline_mode<synchronous>, transform_indices = @transform_3, window_bounds = array<i64: 1, 128>}, {pipeline_mode = #tpu.pipeline_mode<synchronous>, transform_indices = @transform_4, window_bounds = array<i64: 128, 128>}, {pipeline_mode = #tpu.pipeline_mode<synchronous>, transform_indices = @transform_5, window_bounds = array<i64: 128, 32>}]} {
    %c0 = arith.constant 0 : index
    %c0_0 = arith.constant 0 : index
    %0 = vector.load %arg1[%c0, %c0_0] : memref<128x32xf32, #tpu.memory_space<vmem>>, vector<128x32xf32>
    %cst = arith.constant dense<0.000000e+00> : vector<128xf32>
    %1 = vector.multi_reduction <add>, %0, %cst [1] : vector<128x32xf32> to vector<128xf32>
    %2 = vector.shape_cast %1 : vector<128xf32> to vector<128x1xf32>
    %cst_1 = arith.constant 3.200000e+01 : f32
    %3 = vector.broadcast %cst_1 : f32 to vector<128x1xf32>
    %4 = arith.divf %2, %3 : vector<128x1xf32>
    %5 = vector.broadcast %4 : vector<128x1xf32> to vector<128x32xf32>
    %6 = arith.subf %0, %5 : vector<128x32xf32>
    %7 = arith.mulf %6, %6 : vector<128x32xf32>
    %cst_2 = arith.constant dense<0.000000e+00> : vector<128xf32>
    %8 = vector.multi_reduction <add>, %7, %cst_2 [1] : vector<128x32xf32> to vector<128xf32>
    %9 = vector.shape_cast %8 : vector<128xf32> to vector<128x1xf32>
    %cst_3 = arith.constant 3.200000e+01 : f32
    %10 = vector.broadcast %cst_3 : f32 to vector<128x1xf32>
    %11 = arith.divf %9, %10 : vector<128x1xf32>
    %cst_4 = arith.constant 9.99999974E-6 : f32
    %12 = vector.broadcast %cst_4 : f32 to vector<128x1xf32>
    %13 = arith.addf %11, %12 : vector<128x1xf32>
    %14 = math.rsqrt %13 : vector<128x1xf32>
    %15 = vector.broadcast %14 : vector<128x1xf32> to vector<128x32xf32>
    %16 = arith.mulf %6, %15 : vector<128x32xf32>
    %c0_5 = arith.constant 0 : index
    %c0_6 = arith.constant 0 : index
    %17 = vector.load %arg4[%c0_5, %c0_6] : memref<1x128xf32, #tpu.memory_space<vmem>>, vector<1x128xf32>
    %18 = vector.extract_strided_slice %17 {offsets = [0, 0], sizes = [1, 96], strides = [1, 1]} : vector<1x128xf32> to vector<1x96xf32>
    %19 = vector.shape_cast %18 : vector<1x96xf32> to vector<96xf32>
    %20 = vector.extract_strided_slice %17 {offsets = [0, 96], sizes = [1, 32], strides = [1, 1]} : vector<1x128xf32> to vector<1x32xf32>
    %21 = vector.shape_cast %20 : vector<1x32xf32> to vector<32xf32>
    %c0_7 = arith.constant 0 : index
    %c0_8 = arith.constant 0 : index
    %22 = vector.load %arg2[%c0_7, %c0_8] : memref<32x96xf32, #tpu.memory_space<vmem>>, vector<32x96xf32>
    %cst_9 = arith.constant dense<0.000000e+00> : vector<128x96xf32>
    %23 = tpu.matmul %16, %22, %cst_9 {dimension_numbers = #tpu.dot_dimension_numbers<[1], [0], [0], [1], [0, 0, 1, 1], [], []>} : vector<128x32xf32>, vector<32x96xf32>, vector<128x96xf32> -> vector<128x96xf32>
    %24 = vector.shape_cast %19 : vector<96xf32> to vector<1x96xf32>
    %25 = vector.broadcast %24 : vector<1x96xf32> to vector<128x96xf32>
    %26 = arith.addf %23, %25 : vector<128x96xf32>
    %c0_10 = arith.constant 0 : index
    %c0_11 = arith.constant 0 : index
    %27 = vector.load %arg5[%c0_10, %c0_11] : memref<128x128xf32, #tpu.memory_space<vmem>>, vector<128x128xf32>
    %cst_12 = arith.constant 0.000000e+00 : f32
    %28 = vector.broadcast %cst_12 : f32 to vector<128x32xf32>
    %29 = vector.extract_strided_slice %26 {offsets = [0, 0], sizes = [128, 8], strides = [1, 1]} : vector<128x96xf32> to vector<128x8xf32>
    %30 = vector.extract_strided_slice %26 {offsets = [0, 32], sizes = [128, 8], strides = [1, 1]} : vector<128x96xf32> to vector<128x8xf32>
    %31 = vector.extract_strided_slice %26 {offsets = [0, 64], sizes = [128, 8], strides = [1, 1]} : vector<128x96xf32> to vector<128x8xf32>
    %cst_13 = arith.constant dense<0.000000e+00> : vector<128x128xf32>
    %32 = tpu.matmul %29, %30, %cst_13 {dimension_numbers = #tpu.dot_dimension_numbers<[1], [1], [0], [0], [0, 0, 1, 0], [], []>} : vector<128x8xf32>, vector<128x8xf32>, vector<128x128xf32> -> vector<128x128xf32>
    %cst_14 = arith.constant 0.353553385 : f32
    %33 = vector.broadcast %cst_14 : f32 to vector<128x128xf32>
    %34 = arith.mulf %32, %33 : vector<128x128xf32>
    %35 = arith.addf %34, %27 : vector<128x128xf32>
    %cst_15 = arith.constant dense<0xFF800000> : vector<128xf32>
    %36 = vector.multi_reduction <maximumf>, %35, %cst_15 [1] : vector<128x128xf32> to vector<128xf32>
    %37 = vector.shape_cast %36 : vector<128xf32> to vector<128x1xf32>
    %38 = vector.broadcast %37 : vector<128x1xf32> to vector<128x128xf32>
    %39 = arith.subf %35, %38 : vector<128x128xf32>
    %40 = math.exp %39 : vector<128x128xf32>
    %cst_16 = arith.constant dense<0.000000e+00> : vector<128xf32>
    %41 = vector.multi_reduction <add>, %40, %cst_16 [1] : vector<128x128xf32> to vector<128xf32>
    %42 = vector.shape_cast %41 : vector<128xf32> to vector<128x1xf32>
    %43 = tpu.reciprocal %42 {approx = true} : vector<128x1xf32> -> vector<128x1xf32>
    %44 = arith.mulf %42, %43 : vector<128x1xf32>
    %cst_17 = arith.constant 2.000000e+00 : f32
    %45 = vector.broadcast %cst_17 : f32 to vector<128x1xf32>
    %46 = arith.subf %45, %44 : vector<128x1xf32>
    %47 = arith.mulf %43, %46 : vector<128x1xf32>
    %48 = vector.broadcast %47 : vector<128x1xf32> to vector<128x128xf32>
    %49 = arith.mulf %40, %48 : vector<128x128xf32>
    %cst_18 = arith.constant dense<0.000000e+00> : vector<128x8xf32>
    %50 = tpu.matmul %49, %31, %cst_18 {dimension_numbers = #tpu.dot_dimension_numbers<[1], [0], [0], [1], [0, 0, 1, 1], [], []>} : vector<128x128xf32>, vector<128x8xf32>, vector<128x8xf32> -> vector<128x8xf32>
    %c0_19 = arith.constant 0 : index
    %c0_20 = arith.constant 0 : index
    %51 = vector.load %arg3[%c0_19, %c0_20] : memref<32x32xf32, #tpu.memory_space<vmem>>, vector<8x32xf32>
    %cst_21 = arith.constant dense<0.000000e+00> : vector<128x32xf32>
    %52 = tpu.matmul %50, %51, %cst_21 {dimension_numbers = #tpu.dot_dimension_numbers<[1], [0], [0], [1], [0, 0, 1, 1], [], []>} : vector<128x8xf32>, vector<8x32xf32>, vector<128x32xf32> -> vector<128x32xf32>
    %53 = arith.addf %28, %52 : vector<128x32xf32>
    %54 = vector.extract_strided_slice %26 {offsets = [0, 8], sizes = [128, 8], strides = [1, 1]} : vector<128x96xf32> to vector<128x8xf32>
    %55 = vector.extract_strided_slice %26 {offsets = [0, 40], sizes = [128, 8], strides = [1, 1]} : vector<128x96xf32> to vector<128x8xf32>
    %56 = vector.extract_strided_slice %26 {offsets = [0, 72], sizes = [128, 8], strides = [1, 1]} : vector<128x96xf32> to vector<128x8xf32>
    %cst_22 = arith.constant dense<0.000000e+00> : vector<128x128xf32>
    %57 = tpu.matmul %54, %55, %cst_22 {dimension_numbers = #tpu.dot_dimension_numbers<[1], [1], [0], [0], [0, 0, 1, 0], [], []>} : vector<128x8xf32>, vector<128x8xf32>, vector<128x128xf32> -> vector<128x128xf32>
    %cst_23 = arith.constant 0.353553385 : f32
    %58 = vector.broadcast %cst_23 : f32 to vector<128x128xf32>
    %59 = arith.mulf %57, %58 : vector<128x128xf32>
    %60 = arith.addf %59, %27 : vector<128x128xf32>
    %cst_24 = arith.constant dense<0xFF800000> : vector<128xf32>
    %61 = vector.multi_reduction <maximumf>, %60, %cst_24 [1] : vector<128x128xf32> to vector<128xf32>
    %62 = vector.shape_cast %61 : vector<128xf32> to vector<128x1xf32>
    %63 = vector.broadcast %62 : vector<128x1xf32> to vector<128x128xf32>
    %64 = arith.subf %60, %63 : vector<128x128xf32>
    %65 = math.exp %64 : vector<128x128xf32>
    %cst_25 = arith.constant dense<0.000000e+00> : vector<128xf32>
    %66 = vector.multi_reduction <add>, %65, %cst_25 [1] : vector<128x128xf32> to vector<128xf32>
    %67 = vector.shape_cast %66 : vector<128xf32> to vector<128x1xf32>
    %68 = tpu.reciprocal %67 {approx = true} : vector<128x1xf32> -> vector<128x1xf32>
    %69 = arith.mulf %67, %68 : vector<128x1xf32>
    %cst_26 = arith.constant 2.000000e+00 : f32
    %70 = vector.broadcast %cst_26 : f32 to vector<128x1xf32>
    %71 = arith.subf %70, %69 : vector<128x1xf32>
    %72 = arith.mulf %68, %71 : vector<128x1xf32>
    %73 = vector.broadcast %72 : vector<128x1xf32> to vector<128x128xf32>
    %74 = arith.mulf %65, %73 : vector<128x128xf32>
    %cst_27 = arith.constant dense<0.000000e+00> : vector<128x8xf32>
    %75 = tpu.matmul %74, %56, %cst_27 {dimension_numbers = #tpu.dot_dimension_numbers<[1], [0], [0], [1], [0, 0, 1, 1], [], []>} : vector<128x128xf32>, vector<128x8xf32>, vector<128x8xf32> -> vector<128x8xf32>
    %c8 = arith.constant 8 : index
    %c0_28 = arith.constant 0 : index
    %76 = vector.load %arg3[%c8, %c0_28] : memref<32x32xf32, #tpu.memory_space<vmem>>, vector<8x32xf32>
    %cst_29 = arith.constant dense<0.000000e+00> : vector<128x32xf32>
    %77 = tpu.matmul %75, %76, %cst_29 {dimension_numbers = #tpu.dot_dimension_numbers<[1], [0], [0], [1], [0, 0, 1, 1], [], []>} : vector<128x8xf32>, vector<8x32xf32>, vector<128x32xf32> -> vector<128x32xf32>
    %78 = arith.addf %53, %77 : vector<128x32xf32>
    %79 = vector.extract_strided_slice %26 {offsets = [0, 16], sizes = [128, 8], strides = [1, 1]} : vector<128x96xf32> to vector<128x8xf32>
    %80 = vector.extract_strided_slice %26 {offsets = [0, 48], sizes = [128, 8], strides = [1, 1]} : vector<128x96xf32> to vector<128x8xf32>
    %81 = vector.extract_strided_slice %26 {offsets = [0, 80], sizes = [128, 8], strides = [1, 1]} : vector<128x96xf32> to vector<128x8xf32>
    %cst_30 = arith.constant dense<0.000000e+00> : vector<128x128xf32>
    %82 = tpu.matmul %79, %80, %cst_30 {dimension_numbers = #tpu.dot_dimension_numbers<[1], [1], [0], [0], [0, 0, 1, 0], [], []>} : vector<128x8xf32>, vector<128x8xf32>, vector<128x128xf32> -> vector<128x128xf32>
    %cst_31 = arith.constant 0.353553385 : f32
    %83 = vector.broadcast %cst_31 : f32 to vector<128x128xf32>
    %84 = arith.mulf %82, %83 : vector<128x128xf32>
    %85 = arith.addf %84, %27 : vector<128x128xf32>
    %cst_32 = arith.constant dense<0xFF800000> : vector<128xf32>
    %86 = vector.multi_reduction <maximumf>, %85, %cst_32 [1] : vector<128x128xf32> to vector<128xf32>
    %87 = vector.shape_cast %86 : vector<128xf32> to vector<128x1xf32>
    %88 = vector.broadcast %87 : vector<128x1xf32> to vector<128x128xf32>
    %89 = arith.subf %85, %88 : vector<128x128xf32>
    %90 = math.exp %89 : vector<128x128xf32>
    %cst_33 = arith.constant dense<0.000000e+00> : vector<128xf32>
    %91 = vector.multi_reduction <add>, %90, %cst_33 [1] : vector<128x128xf32> to vector<128xf32>
    %92 = vector.shape_cast %91 : vector<128xf32> to vector<128x1xf32>
    %93 = tpu.reciprocal %92 {approx = true} : vector<128x1xf32> -> vector<128x1xf32>
    %94 = arith.mulf %92, %93 : vector<128x1xf32>
    %cst_34 = arith.constant 2.000000e+00 : f32
    %95 = vector.broadcast %cst_34 : f32 to vector<128x1xf32>
    %96 = arith.subf %95, %94 : vector<128x1xf32>
    %97 = arith.mulf %93, %96 : vector<128x1xf32>
    %98 = vector.broadcast %97 : vector<128x1xf32> to vector<128x128xf32>
    %99 = arith.mulf %90, %98 : vector<128x128xf32>
    %cst_35 = arith.constant dense<0.000000e+00> : vector<128x8xf32>
    %100 = tpu.matmul %99, %81, %cst_35 {dimension_numbers = #tpu.dot_dimension_numbers<[1], [0], [0], [1], [0, 0, 1, 1], [], []>} : vector<128x128xf32>, vector<128x8xf32>, vector<128x8xf32> -> vector<128x8xf32>
    %c16 = arith.constant 16 : index
    %c0_36 = arith.constant 0 : index
    %101 = vector.load %arg3[%c16, %c0_36] : memref<32x32xf32, #tpu.memory_space<vmem>>, vector<8x32xf32>
    %cst_37 = arith.constant dense<0.000000e+00> : vector<128x32xf32>
    %102 = tpu.matmul %100, %101, %cst_37 {dimension_numbers = #tpu.dot_dimension_numbers<[1], [0], [0], [1], [0, 0, 1, 1], [], []>} : vector<128x8xf32>, vector<8x32xf32>, vector<128x32xf32> -> vector<128x32xf32>
    %103 = arith.addf %78, %102 : vector<128x32xf32>
    %104 = vector.extract_strided_slice %26 {offsets = [0, 24], sizes = [128, 8], strides = [1, 1]} : vector<128x96xf32> to vector<128x8xf32>
    %105 = vector.extract_strided_slice %26 {offsets = [0, 56], sizes = [128, 8], strides = [1, 1]} : vector<128x96xf32> to vector<128x8xf32>
    %106 = vector.extract_strided_slice %26 {offsets = [0, 88], sizes = [128, 8], strides = [1, 1]} : vector<128x96xf32> to vector<128x8xf32>
    %cst_38 = arith.constant dense<0.000000e+00> : vector<128x128xf32>
    %107 = tpu.matmul %104, %105, %cst_38 {dimension_numbers = #tpu.dot_dimension_numbers<[1], [1], [0], [0], [0, 0, 1, 0], [], []>} : vector<128x8xf32>, vector<128x8xf32>, vector<128x128xf32> -> vector<128x128xf32>
    %cst_39 = arith.constant 0.353553385 : f32
    %108 = vector.broadcast %cst_39 : f32 to vector<128x128xf32>
    %109 = arith.mulf %107, %108 : vector<128x128xf32>
    %110 = arith.addf %109, %27 : vector<128x128xf32>
    %cst_40 = arith.constant dense<0xFF800000> : vector<128xf32>
    %111 = vector.multi_reduction <maximumf>, %110, %cst_40 [1] : vector<128x128xf32> to vector<128xf32>
    %112 = vector.shape_cast %111 : vector<128xf32> to vector<128x1xf32>
    %113 = vector.broadcast %112 : vector<128x1xf32> to vector<128x128xf32>
    %114 = arith.subf %110, %113 : vector<128x128xf32>
    %115 = math.exp %114 : vector<128x128xf32>
    %cst_41 = arith.constant dense<0.000000e+00> : vector<128xf32>
    %116 = vector.multi_reduction <add>, %115, %cst_41 [1] : vector<128x128xf32> to vector<128xf32>
    %117 = vector.shape_cast %116 : vector<128xf32> to vector<128x1xf32>
    %118 = tpu.reciprocal %117 {approx = true} : vector<128x1xf32> -> vector<128x1xf32>
    %119 = arith.mulf %117, %118 : vector<128x1xf32>
    %cst_42 = arith.constant 2.000000e+00 : f32
    %120 = vector.broadcast %cst_42 : f32 to vector<128x1xf32>
    %121 = arith.subf %120, %119 : vector<128x1xf32>
    %122 = arith.mulf %118, %121 : vector<128x1xf32>
    %123 = vector.broadcast %122 : vector<128x1xf32> to vector<128x128xf32>
    %124 = arith.mulf %115, %123 : vector<128x128xf32>
    %cst_43 = arith.constant dense<0.000000e+00> : vector<128x8xf32>
    %125 = tpu.matmul %124, %106, %cst_43 {dimension_numbers = #tpu.dot_dimension_numbers<[1], [0], [0], [1], [0, 0, 1, 1], [], []>} : vector<128x128xf32>, vector<128x8xf32>, vector<128x8xf32> -> vector<128x8xf32>
    %c24 = arith.constant 24 : index
    %c0_44 = arith.constant 0 : index
    %126 = vector.load %arg3[%c24, %c0_44] : memref<32x32xf32, #tpu.memory_space<vmem>>, vector<8x32xf32>
    %cst_45 = arith.constant dense<0.000000e+00> : vector<128x32xf32>
    %127 = tpu.matmul %125, %126, %cst_45 {dimension_numbers = #tpu.dot_dimension_numbers<[1], [0], [0], [1], [0, 0, 1, 1], [], []>} : vector<128x8xf32>, vector<8x32xf32>, vector<128x32xf32> -> vector<128x32xf32>
    %128 = arith.addf %103, %127 : vector<128x32xf32>
    %129 = vector.shape_cast %21 : vector<32xf32> to vector<1x32xf32>
    %130 = vector.broadcast %129 : vector<1x32xf32> to vector<128x32xf32>
    %131 = arith.addf %128, %130 : vector<128x32xf32>
    %c0_46 = arith.constant 0 : index
    %c0_47 = arith.constant 0 : index
    %132 = vector.load %arg6[%c0_46, %c0_47] : memref<128x32xf32, #tpu.memory_space<vmem>>, vector<128x32xf32>
    tpu.vector_store %arg6[%c0_46, %c0_47], %131 {strides = array<i32>} : memref<128x32xf32, #tpu.memory_space<vmem>>, vector<128x32xf32>,
    return
  }
  func.func @transform_0(%arg0: i32) -> (i32, i32) {
    %c0_i32 = arith.constant 0 : i32
    %c0_i32_0 = arith.constant 0 : i32
    %c0_i32_1 = arith.constant 0 : i32
    return %c0_i32, %c0_i32_0 : i32, i32
  }
  func.func @transform_1(%arg0: i32) -> (i32, i32) {
    %c0_i32 = arith.constant 0 : i32
    %c0_i32_0 = arith.constant 0 : i32
    %c0_i32_1 = arith.constant 0 : i32
    return %c0_i32, %c0_i32_0 : i32, i32
  }
  func.func @transform_2(%arg0: i32) -> (i32, i32) {
    %c0_i32 = arith.constant 0 : i32
    %c0_i32_0 = arith.constant 0 : i32
    %c0_i32_1 = arith.constant 0 : i32
    return %c0_i32, %c0_i32_0 : i32, i32
  }
  func.func @transform_3(%arg0: i32) -> (i32, i32) {
    %c0_i32 = arith.constant 0 : i32
    %c0_i32_0 = arith.constant 0 : i32
    %c0_i32_1 = arith.constant 0 : i32
    return %c0_i32, %c0_i32_0 : i32, i32
  }
  func.func @transform_4(%arg0: i32) -> (i32, i32) {
    %c0_i32 = arith.constant 0 : i32
    %c0_i32_0 = arith.constant 0 : i32
    %c0_i32_1 = arith.constant 0 : i32
    return %c0_i32, %c0_i32_0 : i32, i32
  }
  func.func @transform_5(%arg0: i32) -> (i32, i32) {
    %c0_i32 = arith.constant 0 : i32
    %c0_i32_0 = arith.constant 0 : i32
    %c0_i32_1 = arith.constant 0 : i32
    return %c0_i32, %c0_i32_0 : i32, i32
  }
}

</mosaic_0001>

<bundles_post_ra>
// kernel: prenorm_window_attention_pallas.1
= control target key start
LH: loop header
LB: loop body
LE: loop exit
PB: predicated region body
PF: predicated region fallthrough
CT: control target
= control target key end

     0   :  { %10 = vsyncpa [#allocation3], 0  ;;  %s8076_s0 = inlined_call_operand.hbm [shape: f32[128,32], index: 0, kind: input, shape index: {}]   ;;  %s8077_s1 = inlined_call_operand.hbm [shape: f32[32,96], index: 1, kind: input, shape index: {}]   ;;  %s8078_s2 = inlined_call_operand.hbm [shape: f32[32,32], index: 2, kind: input, shape index: {}]   ;;  %s8079_s3 = inlined_call_operand.vmem [shape: f32[1,128], index: 3, kind: input, shape index: {}]   ;;  %s8080_s4 = inlined_call_operand.hbm [shape: f32[128,128], index: 4, kind: input, shape index: {}]   ;;  %s8081_s5 = inlined_call_operand.hbm [shape: f32[128,32], index: 5, kind: output, shape index: {}]  }
   0x1   :  { %11 = vsyncpa [#allocation6], 0 }
   0x2   :  { %12 = vsyncpa [#allocation9], 0 }
   0x3   :  { %13 = vsyncpa [#allocation4], 0  ;;  %s6436_s18 = smov [#allocation5]   ;;  %s6437_s20 = smov [#allocation2]  }
   0x4   :  { %s31_s19 = sshll.u32 %s6436_s18, 4  ;;  %s19_s21 = sshll.u32 %s6437_s20, 4  ;;  %s32_s19 = int_to_ptr.vmem [resolvable:$true] %s31_s19  ;;  %s6485_s21 = int_to_ptr.vmem [resolvable:$true] %s19_s21 }
   0x5   :  { %s6318_s24 = scalar_lea.hbm %s8077_s1, 512 }
   0x6   :  { %p6319_p0 = scmp.ne.s32.totalorder %s8077_s1, %s6318_s24  ;;  %p6322_p1 = scmp.lt.u32.totalorder %s6318_s24, %s8077_s1 }
   0x8   :  { %p6324_p2 = pnand %p6322_p1, %p6319_p0 }
   0xa   :  { %6327 = shalt.err (!%p6324_p2)
}
   0xb   :  { %s6328_s29 = scalar_lea.vmem %s32_s19, 512  ;;  %p6333_p4 = scmp.lt.s32.totalorder %s32_s19, %s32_s19 }
   0xc   :  { %p6329_p3 = scmp.ne.s32.totalorder %s32_s19, %s6328_s29  ;;  %p6334_p5 = scmp.lt.s32.totalorder %s6328_s29, %s6328_s29 }
   0xe   :  { %p6335_p6 = por %p6334_p5, %p6333_p4 }
  0x10   :  { %p6336_p7 = pnand %p6335_p6, %p6329_p3 }
  0x12   :  { %6339 = shalt.err (!%p6336_p7)
}
  0x13   :  { %s6438_s30 = smov 128   ;;  %s6439_s6 = smov 8  }
  0x14   :  { %37 = dma.hbm_to_vmem [thread:$0]  %s8077_s1, 512, %s32_s19, [#allocation6], %s6438_s30, %s6438_s30, %s6439_s6  }
  0x15   :  { %s6340_s11 = scalar_lea.hbm %s8076_s0, 2048 }
  0x16   :  { %p6341_p8 = scmp.ne.s32.totalorder %s8076_s0, %s6340_s11  ;;  %p6344_p9 = scmp.lt.u32.totalorder %s6340_s11, %s8076_s0 }
  0x18   :  { %p6346_p10 = pnand %p6344_p9, %p6341_p8 }
  0x1a   :  { %6349 = shalt.err (!%p6346_p10)
}
  0x1b   :  { %s6350_s16 = scalar_lea.vmem %s6485_s21, 2048  ;;  %p6355_p12 = scmp.lt.s32.totalorder %s6485_s21, %s6485_s21 }
  0x1c   :  { %p6351_p11 = scmp.ne.s32.totalorder %s6485_s21, %s6350_s16  ;;  %p6356_p13 = scmp.lt.s32.totalorder %s6350_s16, %s6350_s16 }
  0x1e   :  { %p6357_p0 = por %p6356_p13, %p6355_p12 }
  0x20   :  { %p6358_p1 = pnand %p6357_p0, %p6351_p11 }
  0x22   :  { %6361 = shalt.err (!%p6358_p1)
}
  0x23   :  { %25 = dma.hbm_to_vmem [thread:$0]  %s8076_s0, 2048, %s6485_s21, [#allocation3], %s6438_s30, %s6438_s30, %s6439_s6  }
  0x24   :  { %s6440_s18 = smov [#allocation7]   ;;  %s6441_s20 = smov [#allocation8]  }
  0x25   :  { %s43_s19 = sshll.u32 %s6440_s18, 4  ;;  %s57_s22 = sshll.u32 %s6441_s20, 4  ;;  %s44_s19 = int_to_ptr.vmem [resolvable:$true] %s43_s19  ;;  %s6522_s22 = int_to_ptr.vmem [resolvable:$true] %s57_s22 }
  0x26   :  { %s6362_s25 = scalar_lea.hbm %s8078_s2, 512 }
  0x27   :  { %p6363_p2 = scmp.ne.s32.totalorder %s8078_s2, %s6362_s25  ;;  %p6366_p3 = scmp.lt.u32.totalorder %s6362_s25, %s8078_s2 }
  0x29   :  { %p6368_p4 = pnand %p6366_p3, %p6363_p2 }
  0x2b   :  { %6371 = shalt.err (!%p6368_p4)
}
  0x2c   :  { %s6372_s0 = scalar_lea.vmem %s44_s19, 512  ;;  %p6377_p6 = scmp.lt.s32.totalorder %s44_s19, %s44_s19 }
  0x2d   :  { %p6373_p5 = scmp.ne.s32.totalorder %s44_s19, %s6372_s0  ;;  %p6378_p7 = scmp.lt.s32.totalorder %s6372_s0, %s6372_s0 }
  0x2f   :  { %p6379_p8 = por %p6378_p7, %p6377_p6 }
  0x31   :  { %p6380_p9 = pnand %p6379_p8, %p6373_p5 }
  0x33   :  { %6383 = shalt.err (!%p6380_p9)
}
  0x34   :  { %49 = dma.hbm_to_vmem [thread:$0]  %s8078_s2, 512, %s44_s19, [#allocation6], %s6438_s30, %s6438_s30, %s6439_s6  }
  0x35   :  { %s6384_s10 = scalar_lea.hbm %s8080_s4, 2048 }
  0x36   :  { %p6385_p10 = scmp.ne.s32.totalorder %s8080_s4, %s6384_s10  ;;  %p6388_p11 = scmp.lt.u32.totalorder %s6384_s10, %s8080_s4 }
  0x38   :  { %p6390_p12 = pnand %p6388_p11, %p6385_p10 }
  0x3a   :  { %6393 = shalt.err (!%p6390_p12)
}
  0x3b   :  { %s6394_s15 = scalar_lea.vmem %s6522_s22, 2048  ;;  %p6399_p0 = scmp.lt.s32.totalorder %s6522_s22, %s6522_s22 }
  0x3c   :  { %p6395_p13 = scmp.ne.s32.totalorder %s6522_s22, %s6394_s15  ;;  %p6400_p1 = scmp.lt.s32.totalorder %s6394_s15, %s6394_s15 }
  0x3e   :  { %p6401_p2 = por %p6400_p1, %p6399_p0 }
  0x40   :  { %p6402_p3 = pnand %p6401_p2, %p6395_p13 }
  0x42   :  { %6405 = shalt.err (!%p6402_p3)
}
  0x43   :  { %63 = dma.hbm_to_vmem [thread:$0]  %s8080_s4, 2048, %s6522_s22, [#allocation9], %s6438_s30, %s6438_s30, %s6439_s6  }
  0x44   :  { %6428 = dma.done.wait [#allocation3], 2048  }
  0x45   :  { %6429 = vsyncadd [#allocation3], 4294965248 }
  0x46   :  { %6430 = dma.done.wait [#allocation6], 1024  }
  0x47   :  { %6431 = vsyncadd [#allocation6], 4294966272 }
  0x48   :  { %6432 = dma.done.wait [#allocation9], 2048  }
  0x49   :  { %6433 = vsyncadd [#allocation9], 4294965248  ;;  %vm92_vm0 = vcmask 261120   ;;  %v76_v0 = vld [vmem:[#allocation2] sm:$0xff]  ;;  %v78_v1 = vld [vmem:[#allocation2 + $0x10] sm:$0xff]  ;;  %vm570_vm1 = vcmask 64512  }
  0x4a   :  { %v77_v2 = vld [vmem:[#allocation2 + $0x8] sm:$0xff]  ;;  %v93_v3 = vsel %vm92_vm0, %v76_v0, 0.0  ;;  %v99_v4 = vsel %vm92_vm0, %v78_v1, 0.0  ;;  %v79_v5 = vld [vmem:[#allocation2 + $0x18] sm:$0xff]  ;;  %v80_v8 = vld [vmem:[#allocation2 + $0x20] sm:$0xff]  ;;  %s6442_s17 = smov 96  }
  0x4b   :  { %94 = vadd.xlane.f32.xlu0 %v93_v3  ;;  %100 = vadd.xlane.f32.xlu1 %v99_v4  ;;  %v96_v6 = vsel %vm92_vm0, %v77_v2, 0.0  ;;  %v102_v7 = vsel %vm92_vm0, %v79_v5, 0.0  ;;  %v81_v9 = vld [vmem:[#allocation2 + $0x28] sm:$0xff]  ;;  %v105_v10 = vsel %vm92_vm0, %v80_v8, 0.0  ;;  %v6565_v12 = vld [vmem:[#allocation2 + $0x30] sm:$0xff]  ;;  %v6567_v13 = vld [vmem:[#allocation2 + $0x38] sm:$0xff] }
  0x4c   :  { %v108_v11 = vsel %vm92_vm0, %v81_v9, 0.0  ;;  %v111_v14 = vsel %vm92_vm0, %v6565_v12, 0.0  ;;  %v114_v15 = vsel %vm92_vm0, %v6567_v13, 0.0  ;;  %v6573_v16 = vld [vmem:[#allocation2 + $0x40] sm:$0xff]  ;;  %v6575_v17 = vld [vmem:[#allocation2 + $0x48] sm:$0xff]  ;;  %v6581_v20 = vld [vmem:[#allocation2 + $0x50] sm:$0xff] }
  0x4d   :  { %v117_v18 = vsel %vm92_vm0, %v6573_v16, 0.0  ;;  %v120_v19 = vsel %vm92_vm0, %v6575_v17, 0.0  ;;  %v6583_v21 = vld [vmem:[#allocation2 + $0x58] sm:$0xff]  ;;  %v123_v22 = vsel %vm92_vm0, %v6581_v20, 0.0  ;;  %v6589_v24 = vld [vmem:[#allocation2 + $0x60] sm:$0xff]  ;;  %v6591_v25 = vld [vmem:[#allocation2 + $0x68] sm:$0xff] }
  0x4e   :  { %v126_v23 = vsel %vm92_vm0, %v6583_v21, 0.0  ;;  %v129_v26 = vsel %vm92_vm0, %v6589_v24, 0.0  ;;  %v132_v27 = vsel %vm92_vm0, %v6591_v25, 0.0  ;;  %v6597_v28 = vld [vmem:[#allocation2 + $0x70] sm:$0xff]  ;;  %v6599_v29 = vld [vmem:[#allocation2 + $0x78] sm:$0xff]  ;;  %s6443_s18 = smov 64   ;;  %vm6824_vm2 = vmpackc.low %vm570_vm1, %vm570_vm1 }
  0x4f   :  { %97 = vadd.xlane.f32.xlu0 %v96_v6  ;;  %103 = vadd.xlane.f32.xlu1 %v102_v7  ;;  %v135_v30 = vsel %vm92_vm0, %v6597_v28, 0.0  ;;  %v138_v31 = vsel %vm92_vm0, %v6599_v29, 0.0  ;;  %s6444_s19 = smov 88   ;;  %s6445_s20 = smov 120  }
  0x50   :  { %s6446_s22 = smov 80   ;;  %s6447_s23 = smov 112  }
  0x51   :  { %s6448_s24 = smov 56   ;;  %s6449_s25 = smov 72  }
  0x52   :  { %s6450_s26 = smov 104   ;;  %s6451_s27 = smov 48  }
  0x53   :  { %106 = vadd.xlane.f32.xlu0 %v105_v10  ;;  %109 = vadd.xlane.f32.xlu1 %v108_v11  ;;  %s6452_s28 = smov 40   ;;  %s6453_s21 = smov 32  }
  0x57   :  { %112 = vadd.xlane.f32.xlu0 %v111_v14  ;;  %115 = vadd.xlane.f32.xlu1 %v114_v15 }
  0x5b   :  { %118 = vadd.xlane.f32.xlu0 %v117_v18  ;;  %121 = vadd.xlane.f32.xlu1 %v120_v19 }
  0x5f   :  { %124 = vadd.xlane.f32.xlu0 %v123_v22  ;;  %127 = vadd.xlane.f32.xlu1 %v126_v23 }
  0x63   :  { %130 = vadd.xlane.f32.xlu0 %v129_v26  ;;  %133 = vadd.xlane.f32.xlu1 %v132_v27 }
  0x67   :  { %136 = vadd.xlane.f32.xlu0 %v135_v30  ;;  %139 = vadd.xlane.f32.xlu1 %v138_v31 }
  0xd8   :  { %v95_v32 = vpop.xlane.xlu0 %94  ;;  %v101_v33 = vpop.xlane.xlu1 %100 }
  0xd9   :  { %v142_v34 = vmul.f32 0.03125, %v95_v32  ;;  %v144_v35 = vmul.f32 0.03125, %v101_v33 }
  0xdb   :  { %v6605_v36 = vsub.f32 %v76_v0, %v142_v34  ;;  %v6607_v37 = vsub.f32 %v78_v1, %v144_v35 }
  0xdc   :  { %v98_v38 = vpop.xlane.xlu0 %97  ;;  %v104_v39 = vpop.xlane.xlu1 %103 }
  0xdd   :  { %v143_v40 = vmul.f32 0.03125, %v98_v38  ;;  %v145_v41 = vmul.f32 0.03125, %v104_v39  ;;  %v174_v42 = vmul.f32 %v6605_v36, %v6605_v36  ;;  %v176_v43 = vmul.f32 %v6607_v37, %v6607_v37 }
  0xdf   :  { %v6613_v44 = vsub.f32 %v77_v2, %v143_v40  ;;  %v6615_v45 = vsub.f32 %v79_v5, %v145_v41  ;;  %v190_v46 = vsel %vm92_vm0, %v174_v42, 0.0  ;;  %v196_v49 = vsel %vm92_vm0, %v176_v43, 0.0 }
  0xe0   :  { %191 = vadd.xlane.f32.xlu0 %v190_v46  ;;  %v107_v47 = vpop.xlane.xlu0 %106  ;;  %v110_v48 = vpop.xlane.xlu1 %109 }
  0xe1   :  { %v146_v50 = vmul.f32 0.03125, %v107_v47  ;;  %v147_v51 = vmul.f32 0.03125, %v110_v48  ;;  %v175_v52 = vmul.f32 %v6613_v44, %v6613_v44  ;;  %v177_v53 = vmul.f32 %v6615_v45, %v6615_v45 }
  0xe3   :  { %v6623_v54 = vsub.f32 %v80_v8, %v146_v50  ;;  %v6625_v55 = vsub.f32 %v81_v9, %v147_v51  ;;  %v193_v56 = vsel %vm92_vm0, %v175_v52, 0.0  ;;  %v199_v59 = vsel %vm92_vm0, %v177_v53, 0.0  ;;  %v303_v52 = vld [vmem:[#allocation5] sm:$0xff]  ;;  %v304_v53 = vld [vmem:[#allocation5 + $0x8] sm:$0xff] }
  0xe4   :  { %197 = vadd.xlane.f32.xlu0 %v196_v49  ;;  %194 = vadd.xlane.f32.xlu1 %v193_v56  ;;  %v113_v57 = vpop.xlane.xlu0 %112  ;;  %v116_v58 = vpop.xlane.xlu1 %115  ;;  %v5266_v56 = vpack.c.bf16 %v304_v53, %v303_v52 }
  0xe5   :  { %v148_v60 = vmul.f32 0.03125, %v113_v57  ;;  %v149_v61 = vmul.f32 0.03125, %v116_v58  ;;  %v178_v62 = vmul.f32 %v6623_v54, %v6623_v54  ;;  %v179_v63 = vmul.f32 %v6625_v55, %v6625_v55  ;;  %v305_v57 = vld [vmem:[#allocation5 + $0x10] sm:$0xff]  ;;  %v306_v58 = vld [vmem:[#allocation5 + $0x18] sm:$0xff] }
  0xe6   :  { %5267 = vmatprep.subr.bf16.mxu0 %v5266_v56 }
  0xe7   :  { %v6634_v0 = vsub.f32 %v6565_v12, %v148_v60  ;;  %v6637_v1 = vsub.f32 %v6567_v13, %v149_v61  ;;  %v202_v2 = vsel %vm92_vm0, %v178_v62, 0.0  ;;  %v205_v5 = vsel %vm92_vm0, %v179_v63, 0.0  ;;  %5269 = vmatpush3.bf16.msra.mxu0 %v5266_v56 }
  0xe8   :  { %200 = vadd.xlane.f32.xlu1 %v199_v59  ;;  %203 = vadd.xlane.f32.xlu0 %v202_v2  ;;  %v119_v3 = vpop.xlane.xlu0 %118  ;;  %v122_v4 = vpop.xlane.xlu1 %121  ;;  %v5270_v59 = vpack.c.bf16 %v306_v58, %v305_v57 }
  0xe9   :  { %v150_v6 = vmul.f32 0.03125, %v119_v3  ;;  %v151_v7 = vmul.f32 0.03125, %v122_v4  ;;  %v180_v8 = vmul.f32 %v6634_v0, %v6634_v0  ;;  %v181_v9 = vmul.f32 %v6637_v1, %v6637_v1 }
  0xea   :  { %5271 = vmatprep.subr.bf16.mxu0 %v5270_v59 }
  0xeb   :  { %v6646_v10 = vsub.f32 %v6573_v16, %v150_v6  ;;  %v6649_v11 = vsub.f32 %v6575_v17, %v151_v7  ;;  %v208_v12 = vsel %vm92_vm0, %v180_v8, 0.0  ;;  %v211_v15 = vsel %vm92_vm0, %v181_v9, 0.0  ;;  %5273 = vmatpush3.bf16.msra.mxu0 %v5270_v59 }
  0xec   :  { %206 = vadd.xlane.f32.xlu1 %v205_v5  ;;  %209 = vadd.xlane.f32.xlu0 %v208_v12  ;;  %v125_v13 = vpop.xlane.xlu0 %124  ;;  %v128_v14 = vpop.xlane.xlu1 %127 }
  0xed   :  { %v152_v18 = vmul.f32 0.03125, %v125_v13  ;;  %v153_v19 = vmul.f32 0.03125, %v128_v14  ;;  %v182_v22 = vmul.f32 %v6646_v10, %v6646_v10  ;;  %v183_v16 = vmul.f32 %v6649_v11, %v6649_v11 }
  0xef   :  { %v6658_v23 = vsub.f32 %v6581_v20, %v152_v18  ;;  %v6661_v17 = vsub.f32 %v6583_v21, %v153_v19  ;;  %v214_v26 = vsel %vm92_vm0, %v182_v22, 0.0  ;;  %v217_v31 = vsel %vm92_vm0, %v183_v16, 0.0 }
  0xf0   :  { %212 = vadd.xlane.f32.xlu1 %v211_v15  ;;  %215 = vadd.xlane.f32.xlu0 %v214_v26  ;;  %v131_v27 = vpop.xlane.xlu0 %130  ;;  %v134_v30 = vpop.xlane.xlu1 %133 }
  0xf1   :  { %v154_v32 = vmul.f32 0.03125, %v131_v27  ;;  %v155_v33 = vmul.f32 0.03125, %v134_v30  ;;  %v184_v34 = vmul.f32 %v6658_v23, %v6658_v23  ;;  %v185_v20 = vmul.f32 %v6661_v17, %v6661_v17 }
  0xf3   :  { %v6670_v35 = vsub.f32 %v6589_v24, %v154_v32  ;;  %v6673_v21 = vsub.f32 %v6591_v25, %v155_v33  ;;  %v220_v38 = vsel %vm92_vm0, %v184_v34, 0.0  ;;  %v223_v41 = vsel %vm92_vm0, %v185_v20, 0.0 }
  0xf4   :  { %218 = vadd.xlane.f32.xlu1 %v217_v31  ;;  %221 = vadd.xlane.f32.xlu0 %v220_v38  ;;  %v137_v39 = vpop.xlane.xlu0 %136  ;;  %v140_v40 = vpop.xlane.xlu1 %139 }
  0xf5   :  { %v156_v42 = vmul.f32 0.03125, %v137_v39  ;;  %v157_v43 = vmul.f32 0.03125, %v140_v40  ;;  %v186_v46 = vmul.f32 %v6670_v35, %v6670_v35  ;;  %v187_v24 = vmul.f32 %v6673_v21, %v6673_v21 }
  0xf7   :  { %v6682_v47 = vsub.f32 %v6597_v28, %v156_v42  ;;  %v6685_v25 = vsub.f32 %v6599_v29, %v157_v43  ;;  %v226_v48 = vsel %vm92_vm0, %v186_v46, 0.0  ;;  %v229_v49 = vsel %vm92_vm0, %v187_v24, 0.0 }
  0xf8   :  { %224 = vadd.xlane.f32.xlu1 %v223_v41  ;;  %227 = vadd.xlane.f32.xlu0 %v226_v48 }
  0xf9   :  { %v188_v50 = vmul.f32 %v6682_v47, %v6682_v47  ;;  %v189_v51 = vmul.f32 %v6685_v25, %v6685_v25 }
  0xfb   :  { %v232_v28 = vsel %vm92_vm0, %v188_v50, 0.0  ;;  %v235_v29 = vsel %vm92_vm0, %v189_v51, 0.0 }
  0xfc   :  { %230 = vadd.xlane.f32.xlu1 %v229_v49  ;;  %233 = vadd.xlane.f32.xlu0 %v232_v28 }
 0x100   :  { %236 = vadd.xlane.f32.xlu1 %v235_v29 }
 0x16d   :  { %v192_v60 = vpop.xlane.xlu0 %191 }
 0x16e   :  { %v238_v61 = vmul.f32 0.03125, %v192_v60 }
 0x170   :  { %v254_v62 = vadd.f32 1e-05, %v238_v61 }
 0x171   :  { %v195_v63 = vpop.xlane.xlu1 %194  ;;  %v198_v2 = vpop.xlane.xlu0 %197 }
 0x172   :  { %5997 = vrsqrt.f32 %v254_v62  ;;  %v239_v3 = vmul.f32 0.03125, %v195_v63  ;;  %v240_v4 = vmul.f32 0.03125, %v198_v2 }
 0x174   :  { %v255_v5 = vadd.f32 1e-05, %v239_v3  ;;  %v256_v6 = vadd.f32 1e-05, %v240_v4 }
 0x175   :  { %v201_v7 = vpop.xlane.xlu1 %200  ;;  %v204_v8 = vpop.xlane.xlu0 %203 }
 0x176   :  { %5999 = vrsqrt.f32 %v255_v5  ;;  %v241_v9 = vmul.f32 0.03125, %v201_v7  ;;  %v242_v12 = vmul.f32 0.03125, %v204_v8 }
 0x177   :  { %6001 = vrsqrt.f32 %v256_v6 }
 0x178   :  { %v257_v13 = vadd.f32 1e-05, %v241_v9  ;;  %v258_v14 = vadd.f32 1e-05, %v242_v12 }
 0x179   :  { %v207_v15 = vpop.xlane.xlu1 %206  ;;  %v210_v18 = vpop.xlane.xlu0 %209 }
 0x17a   :  { %6003 = vrsqrt.f32 %v257_v13  ;;  %v243_v19 = vmul.f32 0.03125, %v207_v15  ;;  %v244_v22 = vmul.f32 0.03125, %v210_v18 }
 0x17b   :  { %6005 = vrsqrt.f32 %v258_v14 }
 0x17c   :  { %v5998_v16 = vpop.eup %5997  ;;  %v259_v26 = vadd.f32 1e-05, %v243_v19  ;;  %v260_v27 = vadd.f32 1e-05, %v244_v22 }
 0x17d   :  { %v213_v30 = vpop.xlane.xlu1 %212  ;;  %v216_v31 = vpop.xlane.xlu0 %215  ;;  %v286_v32 = vmul.f32 %v5998_v16, %v6605_v36 }
 0x17e   :  { %6007 = vrsqrt.f32 %v259_v26  ;;  %v245_v33 = vmul.f32 0.03125, %v213_v30  ;;  %v246_v34 = vmul.f32 0.03125, %v216_v31 }
 0x17f   :  { %6009 = vrsqrt.f32 %v260_v27  ;;  %4690 = vmatprep.mubr.msk.f32.mxu0 %vm92_vm0, %v286_v32 }
 0x180   :  { %v6000_v20 = vpop.eup %5999  ;;  %v261_v38 = vadd.f32 1e-05, %v245_v33  ;;  %v262_v39 = vadd.f32 1e-05, %v246_v34 }
 0x181   :  { %v6002_v40 = vpop.eup %6001  ;;  %v219_v41 = vpop.xlane.xlu1 %218  ;;  %v287_v43 = vmul.f32 %v6000_v20, %v6613_v44 }
 0x182   :  { %v222_v42 = vpop.xlane.xlu0 %221  ;;  %6011 = vrsqrt.f32 %v261_v38  ;;  %v247_v46 = vmul.f32 0.03125, %v219_v41  ;;  %v288_v48 = vmul.f32 %v6002_v40, %v6607_v37 }
 0x183   :  { %v248_v24 = vmul.f32 0.03125, %v222_v42  ;;  %6013 = vrsqrt.f32 %v262_v39  ;;  %4691 = vmatmul.mubr.msk.f32.vlgmr.msra.gmra.mrb[0].mxu0 %vm92_vm0, %v287_v43 }
 0x184   :  { %v6004_v36 = vpop.eup %6003  ;;  %v263_v49 = vadd.f32 1e-05, %v247_v46  ;;  %4693 = vmatprep.mubr.msk.f32.mxu0 %vm92_vm0, %v288_v48 }
 0x185   :  { %v264_v50 = vadd.f32 1e-05, %v248_v24  ;;  %v6006_v51 = vpop.eup %6005  ;;  %v225_v52 = vpop.xlane.xlu1 %224  ;;  %v289_v56 = vmul.f32 %v6004_v36, %v6615_v45 }
 0x186   :  { %v228_v53 = vpop.xlane.xlu0 %227  ;;  %6015 = vrsqrt.f32 %v263_v49  ;;  %v249_v44 = vmul.f32 0.03125, %v225_v52  ;;  %v290_v29 = vmul.f32 %v6006_v51, %v6623_v54 }
 0x187   :  { %v250_v28 = vmul.f32 0.03125, %v228_v53  ;;  %6017 = vrsqrt.f32 %v264_v50  ;;  %4694 = vmatmul.mubr.msk.f32.gmra.mrb[2].mxu0 %vm92_vm0, %v289_v56 }
 0x188   :  { %v6008_v37 = vpop.eup %6007  ;;  %v265_v57 = vadd.f32 1e-05, %v249_v44  ;;  %4696 = vmatprep.mubr.msk.f32.mxu0 %vm92_vm0, %v290_v29 }
 0x189   :  { %v266_v58 = vadd.f32 1e-05, %v250_v28  ;;  %v6010_v59 = vpop.eup %6009  ;;  %v231_v60 = vpop.xlane.xlu1 %230  ;;  %v291_v62 = vmul.f32 %v6008_v37, %v6625_v55 }
 0x18a   :  { %v234_v61 = vpop.xlane.xlu0 %233  ;;  %6019 = vrsqrt.f32 %v265_v57  ;;  %v251_v45 = vmul.f32 0.03125, %v231_v60  ;;  %v292_v2 = vmul.f32 %v6010_v59, %v6634_v0 }
 0x18b   :  { %v252_v63 = vmul.f32 0.03125, %v234_v61  ;;  %6021 = vrsqrt.f32 %v266_v58  ;;  %4697 = vmatmul.mubr.msk.f32.gmra.mrb[4].mxu0 %vm92_vm0, %v291_v62 }
 0x18c   :  { %v6012_v54 = vpop.eup %6011  ;;  %v267_v3 = vadd.f32 1e-05, %v251_v45  ;;  %4699 = vmatprep.mubr.msk.f32.mxu0 %vm92_vm0, %v292_v2 }
 0x18d   :  { %v268_v4 = vadd.f32 1e-05, %v252_v63  ;;  %v6014_v5 = vpop.eup %6013  ;;  %v237_v6 = vpop.xlane.xlu1 %236  ;;  %v293_v7 = vmul.f32 %v6012_v54, %v6637_v1 }
 0x18e   :  { %6023 = vrsqrt.f32 %v267_v3  ;;  %v253_v8 = vmul.f32 0.03125, %v237_v6  ;;  %v294_v55 = vmul.f32 %v6014_v5, %v6646_v10 }
 0x18f   :  { %6025 = vrsqrt.f32 %v268_v4  ;;  %4700 = vmatmul.mubr.msk.f32.gmra.mrb[6].mxu0 %vm92_vm0, %v293_v7 }
 0x190   :  { %v6016_v0 = vpop.eup %6015  ;;  %v269_v9 = vadd.f32 1e-05, %v253_v8  ;;  %4702 = vmatprep.mubr.msk.f32.mxu0 %vm92_vm0, %v294_v55 }
 0x191   :  { %v6018_v12 = vpop.eup %6017  ;;  %v295_v13 = vmul.f32 %v6016_v0, %v6649_v11 }
 0x192   :  { %6027 = vrsqrt.f32 %v269_v9  ;;  %v296_v14 = vmul.f32 %v6018_v12, %v6658_v23 }
 0x193   :  { %4703 = vmatmul.mubr.msk.f32.gmra.mrb[8].mxu0 %vm92_vm0, %v295_v13 }
 0x194   :  { %v6020_v1 = vpop.eup %6019  ;;  %4705 = vmatprep.mubr.msk.f32.mxu0 %vm92_vm0, %v296_v14 }
 0x195   :  { %v6022_v15 = vpop.eup %6021  ;;  %v297_v10 = vmul.f32 %v6020_v1, %v6661_v17  ;;  %v4129_v17 = vld [vmem:[%s8079_s3] ss:$0 sm:$0xff] }
 0x196   :  { %v298_v18 = vmul.f32 %v6022_v15, %v6670_v35 }
 0x197   :  { %4706 = vmatmul.mubr.msk.f32.gmra.mrb[10].mxu0 %vm92_vm0, %v297_v10 }
 0x198   :  { %v6024_v19 = vpop.eup %6023  ;;  %4708 = vmatprep.mubr.msk.f32.mxu0 %vm92_vm0, %v298_v18 }
 0x199   :  { %v6026_v22 = vpop.eup %6025  ;;  %v299_v11 = vmul.f32 %v6024_v19, %v6673_v21 }
 0x19a   :  { %v300_v23 = vmul.f32 %v6026_v22, %v6682_v47 }
 0x19b   :  { %4709 = vmatmul.mubr.msk.f32.gmra.mrb[12].mxu0 %vm92_vm0, %v299_v11 }
 0x19c   :  { %v6028_v16 = vpop.eup %6027  ;;  %4711 = vmatprep.mubr.msk.f32.mxu0 %vm92_vm0, %v300_v23 }
 0x19d   :  { %v301_v26 = vmul.f32 %v6028_v16, %v6685_v25 }
 0x19f   :  { %4712 = vmatmul.mubr.msk.f32.gmra.mrb[14].mxu0 %vm92_vm0, %v301_v26 }
 0x256   :  { %v4692_v35 = vpop.f32.mrb[0].mxu0 }
 0x257   :  { %v6730_v27 = vadd.f32 %v4692_v35, %v4129_v17  ;;  %v427_v30 = vpop.f32.mrb[1].mxu0 }
 0x258   :  { %v6732_v21 = vadd.f32 %v4129_v17, %v427_v30 }
 0x25a   :  { %v4695_v47 = vpop.f32.mrb[2].mxu0  ;;  %4746 = vmatprep.mubr.msk.f32.mxu1 %vm570_vm1, %v6732_v21  ;;  %v6738_v25 = vpack.i.bf16 %v6730_v27, %v6732_v21 }
 0x25b   :  { %v6740_v31 = vadd.f32 %v4695_v47, %v4129_v17  ;;  %v437_v32 = vpop.f32.mrb[3].mxu0 }
 0x25c   :  { %v6742_v33 = vadd.f32 %v4129_v17, %v437_v32  ;;  %5678 = vrot.lane.b32.xlu0 %v6738_v25, %s6442_s17 }
 0x25e   :  { %v4698_v34 = vpop.f32.mrb[4].mxu0  ;;  %v6748_v20 = vpack.i.bf16 %v6740_v31, %v6742_v33 }
 0x25f   :  { %v6750_v38 = vadd.f32 %v4698_v34, %v4129_v17  ;;  %v447_v39 = vpop.f32.mrb[5].mxu0 }
 0x260   :  { %v6752_v40 = vadd.f32 %v4129_v17, %v447_v39  ;;  %5683 = vrot.lane.b32.xlu1 %v6748_v20, %s6442_s17 }
 0x262   :  { %v4701_v41 = vpop.f32.mrb[6].mxu0  ;;  %v6758_v42 = vpack.i.bf16 %v6750_v38, %v6752_v40 }
 0x263   :  { %v6760_v43 = vadd.f32 %v4701_v41, %v4129_v17  ;;  %v457_v46 = vpop.f32.mrb[7].mxu0 }
 0x264   :  { %v6762_v24 = vadd.f32 %v4129_v17, %v457_v46  ;;  %5688 = vrot.lane.b32.xlu1 %v6758_v42, %s6442_s17 }
 0x266   :  { %v4704_v48 = vpop.f32.mrb[8].mxu0  ;;  %v6768_v36 = vpack.i.bf16 %v6760_v43, %v6762_v24 }
 0x267   :  { %v6770_v49 = vadd.f32 %v4704_v48, %v4129_v17  ;;  %v467_v50 = vpop.f32.mrb[9].mxu0 }
 0x268   :  { %v6772_v51 = vadd.f32 %v4129_v17, %v467_v50  ;;  %5693 = vrot.lane.b32.xlu1 %v6768_v36, %s6442_s17 }
 0x26a   :  { %v4707_v52 = vpop.f32.mrb[10].mxu0  ;;  %v6778_v53 = vpack.i.bf16 %v6770_v49, %v6772_v51 }
 0x26b   :  { %v6780_v56 = vadd.f32 %v4707_v52, %v4129_v17  ;;  %v477_v44 = vpop.f32.mrb[11].mxu0 }
 0x26c   :  { %v6782_v28 = vadd.f32 %v4129_v17, %v477_v44  ;;  %5698 = vrot.lane.b32.xlu0 %v6778_v53, %s6442_s17 }
 0x26e   :  { %v4710_v29 = vpop.f32.mrb[12].mxu0  ;;  %v6788_v37 = vpack.i.bf16 %v6780_v56, %v6782_v28 }
 0x26f   :  { %v6790_v57 = vadd.f32 %v4710_v29, %v4129_v17  ;;  %v487_v58 = vpop.f32.mrb[13].mxu0 }
 0x270   :  { %v6792_v59 = vadd.f32 %v4129_v17, %v487_v58  ;;  %5703 = vrot.lane.b32.xlu1 %v6788_v37, %s6442_s17 }
 0x272   :  { %8104 = vst [vmem:[#allocation15_spill] sm:$0xff] %v6792_v59  ;;  %v4713_v60 = vpop.f32.mrb[14].mxu0  ;;  %v6798_v61 = vpack.i.bf16 %v6790_v57, %v6792_v59 }
 0x273   :  { %v6800_v62 = vadd.f32 %v4713_v60, %v4129_v17  ;;  %v497_v45 = vpop.f32.mrb[15].mxu0 }
 0x274   :  { %8105 = vst [vmem:[#allocation16_spill] sm:$0xff] %v6798_v61  ;;  %v6802_v63 = vadd.f32 %v4129_v17, %v497_v45  ;;  %5708 = vrot.lane.b32.xlu0 %v6798_v61, %s6442_s17 }
 0x276   :  { %8106 = vst [vmem:[#allocation17_spill] sm:$0xff] %v6802_v63  ;;  %v6808_v2 = vpack.i.bf16 %v6800_v62, %v6802_v63 }
 0x278   :  { %8107 = vst [vmem:[#allocation18_spill] sm:$0xff] %v6808_v2  ;;  %5718 = vrot.lane.b32.xlu0 %v6738_v25, %s6443_s18  ;;  %5713 = vrot.lane.b32.xlu1 %v6808_v2, %s6442_s17 }
 0x27c   :  { %5728 = vrot.lane.b32.xlu0 %v6758_v42, %s6443_s18  ;;  %5723 = vrot.lane.b32.xlu1 %v6748_v20, %s6443_s18 }
 0x280   :  { %5748 = vrot.lane.b32.xlu0 %v6798_v61, %s6443_s18  ;;  %5733 = vrot.lane.b32.xlu1 %v6768_v36, %s6443_s18 }
 0x284   :  { %5753 = vrot.lane.b32.xlu0 %v6738_v25, %s6444_s19  ;;  %5738 = vrot.lane.b32.xlu1 %v6778_v53, %s6443_s18 }
 0x288   :  { %5743 = vrot.lane.b32.xlu1 %v6788_v37, %s6443_s18 }
 0x28c   :  { %5758 = vrot.lane.b32.xlu1 %v6808_v2, %s6443_s18 }
 0x2ce   :  { %v5679_v54 = vpop.permute.xlu0 %5678 }
 0x2cf   :  { %v5681_v3 = vunpack.i.h.bf16 %v5679_v54  ;;  %v5680_v4 = vunpack.i.l.bf16 %v5679_v54 }
 0x2d1   :  { %v5274_v6 = vpack.c.bf16 %v5681_v3, %v5680_v4 }
 0x2d2   :  { %v5684_v7 = vpop.permute.xlu1 %5683 }
 0x2d3   :  { %v5686_v8 = vunpack.i.h.bf16 %v5684_v7  ;;  %v5685_v55 = vunpack.i.l.bf16 %v5684_v7  ;;  %5276 = vmatprep.subr.msk.bf16.mxu1 %vm6824_vm2, %v5274_v6 }
 0x2d4   :  { %5279 = vmatpush3.bf16.xpose.msk.msra.mxu1 %vm6824_vm2, %v5274_v6 }
 0x2d5   :  { %v5280_v0 = vpack.c.bf16 %v5686_v8, %v5685_v55 }
 0x2d6   :  { %v5689_v9 = vpop.permute.xlu1 %5688 }
 0x2d7   :  { %v5691_v12 = vunpack.i.h.bf16 %v5689_v9  ;;  %v5690_v13 = vunpack.i.l.bf16 %v5689_v9  ;;  %5282 = vmatprep.subr.msk.bf16.mxu1 %vm6824_vm2, %v5280_v0 }
 0x2d9   :  { %v5286_v14 = vpack.c.bf16 %v5691_v12, %v5690_v13 }
 0x2da   :  { %v5694_v1 = vpop.permute.xlu1 %5693 }
 0x2db   :  { %v5696_v15 = vunpack.i.h.bf16 %v5694_v1  ;;  %v5695_v10 = vunpack.i.l.bf16 %v5694_v1 }
 0x2dc   :  { %5285 = vmatpush3.bf16.xpose.msk.msra.mxu1 %vm6824_vm2, %v5280_v0 }
 0x2dd   :  { %5288 = vmatprep.subr.msk.bf16.mxu1 %vm6824_vm2, %v5286_v14  ;;  %v5292_v19 = vpack.c.bf16 %v5696_v15, %v5695_v10 }
 0x2de   :  { %v5699_v18 = vpop.permute.xlu0 %5698 }
 0x2df   :  { %v5701_v23 = vunpack.i.h.bf16 %v5699_v18  ;;  %v5700_v16 = vunpack.i.l.bf16 %v5699_v18 }
 0x2e1   :  { %v5298_v35 = vpack.c.bf16 %v5701_v23, %v5700_v16 }
 0x2e2   :  { %v5704_v22 = vpop.permute.xlu1 %5703 }
 0x2e3   :  { %v5706_v34 = vunpack.i.h.bf16 %v5704_v22  ;;  %v5705_v39 = vunpack.i.l.bf16 %v5704_v22 }
 0x2e4   :  { %5291 = vmatpush3.bf16.xpose.msk.msra.mxu1 %vm6824_vm2, %v5286_v14 }
 0x2e5   :  { %5294 = vmatprep.subr.msk.bf16.mxu1 %vm6824_vm2, %v5292_v19  ;;  %v5304_v60 = vpack.c.bf16 %v5706_v34, %v5705_v39 }
 0x2e6   :  { %v5709_v11 = vpop.permute.xlu0 %5708 }
 0x2e7   :  { %v5711_v4 = vunpack.i.h.bf16 %v5709_v11  ;;  %v5710_v7 = vunpack.i.l.bf16 %v5709_v11 }
 0x2e9   :  { %v5310_v12 = vpack.c.bf16 %v5711_v4, %v5710_v7 }
 0x2ea   :  { %v5714_v26 = vpop.permute.xlu1 %5713  ;;  %v5719_v17 = vpop.permute.xlu0 %5718 }
 0x2eb   :  { %v5721_v30 = vunpack.i.h.bf16 %v5719_v17  ;;  %v5720_v47 = vunpack.i.l.bf16 %v5719_v17  ;;  %v5716_v10 = vunpack.i.h.bf16 %v5714_v26  ;;  %v5715_v18 = vunpack.i.l.bf16 %v5714_v26 }
 0x2ec   :  { %5297 = vmatpush3.bf16.xpose.msk.msra.mxu1 %vm6824_vm2, %v5292_v19 }
 0x2ed   :  { %5300 = vmatprep.subr.msk.bf16.mxu1 %vm6824_vm2, %v5298_v35  ;;  %v5322_v32 = vpack.c.bf16 %v5721_v30, %v5720_v47  ;;  %v5316_v16 = vpack.c.bf16 %v5716_v10, %v5715_v18 }
 0x2ee   :  { %v5724_v41 = vpop.permute.xlu1 %5723  ;;  %v5729_v46 = vpop.permute.xlu0 %5728 }
 0x2ef   :  { %v5726_v48 = vunpack.i.h.bf16 %v5724_v41  ;;  %v5725_v50 = vunpack.i.l.bf16 %v5724_v41  ;;  %v5731_v52 = vunpack.i.h.bf16 %v5729_v46  ;;  %v5730_v44 = vunpack.i.l.bf16 %v5729_v46  ;;  %5323 = vmatprep.subr.bf16.mxu0 %v5322_v32  ;;  %v507_v46 = vld [vmem:[#allocation8 + $0x8] sm:$0xff] }
 0x2f0   :  { %5325 = vmatpush3.bf16.msra.mxu0 %v5322_v32 }
 0x2f1   :  { %v5326_v29 = vpack.c.bf16 %v5726_v48, %v5725_v50  ;;  %v5330_v3 = vpack.c.bf16 %v5731_v52, %v5730_v44  ;;  %v506_v52 = vld [vmem:[#allocation8] sm:$0xff] }
 0x2f2   :  { %v5734_v58 = vpop.permute.xlu1 %5733  ;;  %v5749_v15 = vpop.permute.xlu0 %5748 }
 0x2f3   :  { %v5736_v45 = vunpack.i.h.bf16 %v5734_v58  ;;  %v5735_v54 = vunpack.i.l.bf16 %v5734_v58  ;;  %5327 = vmatprep.subr.bf16.mxu0 %v5326_v29  ;;  %v5751_v19 = vunpack.i.h.bf16 %v5749_v15  ;;  %v5750_v22 = vunpack.i.l.bf16 %v5749_v15 }
 0x2f4   :  { %5303 = vmatpush3.bf16.xpose.msk.msra.mxu1 %vm6824_vm2, %v5298_v35  ;;  %5329 = vmatpush3.bf16.msra.mxu0 %v5326_v29 }
 0x2f5   :  { %5306 = vmatprep.subr.msk.bf16.mxu1 %vm6824_vm2, %v5304_v60  ;;  %5331 = vmatprep.subr.bf16.mxu0 %v5330_v3  ;;  %v5334_v0 = vpack.c.bf16 %v5736_v45, %v5735_v54  ;;  %v5346_v30 = vpack.c.bf16 %v5751_v19, %v5750_v22  ;;  %v517_v19 = vld [vmem:[#allocation8 + $0x58] sm:$0xff] }
 0x2f6   :  { %v5739_v6 = vpop.permute.xlu1 %5738  ;;  %v5754_v47 = vpop.permute.xlu0 %5753 }
 0x2f7   :  { %v5741_v8 = vunpack.i.h.bf16 %v5739_v6  ;;  %v5740_v55 = vunpack.i.l.bf16 %v5739_v6  ;;  %v5756_v26 = vunpack.i.h.bf16 %v5754_v47  ;;  %v5755_v32 = vunpack.i.l.bf16 %v5754_v47 }
 0x2f8   :  { %5333 = vmatpush3.bf16.msra.mxu0 %v5330_v3  ;;  %v511_v3 = vld [vmem:[#allocation8 + $0x28] sm:$0xff] }
 0x2f9   :  { %5335 = vmatprep.subr.bf16.mxu0 %v5334_v0  ;;  %v5338_v1 = vpack.c.bf16 %v5741_v8, %v5740_v55  ;;  %v6858_v39 = vpack.c.bf16 %v5756_v26, %v5755_v32  ;;  %v513_v55 = vld [vmem:[#allocation8 + $0x38] sm:$0xff] }
 0x2fa   :  { %v5744_v9 = vpop.permute.xlu1 %5743  ;;  %v521_v32 = vld [vmem:[#allocation8 + $0x78] sm:$0xff] }
 0x2fb   :  { %v5746_v13 = vunpack.i.h.bf16 %v5744_v9  ;;  %v5745_v14 = vunpack.i.l.bf16 %v5744_v9 }
 0x2fc   :  { %5309 = vmatpush3.bf16.xpose.msk.msra.mxu1 %vm6824_vm2, %v5304_v60  ;;  %5337 = vmatpush3.bf16.msra.mxu0 %v5334_v0 }
 0x2fd   :  { %5312 = vmatprep.subr.msk.bf16.mxu1 %vm6824_vm2, %v5310_v12  ;;  %5339 = vmatprep.subr.bf16.mxu0 %v5338_v1  ;;  %v5342_v11 = vpack.c.bf16 %v5746_v13, %v5745_v14  ;;  %v515_v14 = vld [vmem:[#allocation8 + $0x48] sm:$0xff] }
 0x2fe   :  { %v5759_v23 = vpop.permute.xlu1 %5758 }
 0x2ff   :  { %v5761_v17 = vunpack.i.h.bf16 %v5759_v23  ;;  %v5760_v35 = vunpack.i.l.bf16 %v5759_v23 }
 0x300   :  { %5341 = vmatpush3.bf16.msra.mxu0 %v5338_v1 }
 0x301   :  { %5343 = vmatprep.subr.bf16.mxu0 %v5342_v11  ;;  %v5350_v34 = vpack.c.bf16 %v5761_v17, %v5760_v35  ;;  %v519_v17 = vld [vmem:[#allocation8 + $0x68] sm:$0xff] }
 0x304   :  { %5315 = vmatpush3.bf16.xpose.msk.msra.mxu1 %vm6824_vm2, %v5310_v12  ;;  %5345 = vmatpush3.bf16.msra.mxu0 %v5342_v11 }
 0x305   :  { %5318 = vmatprep.subr.msk.bf16.mxu1 %vm6824_vm2, %v5316_v16  ;;  %5347 = vmatprep.subr.bf16.mxu0 %v5346_v30 }
 0x308   :  { %5349 = vmatpush3.bf16.msra.mxu0 %v5346_v30 }
 0x309   :  { %5351 = vmatprep.subr.bf16.mxu0 %v5350_v34 }
 0x30c   :  { %5321 = vmatpush3.bf16.xpose.msk.msra.mxu1 %vm6824_vm2, %v5316_v16  ;;  %5353 = vmatpush3.bf16.msra.mxu0 %v5350_v34 }
 0x30d   :  { %5356 = vmatprep.subr.msk.bf16.mxu0 %vm6824_vm2, %v6858_v39 }
 0x313   :  { %4747 = vmatmul.mubr.msk.f32.vlgmr.msra.gmra.mrb[0].mxu1 %vm570_vm1, %v6730_v27 }
 0x314   :  { %4749 = vmatprep.mubr.msk.f32.mxu1 %vm570_vm1, %v6742_v33 }
 0x317   :  { %4750 = vmatmul.mubr.msk.f32.gmra.mrb[2].mxu1 %vm570_vm1, %v6740_v31 }
 0x318   :  { %4752 = vmatprep.mubr.msk.f32.mxu1 %vm570_vm1, %v6752_v40 }
 0x31b   :  { %4753 = vmatmul.mubr.msk.f32.gmra.mrb[4].mxu1 %vm570_vm1, %v6750_v38 }
 0x31c   :  { %4755 = vmatprep.mubr.msk.f32.mxu1 %vm570_vm1, %v6762_v24 }
 0x31f   :  { %4756 = vmatmul.mubr.msk.f32.gmra.mrb[6].mxu1 %vm570_vm1, %v6760_v43 }
 0x320   :  { %4758 = vmatprep.mubr.msk.f32.mxu1 %vm570_vm1, %v6772_v51 }
 0x323   :  { %4759 = vmatmul.mubr.msk.f32.gmra.mrb[8].mxu1 %vm570_vm1, %v6770_v49 }
 0x324   :  { %4761 = vmatprep.mubr.msk.f32.mxu1 %vm570_vm1, %v6782_v28 }
 0x327   :  { %4762 = vmatmul.mubr.msk.f32.gmra.mrb[10].mxu1 %vm570_vm1, %v6780_v56 }
 0x328   :  { %4764 = vmatprep.mubr.msk.f32.mxu1 %vm570_vm1, %v6792_v59 }
 0x32b   :  { %4765 = vmatmul.mubr.msk.f32.gmra.mrb[12].mxu1 %vm570_vm1, %v6790_v57 }
 0x32c   :  { %4767 = vmatprep.mubr.msk.f32.mxu1 %vm570_vm1, %v6802_v63 }
 0x32f   :  { %4768 = vmatmul.mubr.msk.f32.gmra.mrb[14].mxu1 %vm570_vm1, %v6800_v62 }
 0x3e6   :  { %v4748_v41 = vpop.f32.mrb[0].mxu1 }
 0x3e7   :  { %v781_v48 = vmul.f32 0.35355338, %v4748_v41  ;;  %v701_v50 = vpop.f32.mrb[1].mxu1 }
 0x3e8   :  { %v780_v44 = vmul.f32 0.35355338, %v701_v50  ;;  %v509_v50 = vld [vmem:[#allocation8 + $0x18] sm:$0xff] }
 0x3e9   :  { %v6895_v29 = vadd.f32 %v781_v48, %v507_v46 }
 0x3ea   :  { %v4751_v58 = vpop.f32.mrb[2].mxu1  ;;  %v6897_v60 = vadd.f32 %v780_v44, %v506_v52 }
 0x3eb   :  { %814 = vmax.xlane.f32.xlu1 %v6895_v29  ;;  %v711_v45 = vpop.f32.mrb[3].mxu1  ;;  %v783_v48 = vmul.f32 0.35355338, %v4751_v58 }
 0x3ec   :  { %812 = vmax.xlane.f32.xlu0 %v6897_v60  ;;  %v782_v52 = vmul.f32 0.35355338, %v711_v45  ;;  %v516_v45 = vld [vmem:[#allocation8 + $0x50] sm:$0xff] }
 0x3ed   :  { %v799_v44 = vadd.f32 %v783_v48, %v509_v50 }
 0x3ee   :  { %v4754_v54 = vpop.f32.mrb[4].mxu1 }
 0x3ef   :  { %v785_v4 = vmul.f32 0.35355338, %v4754_v54  ;;  %v721_v6 = vpop.f32.mrb[5].mxu1  ;;  %v508_v54 = vld [vmem:[#allocation8 + $0x10] sm:$0xff] }
 0x3f1   :  { %v6901_v7 = vadd.f32 %v785_v4, %v511_v3  ;;  %v784_v3 = vmul.f32 0.35355338, %v721_v6  ;;  %v798_v4 = vadd.f32 %v782_v52, %v508_v54 }
 0x3f2   :  { %v4757_v8 = vpop.f32.mrb[6].mxu1 }
 0x3f3   :  { %v787_v0 = vmul.f32 0.35355338, %v4757_v8  ;;  %822 = vmax.xlane.f32.xlu1 %v6901_v7  ;;  %v731_v9 = vpop.f32.mrb[7].mxu1  ;;  %v510_v8 = vld [vmem:[#allocation8 + $0x20] sm:$0xff] }
 0x3f5   :  { %v6904_v12 = vadd.f32 %v787_v0, %v513_v55  ;;  %v786_v55 = vmul.f32 0.35355338, %v731_v9  ;;  %v800_v0 = vadd.f32 %v784_v3, %v510_v8 }
 0x3f6   :  { %v4760_v13 = vpop.f32.mrb[8].mxu1 }
 0x3f7   :  { %v789_v1 = vmul.f32 0.35355338, %v4760_v13  ;;  %826 = vmax.xlane.f32.xlu1 %v6904_v12  ;;  %v741_v15 = vpop.f32.mrb[9].mxu1  ;;  %v512_v13 = vld [vmem:[#allocation8 + $0x30] sm:$0xff] }
 0x3f9   :  { %v6907_v10 = vadd.f32 %v789_v1, %v515_v14  ;;  %v788_v14 = vmul.f32 0.35355338, %v741_v15  ;;  %v6923_v1 = vadd.f32 %v786_v55, %v512_v13  ;;  %v520_v15 = vld [vmem:[#allocation8 + $0x70] sm:$0xff] }
 0x3fa   :  { %v4763_v18 = vpop.f32.mrb[10].mxu1 }
 0x3fb   :  { %v791_v22 = vmul.f32 0.35355338, %v4763_v18  ;;  %830 = vmax.xlane.f32.xlu1 %v6907_v10  ;;  %v751_v11 = vpop.f32.mrb[11].mxu1  ;;  %v514_v18 = vld [vmem:[#allocation8 + $0x40] sm:$0xff] }
 0x3fc   :  { %v790_v58 = vmul.f32 0.35355338, %v751_v11 }
 0x3fd   :  { %v6910_v23 = vadd.f32 %v791_v22, %v517_v19  ;;  %v6926_v19 = vadd.f32 %v788_v14, %v514_v18 }
 0x3fe   :  { %v4766_v16 = vpop.f32.mrb[12].mxu1  ;;  %v6929_v22 = vadd.f32 %v790_v58, %v516_v45 }
 0x3ff   :  { %v793_v35 = vmul.f32 0.35355338, %v4766_v16  ;;  %834 = vmax.xlane.f32.xlu1 %v6910_v23  ;;  %v761_v30 = vpop.f32.mrb[13].mxu1  ;;  %v518_v16 = vld [vmem:[#allocation8 + $0x60] sm:$0xff] }
 0x400   :  { %v792_v6 = vmul.f32 0.35355338, %v761_v30 }
 0x401   :  { %v6913_v47 = vadd.f32 %v793_v35, %v519_v17 }
 0x402   :  { %5763 = vrot.lane.b32.xlu0 %v6748_v20, %s6444_s19  ;;  %v4769_v26 = vpop.f32.mrb[14].mxu1  ;;  %v6932_v17 = vadd.f32 %v792_v6, %v518_v16 }
 0x403   :  { %v795_v34 = vmul.f32 0.35355338, %v4769_v26  ;;  %838 = vmax.xlane.f32.xlu1 %v6913_v47  ;;  %v771_v41 = vpop.f32.mrb[15].mxu1 }
 0x404   :  { %v794_v9 = vmul.f32 0.35355338, %v771_v41 }
 0x405   :  { %v6918_v46 = vadd.f32 %v795_v34, %v521_v32 }
 0x406   :  { %v6935_v35 = vadd.f32 %v794_v9, %v520_v15 }
 0x407   :  { %842 = vmax.xlane.f32.xlu1 %v6918_v46 }
 0x418   :  { %5768 = vrot.lane.b32.xlu1 %v6758_v42, %s6444_s19 }
 0x421   :  { %818 = vmax.xlane.f32.xlu0 %v799_v44 }
 0x425   :  { %816 = vmax.xlane.f32.xlu0 %v798_v4 }
 0x429   :  { %820 = vmax.xlane.f32.xlu0 %v800_v0 }
 0x42d   :  { %824 = vmax.xlane.f32.xlu0 %v6923_v1 }
 0x431   :  { %828 = vmax.xlane.f32.xlu0 %v6926_v19 }
 0x435   :  { %832 = vmax.xlane.f32.xlu0 %v6929_v22 }
 0x439   :  { %836 = vmax.xlane.f32.xlu0 %v6932_v17 }
 0x43d   :  { %840 = vmax.xlane.f32.xlu0 %v6935_v35 }
 0x478   :  { %v815_v11 = vpop.xlane.xlu1 %814 }
 0x479   :  { %v845_v26 = vsub.f32 %v6895_v29, %v815_v11  ;;  %v813_v32 = vpop.xlane.xlu0 %812 }
 0x47a   :  { %v844_v30 = vsub.f32 %v6897_v60, %v813_v32 }
 0x47b   :  { %v862_v34 = vmul.f32 1.442695, %v845_v26 }
 0x47c   :  { %v860_v48 = vmul.f32 1.442695, %v844_v30 }
 0x47d   :  { %6029 = vpow2.f32 %v862_v34  ;;  %v6948_v29 = vpop.permute.xlu0 %5763 }
 0x47e   :  { %6031 = vpow2.f32 %v860_v48 }
 0x480   :  { %v823_v52 = vpop.xlane.xlu1 %822 }
 0x481   :  { %v849_v13 = vsub.f32 %v6901_v7, %v823_v52 }
 0x483   :  { %v870_v45 = vmul.f32 1.442695, %v849_v13 }
 0x484   :  { %v827_v54 = vpop.xlane.xlu1 %826 }
 0x485   :  { %v851_v6 = vsub.f32 %v6904_v12, %v827_v54 }
 0x487   :  { %v6940_v41 = vpop.eup %6029 }
 0x488   :  { %v6942_v50 = vpop.eup %6031  ;;  %894 = vadd.xlane.f32.xlu0 %v6940_v41  ;;  %v831_v8 = vpop.xlane.xlu1 %830 }
 0x489   :  { %892 = vadd.xlane.f32.xlu1 %v6942_v50  ;;  %v853_v9 = vsub.f32 %v6907_v10, %v831_v8 }
 0x48b   :  { %v878_v7 = vmul.f32 1.442695, %v853_v9 }
 0x48c   :  { %v835_v15 = vpop.xlane.xlu1 %834 }
 0x48d   :  { %v855_v32 = vsub.f32 %v6910_v23, %v835_v15 }
 0x48f   :  { %v882_v12 = vmul.f32 1.442695, %v855_v32 }
 0x490   :  { %v839_v23 = vpop.xlane.xlu1 %838 }
 0x49e   :  { %5773 = vrot.lane.b32.xlu0 %v6768_v36, %s6444_s19 }
 0x4ae   :  { %v819_v60 = vpop.xlane.xlu0 %818 }
 0x4af   :  { %v847_v3 = vsub.f32 %v799_v44, %v819_v60  ;;  %v874_v44 = vmul.f32 1.442695, %v851_v6 }
 0x4b1   :  { %v866_v55 = vmul.f32 1.442695, %v847_v3 }
 0x4b2   :  { %v817_v14 = vpop.xlane.xlu0 %816 }
 0x4b3   :  { %6033 = vpow2.f32 %v866_v55  ;;  %v846_v18 = vsub.f32 %v798_v4, %v817_v14 }
 0x4b5   :  { %v864_v58 = vmul.f32 1.442695, %v846_v18 }
 0x4b6   :  { %v821_v16 = vpop.xlane.xlu0 %820 }
 0x4b7   :  { %6035 = vpow2.f32 %v864_v58  ;;  %v848_v11 = vsub.f32 %v800_v0, %v821_v16  ;;  %v843_v58 = vpop.xlane.xlu1 %842 }
 0x4b8   :  { %6037 = vpow2.f32 %v870_v45  ;;  %v859_v16 = vsub.f32 %v6918_v46, %v843_v58 }
 0x4b9   :  { %v868_v26 = vmul.f32 1.442695, %v848_v11 }
 0x4ba   :  { %v825_v30 = vpop.xlane.xlu0 %824 }
 0x4bb   :  { %6039 = vpow2.f32 %v868_v26  ;;  %v850_v4 = vsub.f32 %v6923_v1, %v825_v30 }
 0x4bc   :  { %6041 = vpow2.f32 %v874_v44 }
 0x4bd   :  { %v6955_v34 = vpop.eup %6033  ;;  %6043 = vpow2.f32 %v878_v7  ;;  %v872_v10 = vmul.f32 1.442695, %v850_v4  ;;  %v5769_v4 = vpop.permute.xlu1 %5768 }
 0x4be   :  { %v829_v48 = vpop.xlane.xlu0 %828  ;;  %898 = vadd.xlane.f32.xlu0 %v6955_v34  ;;  %6045 = vpow2.f32 %v882_v12 }
 0x4bf   :  { %v852_v0 = vsub.f32 %v6926_v19, %v829_v48  ;;  %6047 = vpow2.f32 %v872_v10  ;;  %v857_v19 = vsub.f32 %v6913_v47, %v839_v23 }
 0x4c1   :  { %v6959_v52 = vpop.eup %6035  ;;  %v876_v1 = vmul.f32 1.442695, %v852_v0  ;;  %v886_v6 = vmul.f32 1.442695, %v857_v19  ;;  %v5766_v19 = vunpack.i.h.bf16 %v6948_v29 }
 0x4c2   :  { %v833_v54 = vpop.xlane.xlu0 %832  ;;  %896 = vadd.xlane.f32.xlu1 %v6959_v52  ;;  %v6963_v3 = vpop.eup %6037 }
 0x4c3   :  { %v854_v60 = vsub.f32 %v6929_v22, %v833_v54  ;;  %6049 = vpow2.f32 %v876_v1 }
 0x4c5   :  { %v6965_v8 = vpop.eup %6039  ;;  %v880_v55 = vmul.f32 1.442695, %v854_v60 }
 0x4c6   :  { %v837_v13 = vpop.xlane.xlu0 %836  ;;  %902 = vadd.xlane.f32.xlu1 %v6963_v3  ;;  %900 = vadd.xlane.f32.xlu0 %v6965_v8  ;;  %v6971_v18 = vpop.eup %6041 }
 0x4c7   :  { %v856_v14 = vsub.f32 %v6932_v17, %v837_v13  ;;  %v6973_v45 = vpop.eup %6043  ;;  %6051 = vpow2.f32 %v880_v55  ;;  %v890_v17 = vmul.f32 1.442695, %v859_v16 }
 0x4c8   :  { %v6978_v9 = vpop.eup %6045 }
 0x4c9   :  { %v884_v22 = vmul.f32 1.442695, %v856_v14  ;;  %v6980_v15 = vpop.eup %6047  ;;  %v5765_v14 = vunpack.i.l.bf16 %v6948_v29  ;;  %v5771_v29 = vunpack.i.h.bf16 %v5769_v4 }
 0x4ca   :  { %906 = vadd.xlane.f32.xlu1 %v6971_v18  ;;  %910 = vadd.xlane.f32.xlu0 %v6973_v45  ;;  %v841_v47 = vpop.xlane.xlu0 %840 }
 0x4cb   :  { %6053 = vpow2.f32 %v884_v22  ;;  %v858_v11 = vsub.f32 %v6935_v35, %v841_v47 }
 0x4cc   :  { %6055 = vpow2.f32 %v886_v6  ;;  %v5360_v6 = vpack.c.bf16 %v5766_v19, %v5765_v14 }
 0x4cd   :  { %v6985_v26 = vpop.eup %6049  ;;  %6057 = vpow2.f32 %v890_v17  ;;  %v888_v46 = vmul.f32 1.442695, %v858_v11 }
 0x4ce   :  { %904 = vadd.xlane.f32.xlu1 %v6980_v15  ;;  %914 = vadd.xlane.f32.xlu0 %v6978_v9 }
 0x4cf   :  { %6059 = vpow2.f32 %v888_v46 }
 0x4d1   :  { %v6988_v44 = vpop.eup %6051 }
 0x4d2   :  { %908 = vadd.xlane.f32.xlu1 %v6985_v26 }
 0x4d5   :  { %v6990_v32 = vpop.eup %6053 }
 0x4d6   :  { %912 = vadd.xlane.f32.xlu1 %v6988_v44  ;;  %916 = vadd.xlane.f32.xlu0 %v6990_v32  ;;  %v6994_v30 = vpop.eup %6055 }
 0x4d7   :  { %v6997_v35 = vpop.eup %6057 }
 0x4d9   :  { %v7000_v7 = vpop.eup %6059 }
 0x4da   :  { %918 = vadd.xlane.f32.xlu1 %v6994_v30 }
 0x4de   :  { %922 = vadd.xlane.f32.xlu1 %v6997_v35 }
 0x4e2   :  { %920 = vadd.xlane.f32.xlu1 %v7000_v7 }
 0x4ec   :  { %5783 = vrot.lane.b32.xlu0 %v6788_v37, %s6444_s19 }
 0x4f0   :  { %5788 = vrot.lane.b32.xlu0 %v6798_v61, %s6444_s19 }
 0x4f3   :  { %5778 = vrot.lane.b32.xlu1 %v6778_v53, %s6444_s19 }
 0x4f4   :  { %5793 = vrot.lane.b32.xlu0 %v6808_v2, %s6444_s19 }
 0x4f7   :  { %1200 = vrot.lane.b32.xlu1 %v6730_v27, %s6445_s20 }
 0x4f8   :  { %1198 = vrot.lane.b32.xlu0 %v6732_v21, %s6445_s20 }
 0x4fb   :  { %1204 = vrot.lane.b32.xlu1 %v6740_v31, %s6445_s20 }
 0x4fc   :  { %1202 = vrot.lane.b32.xlu0 %v6742_v33, %s6445_s20 }
 0x4ff   :  { %1208 = vrot.lane.b32.xlu1 %v6750_v38, %s6445_s20 }
 0x500   :  { %1206 = vrot.lane.b32.xlu0 %v6752_v40, %s6445_s20 }
 0x503   :  { %1212 = vrot.lane.b32.xlu1 %v6760_v43, %s6445_s20 }
 0x504   :  { %1210 = vrot.lane.b32.xlu0 %v6762_v24, %s6445_s20 }
 0x507   :  { %1216 = vrot.lane.b32.xlu1 %v6770_v49, %s6445_s20 }
 0x508   :  { %1214 = vrot.lane.b32.xlu0 %v6772_v51, %s6445_s20 }
 0x50b   :  { %1220 = vrot.lane.b32.xlu1 %v6780_v56, %s6445_s20 }
 0x50c   :  { %1218 = vrot.lane.b32.xlu0 %v6782_v28, %s6445_s20 }
 0x50f   :  { %1224 = vrot.lane.b32.xlu1 %v6790_v57, %s6445_s20 }
 0x510   :  { %1222 = vrot.lane.b32.xlu0 %v6792_v59, %s6445_s20 }
 0x513   :  { %1228 = vrot.lane.b32.xlu1 %v6800_v62, %s6445_s20 }
 0x514   :  { %1226 = vrot.lane.b32.xlu0 %v6802_v63, %s6445_s20 }
 0x515   :  { %v895_v12 = vpop.xlane.xlu0 %894 }
 0x516   :  { %6061 = vrcp.f32 %v895_v12  ;;  %v893_v48 = vpop.xlane.xlu1 %892 }
 0x517   :  { %6063 = vrcp.f32 %v893_v48  ;;  %5803 = vrot.lane.b32.xlu1 %v6748_v20, %s6446_s22 }
 0x518   :  { %5798 = vrot.lane.b32.xlu0 %v6738_v25, %s6446_s22 }
 0x519   :  { %v5774_v16 = vpop.permute.xlu0 %5773 }
 0x51a   :  { %v5775_v47 = vunpack.i.l.bf16 %v5774_v16 }
 0x51b   :  { %5813 = vrot.lane.b32.xlu1 %v6768_v36, %s6446_s22 }
 0x51c   :  { %5808 = vrot.lane.b32.xlu0 %v6758_v42, %s6446_s22 }
 0x51f   :  { %5823 = vrot.lane.b32.xlu1 %v6788_v37, %s6446_s22 }
 0x520   :  { %v6062_v10 = vpop.eup %6061  ;;  %5818 = vrot.lane.b32.xlu0 %v6778_v53, %s6446_s22 }
 0x521   :  { %v6064_v0 = vpop.eup %6063  ;;  %v941_v23 = vmul.f32 %v6062_v10, %v895_v12 }
 0x522   :  { %v940_v54 = vmul.f32 %v6064_v0, %v893_v48 }
 0x523   :  { %v957_v1 = vsub.f32 2.0, %v941_v23  ;;  %5833 = vrot.lane.b32.xlu1 %v6808_v2, %s6446_s22 }
 0x524   :  { %v956_v60 = vsub.f32 2.0, %v940_v54  ;;  %5828 = vrot.lane.b32.xlu0 %v6798_v61, %s6446_s22 }
 0x525   :  { %v973_v55 = vmul.f32 %v6062_v10, %v957_v1 }
 0x526   :  { %v972_v13 = vmul.f32 %v6064_v0, %v956_v60 }
 0x527   :  { %2277 = vrot.lane.b32.xlu1 %v6730_v27, %s6447_s23  ;;  %v989_v22 = vmul.f32 %v6940_v41, %v973_v55 }
 0x528   :  { %2275 = vrot.lane.b32.xlu0 %v6732_v21, %s6447_s23  ;;  %v988_v58 = vmul.f32 %v6942_v50, %v972_v13  ;;  %v5770_v50 = vunpack.i.l.bf16 %v5769_v4 }
 0x52a   :  { %4802 = vmatprep.mubr.f32.mxu0 %v988_v58  ;;  %v5366_v41 = vpack.c.bf16 %v5771_v29, %v5770_v50 }
 0x52b   :  { %2281 = vrot.lane.b32.xlu1 %v6740_v31, %s6447_s23  ;;  %4803 = vmatmul.mubr.f32.vlgmr.msra.gmra.mrb[16].mxu0 %v989_v22 }
 0x52c   :  { %5359 = vmatpush3.bf16.xpose.msk.msra.mxu0 %vm6824_vm2, %v6858_v39  ;;  %2279 = vrot.lane.b32.xlu0 %v6742_v33, %s6447_s23  ;;  %v5776_v39 = vunpack.i.h.bf16 %v5774_v16 }
 0x52d   :  { %5362 = vmatprep.subr.msk.bf16.mxu0 %vm6824_vm2, %v5360_v6 }
 0x52e   :  { %v5372_v17 = vpack.c.bf16 %v5776_v39, %v5775_v47 }
 0x52f   :  { %2285 = vrot.lane.b32.xlu1 %v6750_v38, %s6447_s23 }
 0x530   :  { %2283 = vrot.lane.b32.xlu0 %v6752_v40, %s6447_s23 }
 0x533   :  { %2289 = vrot.lane.b32.xlu1 %v6760_v43, %s6447_s23 }
 0x534   :  { %5365 = vmatpush3.bf16.xpose.msk.msra.mxu0 %vm6824_vm2, %v5360_v6  ;;  %2287 = vrot.lane.b32.xlu0 %v6762_v24, %s6447_s23 }
 0x535   :  { %5368 = vmatprep.subr.msk.bf16.mxu0 %vm6824_vm2, %v5366_v41 }
 0x537   :  { %2293 = vrot.lane.b32.xlu1 %v6770_v49, %s6447_s23 }
 0x538   :  { %2291 = vrot.lane.b32.xlu0 %v6772_v51, %s6447_s23 }
 0x53b   :  { %2297 = vrot.lane.b32.xlu1 %v6780_v56, %s6447_s23 }
 0x53c   :  { %5371 = vmatpush3.bf16.xpose.msk.msra.mxu0 %vm6824_vm2, %v5366_v41  ;;  %2295 = vrot.lane.b32.xlu0 %v6782_v28, %s6447_s23 }
 0x53d   :  { %5374 = vmatprep.subr.msk.bf16.mxu0 %vm6824_vm2, %v5372_v17 }
 0x53f   :  { %2301 = vrot.lane.b32.xlu1 %v6790_v57, %s6447_s23 }
 0x540   :  { %2299 = vrot.lane.b32.xlu0 %v6792_v59, %s6447_s23 }
 0x543   :  { %2305 = vrot.lane.b32.xlu1 %v6800_v62, %s6447_s23 }
 0x544   :  { %5377 = vmatpush3.bf16.xpose.msk.msra.mxu0 %vm6824_vm2, %v5372_v17  ;;  %2303 = vrot.lane.b32.xlu0 %v6802_v63, %s6447_s23 }
 0x547   :  { %5838 = vrot.lane.b32.xlu1 %v6738_v25, %s6448_s24 }
 0x548   :  { %5843 = vrot.lane.b32.xlu0 %v6748_v20, %s6448_s24 }
 0x54b   :  { %5848 = vrot.lane.b32.xlu1 %v6758_v42, %s6448_s24  ;;  %v899_v11 = vpop.xlane.xlu0 %898 }
 0x54c   :  { %6065 = vrcp.f32 %v899_v11  ;;  %5853 = vrot.lane.b32.xlu0 %v6768_v36, %s6448_s24 }
 0x54f   :  { %v897_v46 = vpop.xlane.xlu1 %896  ;;  %5863 = vrot.lane.b32.xlu1 %v6788_v37, %s6448_s24 }
 0x550   :  { %6067 = vrcp.f32 %v897_v46  ;;  %5858 = vrot.lane.b32.xlu0 %v6778_v53, %s6448_s24 }
 0x553   :  { %v903_v4 = vpop.xlane.xlu1 %902  ;;  %v901_v12 = vpop.xlane.xlu0 %900 }
 0x554   :  { %6069 = vrcp.f32 %v903_v4 }
 0x555   :  { %6071 = vrcp.f32 %v901_v12 }
 0x556   :  { %v6066_v48 = vpop.eup %6065 }
 0x557   :  { %v943_v10 = vmul.f32 %v6066_v48, %v899_v11  ;;  %v907_v0 = vpop.xlane.xlu1 %906  ;;  %v911_v23 = vpop.xlane.xlu0 %910 }
 0x558   :  { %6073 = vrcp.f32 %v907_v0 }
 0x559   :  { %6075 = vrcp.f32 %v911_v23  ;;  %v959_v1 = vsub.f32 2.0, %v943_v10 }
 0x55a   :  { %v6068_v54 = vpop.eup %6067 }
 0x55b   :  { %v942_v60 = vmul.f32 %v6068_v54, %v897_v46  ;;  %v905_v55 = vpop.xlane.xlu1 %904  ;;  %v915_v13 = vpop.xlane.xlu0 %914  ;;  %v975_v58 = vmul.f32 %v6066_v48, %v959_v1 }
 0x55c   :  { %6077 = vrcp.f32 %v905_v55 }
 0x55d   :  { %v958_v19 = vsub.f32 2.0, %v942_v60  ;;  %6079 = vrcp.f32 %v915_v13  ;;  %v991_v11 = vmul.f32 %v6955_v34, %v975_v58 }
 0x55e   :  { %v6070_v14 = vpop.eup %6069 }
 0x55f   :  { %v6072_v22 = vpop.eup %6071  ;;  %v945_v6 = vmul.f32 %v6070_v14, %v903_v4  ;;  %v909_v29 = vpop.xlane.xlu1 %908  ;;  %v974_v50 = vmul.f32 %v6068_v54, %v958_v19 }
 0x560   :  { %v944_v41 = vmul.f32 %v6072_v22, %v901_v12  ;;  %6081 = vrcp.f32 %v909_v29 }
 0x561   :  { %v961_v16 = vsub.f32 2.0, %v945_v6  ;;  %v990_v39 = vmul.f32 %v6959_v52, %v974_v50 }
 0x562   :  { %v6074_v47 = vpop.eup %6073  ;;  %v960_v17 = vsub.f32 2.0, %v944_v41 }
 0x563   :  { %v6076_v46 = vpop.eup %6075  ;;  %v947_v10 = vmul.f32 %v6074_v47, %v907_v0  ;;  %v913_v63 = vpop.xlane.xlu1 %912  ;;  %4805 = vmatprep.mubr.f32.mxu0 %v990_v39  ;;  %v977_v59 = vmul.f32 %v6070_v14, %v961_v16 }
 0x564   :  { %v917_v60 = vpop.xlane.xlu0 %916  ;;  %6083 = vrcp.f32 %v913_v63  ;;  %4806 = vmatmul.mubr.f32.gmra.mrb[18].mxu0 %v991_v11  ;;  %v976_v4 = vmul.f32 %v6072_v22, %v960_v17  ;;  %v949_v1 = vmul.f32 %v6076_v46, %v911_v23 }
 0x565   :  { %6085 = vrcp.f32 %v917_v60  ;;  %v993_v12 = vmul.f32 %v6963_v3, %v977_v59  ;;  %v963_v54 = vsub.f32 2.0, %v947_v10 }
 0x566   :  { %v6078_v48 = vpop.eup %6077  ;;  %v992_v52 = vmul.f32 %v6965_v8, %v976_v4  ;;  %v965_v50 = vsub.f32 2.0, %v949_v1 }
 0x567   :  { %v6080_v19 = vpop.eup %6079  ;;  %v946_v6 = vmul.f32 %v6078_v48, %v905_v55  ;;  %v919_v34 = vpop.xlane.xlu1 %918  ;;  %v979_v22 = vmul.f32 %v6074_v47, %v963_v54 }
 0x568   :  { %v5784_v58 = vpop.permute.xlu0 %5783  ;;  %6087 = vrcp.f32 %v919_v34  ;;  %4808 = vmatprep.mubr.f32.mxu0 %v992_v52  ;;  %v951_v41 = vmul.f32 %v6080_v19, %v915_v13  ;;  %v981_v10 = vmul.f32 %v6076_v46, %v965_v50 }
 0x569   :  { %v962_v0 = vsub.f32 2.0, %v946_v6  ;;  %4809 = vmatmul.mubr.f32.gmra.mrb[20].mxu0 %v993_v12  ;;  %v995_v11 = vmul.f32 %v6971_v18, %v979_v22  ;;  %v5786_v46 = vunpack.i.h.bf16 %v5784_v58  ;;  %v5785_v22 = vunpack.i.l.bf16 %v5784_v58 }
 0x56a   :  { %v6082_v14 = vpop.eup %6081  ;;  %v967_v17 = vsub.f32 2.0, %v951_v41  ;;  %v997_v6 = vmul.f32 %v6973_v45, %v981_v10 }
 0x56b   :  { %v948_v16 = vmul.f32 %v6082_v14, %v909_v29  ;;  %v923_v39 = vpop.xlane.xlu1 %922  ;;  %v978_v3 = vmul.f32 %v6078_v48, %v962_v0 }
 0x56c   :  { %v7102_v59 = vpop.permute.xlu0 %5788  ;;  %6089 = vrcp.f32 %v923_v39  ;;  %v983_v0 = vmul.f32 %v6080_v19, %v967_v17 }
 0x56d   :  { %v964_v23 = vsub.f32 2.0, %v948_v16  ;;  %v994_v8 = vmul.f32 %v6980_v15, %v978_v3 }
 0x56e   :  { %v6084_v55 = vpop.eup %6083 }
 0x56f   :  { %v6086_v4 = vpop.eup %6085  ;;  %v950_v12 = vmul.f32 %v6084_v55, %v913_v63  ;;  %v921_v52 = vpop.xlane.xlu1 %920  ;;  %4811 = vmatprep.mubr.f32.mxu0 %v994_v8  ;;  %v980_v29 = vmul.f32 %v6082_v14, %v964_v23 }
 0x570   :  { %v7106_v13 = vpop.permute.xlu0 %5793  ;;  %v952_v47 = vmul.f32 %v6086_v4, %v917_v60  ;;  %6091 = vrcp.f32 %v921_v52  ;;  %4812 = vmatmul.mubr.f32.gmra.mrb[22].mxu0 %v995_v11  ;;  %v999_v11 = vmul.f32 %v6978_v9, %v983_v0 }
 0x571   :  { %v966_v48 = vsub.f32 2.0, %v950_v12  ;;  %v996_v54 = vmul.f32 %v6985_v26, %v980_v29  ;;  %v5791_v12 = vunpack.i.h.bf16 %v7102_v59  ;;  %v5790_v29 = vunpack.i.l.bf16 %v7102_v59 }
 0x572   :  { %v6088_v1 = vpop.eup %6087  ;;  %v968_v15 = vsub.f32 2.0, %v952_v47 }
 0x573   :  { %v953_v18 = vmul.f32 %v6088_v1, %v919_v34  ;;  %v5779_v50 = vpop.permute.xlu1 %5778  ;;  %4814 = vmatprep.mubr.f32.mxu0 %v996_v54  ;;  %v982_v41 = vmul.f32 %v6084_v55, %v966_v48  ;;  %v5384_v55 = vpack.c.bf16 %v5786_v46, %v5785_v22  ;;  %v5795_v46 = vunpack.i.l.bf16 %v7106_v13 }
 0x574   :  { %v1199_v63 = vpop.permute.xlu0 %1198  ;;  %v5781_v16 = vunpack.i.h.bf16 %v5779_v50  ;;  %v5780_v14 = vunpack.i.l.bf16 %v5779_v50  ;;  %4815 = vmatmul.mubr.f32.gmra.mrb[24].mxu0 %v997_v6  ;;  %v984_v60 = vmul.f32 %v6086_v4, %v968_v15  ;;  %v5390_v6 = vpack.c.bf16 %v5791_v12, %v5790_v29 }
 0x575   :  { %v969_v3 = vsub.f32 2.0, %v953_v18  ;;  %v998_v23 = vmul.f32 %v6988_v44, %v982_v41  ;;  %v5796_v18 = vunpack.i.h.bf16 %v7106_v13 }
 0x576   :  { %v6090_v26 = vpop.eup %6089  ;;  %v5378_v8 = vpack.c.bf16 %v5781_v16, %v5780_v14  ;;  %v1000_v17 = vmul.f32 %v6990_v32, %v984_v60 }
 0x577   :  { %v955_v45 = vmul.f32 %v6090_v26, %v923_v39  ;;  %v1201_v19 = vpop.permute.xlu1 %1200  ;;  %4817 = vmatprep.mubr.f32.mxu0 %v998_v23  ;;  %v985_v10 = vmul.f32 %v6088_v1, %v969_v3  ;;  %v5396_v22 = vpack.c.bf16 %v5796_v18, %v5795_v46 }
 0x578   :  { %v1203_v34 = vpop.permute.xlu0 %1202  ;;  %4818 = vmatmul.mubr.f32.gmra.mrb[26].mxu0 %v999_v11  ;;  %5380 = vmatprep.subr.msk.bf16.mxu0 %vm6824_vm2, %v5378_v8 }
 0x579   :  { %4820 = vmatprep.mubr.f32.mxu0 %v1000_v17  ;;  %5383 = vmatpush3.bf16.xpose.msk.msra.mxu0 %vm6824_vm2, %v5378_v8  ;;  %v1001_v44 = vmul.f32 %v6994_v30, %v985_v10  ;;  %v971_v9 = vsub.f32 2.0, %v955_v45 }
 0x57a   :  { %v6092_v58 = vpop.eup %6091  ;;  %5386 = vmatprep.subr.msk.bf16.mxu0 %vm6824_vm2, %v5384_v55 }
 0x57b   :  { %v954_v39 = vmul.f32 %v6092_v58, %v921_v52  ;;  %v1205_v4 = vpop.permute.xlu1 %1204  ;;  %v987_v48 = vmul.f32 %v6090_v26, %v971_v9 }
 0x57c   :  { %v1207_v32 = vpop.permute.xlu0 %1206  ;;  %4821 = vmatmul.mubr.f32.gmra.mrb[28].mxu0 %v1001_v44 }
 0x57d   :  { %v970_v47 = vsub.f32 2.0, %v954_v39  ;;  %v1003_v52 = vmul.f32 %v6997_v35, %v987_v48 }
 0x57f   :  { %v1209_v54 = vpop.permute.xlu1 %1208  ;;  %v986_v15 = vmul.f32 %v6092_v58, %v970_v47 }
 0x580   :  { %v1211_v1 = vpop.permute.xlu0 %1210 }
 0x581   :  { %5389 = vmatpush3.bf16.xpose.msk.msra.mxu0 %vm6824_vm2, %v5384_v55  ;;  %v1002_v30 = vmul.f32 %v7000_v7, %v986_v15 }
 0x582   :  { %5392 = vmatprep.subr.msk.bf16.mxu0 %vm6824_vm2, %v5390_v6 }
 0x583   :  { %v1213_v0 = vpop.permute.xlu1 %1212  ;;  %4823 = vmatprep.mubr.f32.mxu0 %v1002_v30 }
 0x584   :  { %v1215_v59 = vpop.permute.xlu0 %1214  ;;  %4824 = vmatmul.mubr.f32.gmra.mrb[30].mxu0 %v1003_v52 }
 0x585   :  { %4858 = vmatprep.mubr.msk.f32.mxu0 %vm570_vm1, %v1199_v63 }
 0x587   :  { %v1217_v50 = vpop.permute.xlu1 %1216 }
 0x588   :  { %v1219_v41 = vpop.permute.xlu0 %1218 }
 0x589   :  { %5395 = vmatpush3.bf16.xpose.msk.msra.mxu0 %vm6824_vm2, %v5390_v6 }
 0x58a   :  { %5398 = vmatprep.subr.msk.bf16.mxu0 %vm6824_vm2, %v5396_v22 }
 0x58b   :  { %v1221_v35 = vpop.permute.xlu1 %1220 }
 0x58c   :  { %v1223_v7 = vpop.permute.xlu0 %1222 }
 0x58f   :  { %v1225_v16 = vpop.permute.xlu1 %1224 }
 0x590   :  { %v1227_v14 = vpop.permute.xlu0 %1226 }
 0x591   :  { %5401 = vmatpush3.bf16.xpose.msk.msra.mxu0 %vm6824_vm2, %v5396_v22 }
 0x593   :  { %v1229_v13 = vpop.permute.xlu1 %1228 }
 0x594   :  { %v5799_v60 = vpop.permute.xlu0 %5798 }
 0x595   :  { %v5801_v3 = vunpack.i.h.bf16 %v5799_v60  ;;  %v5800_v63 = vunpack.i.l.bf16 %v5799_v60 }
 0x597   :  { %v5434_v23 = vpack.c.bf16 %v5801_v3, %v5800_v63  ;;  %v5804_v26 = vpop.permute.xlu1 %5803 }
 0x598   :  { %v5809_v8 = vpop.permute.xlu0 %5808  ;;  %v5806_v11 = vunpack.i.h.bf16 %v5804_v26  ;;  %v5805_v45 = vunpack.i.l.bf16 %v5804_v26  ;;  %4859 = vmatmul.mubr.msk.f32.vlgmr.msra.gmra.mrb[32].mxu0 %vm570_vm1, %v1201_v19 }
 0x599   :  { %5436 = vmatprep.subr.msk.bf16.mxu0 %vm6824_vm2, %v5434_v23  ;;  %4861 = vmatprep.mubr.msk.f32.mxu0 %vm570_vm1, %v1203_v34  ;;  %v5811_v44 = vunpack.i.h.bf16 %v5809_v8  ;;  %v5810_v58 = vunpack.i.l.bf16 %v5809_v8 }
 0x59a   :  { %5439 = vmatpush3.bf16.xpose.msk.msra.mxu0 %vm6824_vm2, %v5434_v23  ;;  %v5440_v17 = vpack.c.bf16 %v5806_v11, %v5805_v45 }
 0x59b   :  { %v5814_v10 = vpop.permute.xlu1 %5813  ;;  %v5446_v39 = vpack.c.bf16 %v5811_v44, %v5810_v58 }
 0x59c   :  { %v5819_v55 = vpop.permute.xlu0 %5818  ;;  %4862 = vmatmul.mubr.msk.f32.gmra.mrb[34].mxu0 %vm570_vm1, %v1205_v4  ;;  %5442 = vmatprep.subr.msk.bf16.mxu0 %vm6824_vm2, %v5440_v17  ;;  %v5816_v12 = vunpack.i.h.bf16 %v5814_v10  ;;  %v5815_v29 = vunpack.i.l.bf16 %v5814_v10 }
 0x59d   :  { %4864 = vmatprep.mubr.msk.f32.mxu0 %vm570_vm1, %v1207_v32  ;;  %v5821_v15 = vunpack.i.h.bf16 %v5819_v55  ;;  %v5820_v6 = vunpack.i.l.bf16 %v5819_v55 }
 0x59e   :  { %v5452_v48 = vpack.c.bf16 %v5816_v12, %v5815_v29 }
 0x59f   :  { %v5824_v19 = vpop.permute.xlu1 %5823 }
 0x5a0   :  { %v5829_v9 = vpop.permute.xlu0 %5828  ;;  %4865 = vmatmul.mubr.msk.f32.gmra.mrb[36].mxu0 %vm570_vm1, %v1209_v54  ;;  %v5826_v46 = vunpack.i.h.bf16 %v5824_v19 }
 0x5a1   :  { %4867 = vmatprep.mubr.msk.f32.mxu0 %vm570_vm1, %v1211_v1  ;;  %v5830_v60 = vunpack.i.l.bf16 %v5829_v9 }
 0x5a2   :  { %5445 = vmatpush3.bf16.xpose.msk.msra.mxu0 %vm6824_vm2, %v5440_v17 }
 0x5a3   :  { %5448 = vmatprep.subr.msk.bf16.mxu0 %vm6824_vm2, %v5446_v39  ;;  %v5834_v34 = vpop.permute.xlu1 %5833 }
 0x5a4   :  { %v2276_v4 = vpop.permute.xlu0 %2275  ;;  %4868 = vmatmul.mubr.msk.f32.gmra.mrb[38].mxu0 %vm570_vm1, %v1213_v0  ;;  %v5458_v0 = vpack.c.bf16 %v5821_v15, %v5820_v6  ;;  %v5836_v23 = vunpack.i.h.bf16 %v5834_v34  ;;  %v5835_v26 = vunpack.i.l.bf16 %v5834_v34 }
 0x5a5   :  { %4870 = vmatprep.mubr.msk.f32.mxu0 %vm570_vm1, %v1215_v59 }
 0x5a6   :  { %v5476_v45 = vpack.c.bf16 %v5836_v23, %v5835_v26 }
 0x5a7   :  { %v7155_v32 = vpop.permute.xlu1 %2277 }
 0x5a8   :  { %v7157_v47 = vpop.permute.xlu0 %2279  ;;  %4871 = vmatmul.mubr.msk.f32.gmra.mrb[40].mxu0 %vm570_vm1, %v1217_v50  ;;  %v5825_v50 = vunpack.i.l.bf16 %v5824_v19 }
 0x5a9   :  { %4873 = vmatprep.mubr.msk.f32.mxu0 %vm570_vm1, %v1219_v41 }
 0x5aa   :  { %5451 = vmatpush3.bf16.xpose.msk.msra.mxu0 %vm6824_vm2, %v5446_v39 }
 0x5ab   :  { %5454 = vmatprep.subr.msk.bf16.mxu0 %vm6824_vm2, %v5452_v48  ;;  %v7165_v54 = vpop.permute.xlu1 %2281 }
 0x5ac   :  { %v7167_v1 = vpop.permute.xlu0 %2283  ;;  %4874 = vmatmul.mubr.msk.f32.gmra.mrb[42].mxu0 %vm570_vm1, %v1221_v35  ;;  %v5464_v35 = vpack.c.bf16 %v5826_v46, %v5825_v50 }
 0x5ad   :  { %4876 = vmatprep.mubr.msk.f32.mxu0 %vm570_vm1, %v1223_v7 }
 0x5af   :  { %v7171_v30 = vpop.permute.xlu1 %2285 }
 0x5b0   :  { %v7173_v52 = vpop.permute.xlu0 %2287  ;;  %4877 = vmatmul.mubr.msk.f32.gmra.mrb[44].mxu0 %vm570_vm1, %v1225_v16 }
 0x5b1   :  { %4879 = vmatprep.mubr.msk.f32.mxu0 %vm570_vm1, %v1227_v14  ;;  %v5831_v14 = vunpack.i.h.bf16 %v5829_v9 }
 0x5b2   :  { %5457 = vmatpush3.bf16.xpose.msk.msra.mxu0 %vm6824_vm2, %v5452_v48 }
 0x5b3   :  { %5460 = vmatprep.subr.msk.bf16.mxu0 %vm6824_vm2, %v5458_v0  ;;  %v7181_v59 = vpop.permute.xlu1 %2289 }
 0x5b4   :  { %v7183_v18 = vpop.permute.xlu0 %2291  ;;  %4880 = vmatmul.mubr.msk.f32.gmra.mrb[46].mxu0 %vm570_vm1, %v1229_v13  ;;  %v5470_v13 = vpack.c.bf16 %v5831_v14, %v5830_v60 }
 0x5b5   :  { %5022 = vmatprep.mubr.msk.f32.mxu0 %vm570_vm1, %v2276_v4 }
 0x5b7   :  { %v7187_v41 = vpop.permute.xlu1 %2293 }
 0x5b8   :  { %v7189_v22 = vpop.permute.xlu0 %2295 }
 0x5ba   :  { %5463 = vmatpush3.bf16.xpose.msk.msra.mxu0 %vm6824_vm2, %v5458_v0 }
 0x5bb   :  { %5466 = vmatprep.subr.msk.bf16.mxu0 %vm6824_vm2, %v5464_v35  ;;  %v2298_v7 = vpop.permute.xlu1 %2297 }
 0x5bc   :  { %v2300_v16 = vpop.permute.xlu0 %2299 }
 0x5bf   :  { %v2302_v3 = vpop.permute.xlu1 %2301 }
 0x5c0   :  { %v2304_v63 = vpop.permute.xlu0 %2303 }
 0x5c2   :  { %5469 = vmatpush3.bf16.xpose.msk.msra.mxu0 %vm6824_vm2, %v5464_v35 }
 0x5c3   :  { %5472 = vmatprep.subr.msk.bf16.mxu0 %vm6824_vm2, %v5470_v13  ;;  %v2306_v8 = vpop.permute.xlu1 %2305 }
 0x5c4   :  { %v5844_v11 = vpop.permute.xlu0 %5843 }
 0x5c5   :  { %v5846_v10 = vunpack.i.h.bf16 %v5844_v11  ;;  %v5845_v55 = vunpack.i.l.bf16 %v5844_v11 }
 0x5c7   :  { %v5839_v17 = vpop.permute.xlu1 %5838  ;;  %v5406_v34 = vpack.c.bf16 %v5846_v10, %v5845_v55  ;;  %v7262_v55 = vld [vmem:[#allocation8 + $0x8] sm:$0xff] }
 0x5c8   :  { %v5841_v44 = vunpack.i.h.bf16 %v5839_v17  ;;  %v5840_v58 = vunpack.i.l.bf16 %v5839_v17  ;;  %v5854_v9 = vpop.permute.xlu0 %5853 }
 0x5c9   :  { %v5856_v29 = vunpack.i.h.bf16 %v5854_v9  ;;  %v5855_v48 = vunpack.i.l.bf16 %v5854_v9 }
 0x5ca   :  { %5475 = vmatpush3.bf16.xpose.msk.msra.mxu0 %vm6824_vm2, %v5470_v13  ;;  %v5402_v19 = vpack.c.bf16 %v5841_v44, %v5840_v58  ;;  %v7267_v58 = vld [vmem:[#allocation8] sm:$0xff] }
 0x5cb   :  { %5478 = vmatprep.subr.msk.bf16.mxu0 %vm6824_vm2, %v5476_v45  ;;  %v5849_v39 = vpop.permute.xlu1 %5848  ;;  %v5414_v50 = vpack.c.bf16 %v5856_v29, %v5855_v48  ;;  %v7279_v48 = vld [vmem:[#allocation8 + $0x10] sm:$0xff] }
 0x5cc   :  { %v5851_v4 = vunpack.i.h.bf16 %v5849_v39  ;;  %v5850_v12 = vunpack.i.l.bf16 %v5849_v39  ;;  %5403 = vmatprep.subr.bf16.mxu1 %v5402_v19  ;;  %v5859_v6 = vpop.permute.xlu0 %5858 }
 0x5cd   :  { %5405 = vmatpush3.bf16.msra.mxu1 %v5402_v19  ;;  %v5861_v0 = vunpack.i.h.bf16 %v5859_v6  ;;  %v5860_v46 = vunpack.i.l.bf16 %v5859_v6 }
 0x5ce   :  { %5407 = vmatprep.subr.bf16.mxu1 %v5406_v34  ;;  %v5410_v15 = vpack.c.bf16 %v5851_v4, %v5850_v12 }
 0x5cf   :  { %v5864_v35 = vpop.permute.xlu1 %5863  ;;  %v5418_v13 = vpack.c.bf16 %v5861_v0, %v5860_v46 }
 0x5d0   :  { %v5866_v14 = vunpack.i.h.bf16 %v5864_v35  ;;  %v5865_v60 = vunpack.i.l.bf16 %v5864_v35  ;;  %v7286_v35 = vld [vmem:[#allocation8 + $0x28] sm:$0xff] }
 0x5d1   :  { %5409 = vmatpush3.bf16.msra.mxu1 %v5406_v34  ;;  %v7274_v34 = vld [vmem:[#allocation8 + $0x18] sm:$0xff] }
 0x5d2   :  { %5481 = vmatpush3.bf16.xpose.msk.msra.mxu0 %vm6824_vm2, %v5476_v45  ;;  %5411 = vmatprep.subr.bf16.mxu1 %v5410_v15  ;;  %v5422_v23 = vpack.c.bf16 %v5866_v14, %v5865_v60  ;;  %8126 = vst [vmem:[#allocation35_spill] sm:$0xff] %v7274_v34  ;;  %v7291_v60 = vld [vmem:[#allocation8 + $0x20] sm:$0xff] }
 0x5d3   :  { %8127 = vst [vmem:[#allocation36_spill] sm:$0xff] %v7291_v60 }
 0x5d5   :  { %5413 = vmatpush3.bf16.msra.mxu1 %v5410_v15 }
 0x5d6   :  { %5415 = vmatprep.subr.bf16.mxu1 %v5414_v50 }
 0x5d9   :  { %5023 = vmatmul.mubr.msk.f32.vlgmr.msra.gmra.mrb[48].mxu0 %vm570_vm1, %v7155_v32  ;;  %5417 = vmatpush3.bf16.msra.mxu1 %v5414_v50 }
 0x5da   :  { %5025 = vmatprep.mubr.msk.f32.mxu0 %vm570_vm1, %v7157_v47  ;;  %5419 = vmatprep.subr.bf16.mxu1 %v5418_v13 }
 0x5dd   :  { %5026 = vmatmul.mubr.msk.f32.gmra.mrb[50].mxu0 %vm570_vm1, %v7165_v54  ;;  %5421 = vmatpush3.bf16.msra.mxu1 %v5418_v13 }
 0x5de   :  { %5028 = vmatprep.mubr.msk.f32.mxu0 %vm570_vm1, %v7167_v1  ;;  %5423 = vmatprep.subr.bf16.mxu1 %v5422_v23 }
 0x5e1   :  { %5029 = vmatmul.mubr.msk.f32.gmra.mrb[52].mxu0 %vm570_vm1, %v7171_v30  ;;  %5425 = vmatpush3.bf16.msra.mxu1 %v5422_v23 }
 0x5e2   :  { %5031 = vmatprep.mubr.msk.f32.mxu0 %vm570_vm1, %v7173_v52 }
 0x5e5   :  { %5032 = vmatmul.mubr.msk.f32.gmra.mrb[54].mxu0 %vm570_vm1, %v7181_v59 }
 0x5e6   :  { %5034 = vmatprep.mubr.msk.f32.mxu0 %vm570_vm1, %v7183_v18 }
 0x5e9   :  { %5035 = vmatmul.mubr.msk.f32.gmra.mrb[56].mxu0 %vm570_vm1, %v7187_v41 }
 0x5ea   :  { %5037 = vmatprep.mubr.msk.f32.mxu0 %vm570_vm1, %v7189_v22 }
 0x5ed   :  { %5038 = vmatmul.mubr.msk.f32.gmra.mrb[58].mxu0 %vm570_vm1, %v2298_v7 }
 0x5ee   :  { %5040 = vmatprep.mubr.msk.f32.mxu0 %vm570_vm1, %v2300_v16 }
 0x5f1   :  { %5041 = vmatmul.mubr.msk.f32.gmra.mrb[60].mxu0 %vm570_vm1, %v2302_v3 }
 0x5f2   :  { %5043 = vmatprep.mubr.msk.f32.mxu0 %vm570_vm1, %v2304_v63 }
 0x5f5   :  { %5044 = vmatmul.mubr.msk.f32.gmra.mrb[62].mxu0 %vm570_vm1, %v2306_v8 }
 0x5fe   :  { %v7230_v32 = vpop.f32.mrb[16].mxu0 }
 0x5ff   :  { %8110 = vst [vmem:[#allocation19_spill] sm:$0xff] %v7230_v32  ;;  %v7232_v47 = vpop.f32.mrb[17].mxu0 }
 0x600   :  { %8111 = vst [vmem:[#allocation20_spill] sm:$0xff] %v7232_v47 }
 0x637   :  { %v7234_v54 = vpop.f32.mrb[18].mxu0 }
 0x638   :  { %8112 = vst [vmem:[#allocation21_spill] sm:$0xff] %v7234_v54  ;;  %v7236_v1 = vpop.f32.mrb[19].mxu0 }
 0x639   :  { %8113 = vst [vmem:[#allocation22_spill] sm:$0xff] %v7236_v1 }
 0x63c   :  { %v7238_v30 = vpop.f32.mrb[20].mxu0 }
 0x63d   :  { %8114 = vst [vmem:[#allocation23_spill] sm:$0xff] %v7238_v30  ;;  %v7240_v52 = vpop.f32.mrb[21].mxu0 }
 0x63e   :  { %8115 = vst [vmem:[#allocation24_spill] sm:$0xff] %v7240_v52 }
 0x643   :  { %v7242_v59 = vpop.f32.mrb[22].mxu0 }
 0x644   :  { %8116 = vst [vmem:[#allocation25_spill] sm:$0xff] %v7242_v59  ;;  %v7244_v18 = vpop.f32.mrb[23].mxu0 }
 0x645   :  { %8117 = vst [vmem:[#allocation26_spill] sm:$0xff] %v7244_v18 }
 0x647   :  { %v7246_v41 = vpop.f32.mrb[24].mxu0 }
 0x648   :  { %8118 = vst [vmem:[#allocation27_spill] sm:$0xff] %v7246_v41  ;;  %v7248_v22 = vpop.f32.mrb[25].mxu0 }
 0x649   :  { %8119 = vst [vmem:[#allocation28_spill] sm:$0xff] %v7248_v22 }
 0x64b   :  { %v7250_v7 = vpop.f32.mrb[26].mxu0 }
 0x64c   :  { %8120 = vst [vmem:[#allocation29_spill] sm:$0xff] %v7250_v7  ;;  %v7252_v16 = vpop.f32.mrb[27].mxu0 }
 0x64d   :  { %8121 = vst [vmem:[#allocation30_spill] sm:$0xff] %v7252_v16 }
 0x64f   :  { %v7254_v3 = vpop.f32.mrb[28].mxu0 }
 0x650   :  { %8122 = vst [vmem:[#allocation31_spill] sm:$0xff] %v7254_v3  ;;  %v7256_v63 = vpop.f32.mrb[29].mxu0 }
 0x651   :  { %8123 = vst [vmem:[#allocation32_spill] sm:$0xff] %v7256_v63 }
 0x657   :  { %v7258_v26 = vpop.f32.mrb[30].mxu0 }
 0x658   :  { %8124 = vst [vmem:[#allocation33_spill] sm:$0xff] %v7258_v26  ;;  %v7260_v8 = vpop.f32.mrb[31].mxu0 }
 0x659   :  { %8125 = vst [vmem:[#allocation34_spill] sm:$0xff] %v7260_v8 }
 0x66b   :  { %v4860_v11 = vpop.f32.mrb[32].mxu0 }
 0x66c   :  { %v1472_v45 = vmul.f32 0.35355338, %v4860_v11  ;;  %v1392_v17 = vpop.f32.mrb[33].mxu0 }
 0x66d   :  { %v1471_v10 = vmul.f32 0.35355338, %v1392_v17 }
 0x66e   :  { %v7265_v44 = vadd.f32 %v7262_v55, %v1472_v45 }
 0x66f   :  { %v7270_v19 = vadd.f32 %v7267_v58, %v1471_v10  ;;  %v4863_v9 = vpop.f32.mrb[34].mxu0  ;;  %v7298_v10 = vld [vmem:[#allocation8 + $0x38] sm:$0xff] }
 0x670   :  { %v1474_v39 = vmul.f32 0.35355338, %v4863_v9  ;;  %1505 = vmax.xlane.f32.xlu1 %v7265_v44  ;;  %v1402_v4 = vpop.f32.mrb[35].mxu0 }
 0x671   :  { %v1473_v12 = vmul.f32 0.35355338, %v1402_v4  ;;  %1503 = vmax.xlane.f32.xlu0 %v7270_v19 }
 0x672   :  { %v7277_v29 = vadd.f32 %v7274_v34, %v1474_v39  ;;  %v7303_v39 = vld [vmem:[#allocation8 + $0x30] sm:$0xff] }
 0x673   :  { %v7282_v15 = vadd.f32 %v7279_v48, %v1473_v12  ;;  %v4866_v6 = vpop.f32.mrb[36].mxu0  ;;  %8128 = vst [vmem:[#allocation37_spill] sm:$0xff] %v7303_v39 }
 0x674   :  { %v1476_v0 = vmul.f32 0.35355338, %v4866_v6  ;;  %1509 = vmax.xlane.f32.xlu1 %v7277_v29  ;;  %v1412_v46 = vpop.f32.mrb[37].mxu0 }
 0x675   :  { %v1475_v50 = vmul.f32 0.35355338, %v1412_v46  ;;  %1507 = vmax.xlane.f32.xlu0 %v7282_v15 }
 0x676   :  { %v7289_v14 = vadd.f32 %v7286_v35, %v1476_v0 }
 0x677   :  { %v7294_v13 = vadd.f32 %v7291_v60, %v1475_v50  ;;  %v4869_v23 = vpop.f32.mrb[38].mxu0  ;;  %v7310_v50 = vld [vmem:[#allocation8 + $0x48] sm:$0xff] }
 0x678   :  { %v1478_v11 = vmul.f32 0.35355338, %v4869_v23  ;;  %1513 = vmax.xlane.f32.xlu1 %v7289_v14  ;;  %v1422_v45 = vpop.f32.mrb[39].mxu0  ;;  %8129 = vst [vmem:[#allocation38_spill] sm:$0xff] %v7310_v50 }
 0x679   :  { %v1477_v17 = vmul.f32 0.35355338, %v1422_v45  ;;  %1511 = vmax.xlane.f32.xlu0 %v7294_v13 }
 0x67a   :  { %v7301_v9 = vadd.f32 %v7298_v10, %v1478_v11  ;;  %v7315_v11 = vld [vmem:[#allocation8 + $0x40] sm:$0xff] }
 0x67b   :  { %v7306_v4 = vadd.f32 %v7303_v39, %v1477_v17  ;;  %v4872_v12 = vpop.f32.mrb[40].mxu0  ;;  %8130 = vst [vmem:[#allocation39_spill] sm:$0xff] %v7315_v11 }
 0x67c   :  { %v1480_v6 = vmul.f32 0.35355338, %v4872_v12  ;;  %1517 = vmax.xlane.f32.xlu1 %v7301_v9  ;;  %v1432_v0 = vpop.f32.mrb[41].mxu0 }
 0x67d   :  { %v1479_v46 = vmul.f32 0.35355338, %v1432_v0  ;;  %1515 = vmax.xlane.f32.xlu0 %v7306_v4  ;;  %v7322_v0 = vld [vmem:[#allocation8 + $0x58] sm:$0xff] }
 0x67e   :  { %v7313_v23 = vadd.f32 %v7310_v50, %v1480_v6  ;;  %8131 = vst [vmem:[#allocation40_spill] sm:$0xff] %v7322_v0  ;;  %v7327_v6 = vld [vmem:[#allocation8 + $0x50] sm:$0xff] }
 0x67f   :  { %v7318_v45 = vadd.f32 %v7315_v11, %v1479_v46  ;;  %v4875_v17 = vpop.f32.mrb[42].mxu0  ;;  %8132 = vst [vmem:[#allocation41_spill] sm:$0xff] %v7327_v6 }
 0x680   :  { %v1482_v26 = vmul.f32 0.35355338, %v4875_v17  ;;  %1521 = vmax.xlane.f32.xlu1 %v7313_v23  ;;  %v1442_v12 = vpop.f32.mrb[43].mxu0 }
 0x681   :  { %v1481_v8 = vmul.f32 0.35355338, %v1442_v12  ;;  %1519 = vmax.xlane.f32.xlu0 %v7318_v45  ;;  %v7334_v12 = vld [vmem:[#allocation8 + $0x68] sm:$0xff] }
 0x682   :  { %v7325_v3 = vadd.f32 %v7322_v0, %v1482_v26  ;;  %8133 = vst [vmem:[#allocation42_spill] sm:$0xff] %v7334_v12  ;;  %v7339_v26 = vld [vmem:[#allocation8 + $0x60] sm:$0xff] }
 0x683   :  { %v7330_v63 = vadd.f32 %v7327_v6, %v1481_v8  ;;  %v4878_v46 = vpop.f32.mrb[44].mxu0  ;;  %8134 = vst [vmem:[#allocation43_spill] sm:$0xff] %v7339_v26 }
 0x684   :  { %v1484_v7 = vmul.f32 0.35355338, %v4878_v46  ;;  %1525 = vmax.xlane.f32.xlu1 %v7325_v3  ;;  %v1452_v17 = vpop.f32.mrb[45].mxu0 }
 0x685   :  { %v1483_v16 = vmul.f32 0.35355338, %v1452_v17  ;;  %1523 = vmax.xlane.f32.xlu0 %v7330_v63  ;;  %v7346_v17 = vld [vmem:[#allocation8 + $0x78] sm:$0xff] }
 0x686   :  { %v7337_v41 = vadd.f32 %v7334_v12, %v1484_v7  ;;  %8135 = vst [vmem:[#allocation44_spill] sm:$0xff] %v7346_v17  ;;  %v7351_v7 = vld [vmem:[#allocation8 + $0x70] sm:$0xff] }
 0x687   :  { %v7342_v22 = vadd.f32 %v7339_v26, %v1483_v16  ;;  %v4881_v8 = vpop.f32.mrb[46].mxu0  ;;  %8136 = vst [vmem:[#allocation45_spill] sm:$0xff] %v7351_v7 }
 0x688   :  { %v1486_v59 = vmul.f32 0.35355338, %v4881_v8  ;;  %1529 = vmax.xlane.f32.xlu1 %v7337_v41  ;;  %v1462_v46 = vpop.f32.mrb[47].mxu0 }
 0x689   :  { %v1485_v18 = vmul.f32 0.35355338, %v1462_v46  ;;  %1527 = vmax.xlane.f32.xlu0 %v7342_v22 }
 0x68a   :  { %v7349_v30 = vadd.f32 %v7346_v17, %v1486_v59 }
 0x68b   :  { %v7354_v52 = vadd.f32 %v7351_v7, %v1485_v18 }
 0x68c   :  { %1533 = vmax.xlane.f32.xlu1 %v7349_v30 }
 0x68d   :  { %1531 = vmax.xlane.f32.xlu0 %v7354_v52 }
 0x6a3   :  { %5868 = vrot.lane.b32.xlu0 %v6798_v61, %s6448_s24 }
 0x6ac   :  { %v7360_v16 = vpop.f32.mrb[48].mxu0 }
 0x6ad   :  { %v7362_v8 = vpop.f32.mrb[49].mxu0 }
 0x6b0   :  { %v7364_v46 = vpop.f32.mrb[50].mxu0 }
 0x6b1   :  { %v7366_v59 = vpop.f32.mrb[51].mxu0 }
 0x6b4   :  { %v7368_v54 = vpop.f32.mrb[52].mxu0 }
 0x6b5   :  { %v7370_v1 = vpop.f32.mrb[53].mxu0 }
 0x6b6   :  { %8137 = vst [vmem:[#allocation46_spill] sm:$0xff] %v7370_v1 }
 0x6b8   :  { %v7372_v18 = vpop.f32.mrb[54].mxu0 }
 0x6b9   :  { %v7374_v32 = vpop.f32.mrb[55].mxu0 }
 0x6ba   :  { %8138 = vst [vmem:[#allocation47_spill] sm:$0xff] %v7374_v32 }
 0x6bc   :  { %v7376_v47 = vpop.f32.mrb[56].mxu0 }
 0x6bd   :  { %8139 = vst [vmem:[#allocation48_spill] sm:$0xff] %v7376_v47  ;;  %v7378_v7 = vpop.f32.mrb[57].mxu0 }
 0x6be   :  { %8140 = vst [vmem:[#allocation49_spill] sm:$0xff] %v7378_v7 }
 0x6c0   :  { %v7380_v26 = vpop.f32.mrb[58].mxu0 }
 0x6c1   :  { %8141 = vst [vmem:[#allocation50_spill] sm:$0xff] %v7380_v26  ;;  %v7382_v6 = vpop.f32.mrb[59].mxu0 }
 0x6c2   :  { %8142 = vst [vmem:[#allocation51_spill] sm:$0xff] %v7382_v6 }
 0x6c4   :  { %v7384_v17 = vpop.f32.mrb[60].mxu0 }
 0x6c5   :  { %8143 = vst [vmem:[#allocation52_spill] sm:$0xff] %v7384_v17  ;;  %v7386_v11 = vpop.f32.mrb[61].mxu0 }
 0x6c6   :  { %8144 = vst [vmem:[#allocation53_spill] sm:$0xff] %v7386_v11 }
 0x6c8   :  { %v7388_v12 = vpop.f32.mrb[62].mxu0 }
 0x6c9   :  { %8145 = vst [vmem:[#allocation54_spill] sm:$0xff] %v7388_v12  ;;  %v7390_v39 = vpop.f32.mrb[63].mxu0 }
 0x6ca   :  { %8146 = vst [vmem:[#allocation55_spill] sm:$0xff] %v7390_v39 }
 0x6fd   :  { %v1506_v0 = vpop.xlane.xlu1 %1505 }
 0x6fe   :  { %v1536_v60 = vsub.f32 %v7265_v44, %v1506_v0  ;;  %v1504_v32 = vpop.xlane.xlu0 %1503 }
 0x6ff   :  { %v1535_v50 = vsub.f32 %v7270_v19, %v1504_v32 }
 0x700   :  { %v1553_v1 = vmul.f32 1.442695, %v1536_v60 }
 0x701   :  { %v1551_v7 = vmul.f32 1.442695, %v1535_v50  ;;  %v1510_v34 = vpop.xlane.xlu1 %1509 }
 0x702   :  { %6093 = vpow2.f32 %v1553_v1  ;;  %v1538_v6 = vsub.f32 %v7277_v29, %v1510_v34  ;;  %v1508_v26 = vpop.xlane.xlu0 %1507 }
 0x703   :  { %6095 = vpow2.f32 %v1551_v7  ;;  %v1537_v11 = vsub.f32 %v7282_v15, %v1508_v26 }
 0x704   :  { %v1557_v17 = vmul.f32 1.442695, %v1538_v6 }
 0x705   :  { %v1555_v12 = vmul.f32 1.442695, %v1537_v11  ;;  %v1514_v47 = vpop.xlane.xlu1 %1513 }
 0x706   :  { %6097 = vpow2.f32 %v1557_v17  ;;  %v1540_v39 = vsub.f32 %v7289_v14, %v1514_v47  ;;  %v1512_v44 = vpop.xlane.xlu0 %1511 }
 0x707   :  { %6099 = vpow2.f32 %v1555_v12  ;;  %v1539_v32 = vsub.f32 %v7294_v13, %v1512_v44 }
 0x708   :  { %v1561_v19 = vmul.f32 1.442695, %v1540_v39 }
 0x709   :  { %v1559_v60 = vmul.f32 1.442695, %v1539_v32  ;;  %v1518_v50 = vpop.xlane.xlu1 %1517 }
 0x70a   :  { %6101 = vpow2.f32 %v1561_v19  ;;  %v1542_v1 = vsub.f32 %v7301_v9, %v1518_v50  ;;  %v1516_v34 = vpop.xlane.xlu0 %1515 }
 0x70b   :  { %6103 = vpow2.f32 %v1559_v60  ;;  %v1541_v29 = vsub.f32 %v7306_v4, %v1516_v34 }
 0x70c   :  { %v7400_v15 = vpop.eup %6093  ;;  %v1565_v11 = vmul.f32 1.442695, %v1542_v1 }
 0x70d   :  { %v7402_v0 = vpop.eup %6095  ;;  %v1522_v47 = vpop.xlane.xlu1 %1521  ;;  %1585 = vadd.xlane.f32.xlu1 %v7400_v15  ;;  %v1563_v39 = vmul.f32 1.442695, %v1541_v29 }
 0x70e   :  { %6105 = vpow2.f32 %v1565_v11  ;;  %v1544_v14 = vsub.f32 %v7313_v23, %v1522_v47  ;;  %v1520_v13 = vpop.xlane.xlu0 %1519  ;;  %1583 = vadd.xlane.f32.xlu0 %v7402_v0 }
 0x70f   :  { %v1543_v12 = vsub.f32 %v7318_v45, %v1520_v13  ;;  %6107 = vpow2.f32 %v1563_v39 }
 0x710   :  { %v7407_v9 = vpop.eup %6097  ;;  %v1569_v4 = vmul.f32 1.442695, %v1544_v14 }
 0x711   :  { %v7409_v6 = vpop.eup %6099  ;;  %1589 = vadd.xlane.f32.xlu1 %v7407_v9  ;;  %v1567_v32 = vmul.f32 1.442695, %v1543_v12 }
 0x712   :  { %v1524_v26 = vpop.xlane.xlu0 %1523  ;;  %1587 = vadd.xlane.f32.xlu0 %v7409_v6  ;;  %6109 = vpow2.f32 %v1569_v4  ;;  %v1526_v4 = vpop.xlane.xlu1 %1525 }
 0x713   :  { %v1545_v17 = vsub.f32 %v7330_v63, %v1524_v26  ;;  %v1546_v12 = vsub.f32 %v7325_v3, %v1526_v4 }
 0x714   :  { %v7415_v23 = vpop.eup %6101 }
 0x715   :  { %v7417_v7 = vpop.eup %6103  ;;  %v1571_v44 = vmul.f32 1.442695, %v1545_v17 }
 0x716   :  { %v1528_v19 = vpop.xlane.xlu0 %1527  ;;  %1591 = vadd.xlane.f32.xlu1 %v7417_v7  ;;  %1593 = vadd.xlane.f32.xlu0 %v7415_v23  ;;  %v1530_v26 = vpop.xlane.xlu1 %1529 }
 0x717   :  { %6111 = vpow2.f32 %v1571_v44  ;;  %v1547_v45 = vsub.f32 %v7342_v22, %v1528_v19  ;;  %v1573_v44 = vmul.f32 1.442695, %v1546_v12 }
 0x718   :  { %v7422_v60 = vpop.eup %6105  ;;  %6113 = vpow2.f32 %v1567_v32  ;;  %v1548_v32 = vsub.f32 %v7337_v41, %v1530_v26 }
 0x719   :  { %v1575_v50 = vmul.f32 1.442695, %v1547_v45  ;;  %v7425_v1 = vpop.eup %6107 }
 0x71a   :  { %1597 = vadd.xlane.f32.xlu1 %v7422_v60  ;;  %v1532_v63 = vpop.xlane.xlu0 %1531  ;;  %v1534_v45 = vpop.xlane.xlu1 %1533 }
 0x71b   :  { %6115 = vpow2.f32 %v1575_v50  ;;  %v1549_v17 = vsub.f32 %v7354_v52, %v1532_v63  ;;  %v1577_v50 = vmul.f32 1.442695, %v1548_v32 }
 0x71c   :  { %v7428_v47 = vpop.eup %6109  ;;  %6117 = vpow2.f32 %v1573_v44 }
 0x71d   :  { %v1579_v19 = vmul.f32 1.442695, %v1549_v17 }
 0x71e   :  { %1595 = vadd.xlane.f32.xlu1 %v7425_v1  ;;  %v5869_v34 = vpop.permute.xlu0 %5868 }
 0x71f   :  { %v5871_v29 = vunpack.i.h.bf16 %v5869_v34  ;;  %v5870_v11 = vunpack.i.l.bf16 %v5869_v34  ;;  %v1550_v34 = vsub.f32 %v7349_v30, %v1534_v45  ;;  %6119 = vpow2.f32 %v1579_v19 }
 0x720   :  { %6121 = vpow2.f32 %v1577_v50 }
 0x721   :  { %v7430_v14 = vpop.eup %6111  ;;  %v5426_v22 = vpack.c.bf16 %v5871_v29, %v5870_v11  ;;  %v1581_v29 = vmul.f32 1.442695, %v1550_v34 }
 0x722   :  { %1601 = vadd.xlane.f32.xlu1 %v7428_v47  ;;  %1603 = vadd.xlane.f32.xlu0 %v7430_v14  ;;  %v7434_v13 = vpop.eup %6113 }
 0x723   :  { %5427 = vmatprep.subr.bf16.mxu1 %v5426_v22  ;;  %6123 = vpow2.f32 %v1581_v29 }
 0x724   :  { %5429 = vmatpush3.bf16.msra.mxu1 %v5426_v22 }
 0x725   :  { %v7436_v39 = vpop.eup %6115 }
 0x726   :  { %1599 = vadd.xlane.f32.xlu1 %v7434_v13  ;;  %1607 = vadd.xlane.f32.xlu0 %v7436_v39  ;;  %v7448_v11 = vpop.eup %6117 }
 0x729   :  { %v7450_v22 = vpop.eup %6119 }
 0x72a   :  { %8147 = vst [vmem:[#allocation56_spill] sm:$0xff] %v7450_v22  ;;  %v7454_v52 = vpop.eup %6121 }
 0x72b   :  { %8148 = vst [vmem:[#allocation57_spill] sm:$0xff] %v7454_v52 }
 0x72d   :  { %v7457_v41 = vpop.eup %6123 }
 0x72e   :  { %8149 = vst [vmem:[#allocation58_spill] sm:$0xff] %v7457_v41 }
 0x737   :  { %5873 = vrot.lane.b32.xlu1 %v6808_v2, %s6448_s24 }
 0x73c   :  { %5878 = vrot.lane.b32.xlu0 %v6738_v25, %s6449_s25 }
 0x75b   :  { %1605 = vadd.xlane.f32.xlu1 %v7448_v11  ;;  %1611 = vadd.xlane.f32.xlu0 %v7450_v22 }
 0x75f   :  { %1609 = vadd.xlane.f32.xlu1 %v7454_v52 }
 0x763   :  { %1613 = vadd.xlane.f32.xlu1 %v7457_v41 }
 0x771   :  { %5883 = vrot.lane.b32.xlu0 %v6748_v20, %s6449_s25 }
 0x774   :  { %5888 = vrot.lane.b32.xlu1 %v6758_v42, %s6449_s25 }
 0x775   :  { %5893 = vrot.lane.b32.xlu0 %v6768_v36, %s6449_s25 }
 0x778   :  { %5913 = vrot.lane.b32.xlu1 %v6808_v2, %s6449_s25 }
 0x779   :  { %5898 = vrot.lane.b32.xlu0 %v6778_v53, %s6449_s25 }
 0x77c   :  { %3177 = vrot.lane.b32.xlu1 %v6730_v27, %s6450_s26 }
 0x77d   :  { %5903 = vrot.lane.b32.xlu0 %v6788_v37, %s6449_s25 }
 0x780   :  { %3181 = vrot.lane.b32.xlu1 %v6740_v31, %s6450_s26  ;;  %v8150_v31 = vld [vmem:[#allocation15_spill] sm:$0xff] }
 0x781   :  { %5908 = vrot.lane.b32.xlu0 %v6798_v61, %s6449_s25 }
 0x784   :  { %3185 = vrot.lane.b32.xlu1 %v6750_v38, %s6450_s26  ;;  %v8151_v38 = vld [vmem:[#allocation17_spill] sm:$0xff] }
 0x785   :  { %3175 = vrot.lane.b32.xlu0 %v6732_v21, %s6450_s26 }
 0x788   :  { %3189 = vrot.lane.b32.xlu1 %v6760_v43, %s6450_s26 }
 0x789   :  { %3179 = vrot.lane.b32.xlu0 %v6742_v33, %s6450_s26 }
 0x78c   :  { %3193 = vrot.lane.b32.xlu1 %v6770_v49, %s6450_s26 }
 0x78d   :  { %3183 = vrot.lane.b32.xlu0 %v6752_v40, %s6450_s26 }
 0x790   :  { %3197 = vrot.lane.b32.xlu1 %v6780_v56, %s6450_s26 }
 0x791   :  { %3187 = vrot.lane.b32.xlu0 %v6762_v24, %s6450_s26 }
 0x794   :  { %3201 = vrot.lane.b32.xlu1 %v6790_v57, %s6450_s26 }
 0x795   :  { %3191 = vrot.lane.b32.xlu0 %v6772_v51, %s6450_s26 }
 0x798   :  { %3205 = vrot.lane.b32.xlu1 %v6800_v62, %s6450_s26 }
 0x799   :  { %3195 = vrot.lane.b32.xlu0 %v6782_v28, %s6450_s26 }
 0x79a   :  { %v1586_v27 = vpop.xlane.xlu1 %1585 }
 0x79b   :  { %v1584_v21 = vpop.xlane.xlu0 %1583 }
 0x79c   :  { %6125 = vrcp.f32 %v1584_v21 }
 0x79d   :  { %3199 = vrot.lane.b32.xlu0 %v8150_v31, %s6450_s26  ;;  %6127 = vrcp.f32 %v1586_v27 }
 0x79e   :  { %v1590_v33 = vpop.xlane.xlu1 %1589 }
 0x79f   :  { %v1588_v40 = vpop.xlane.xlu0 %1587 }
 0x7a0   :  { %6129 = vrcp.f32 %v1588_v40 }
 0x7a1   :  { %3203 = vrot.lane.b32.xlu0 %v8151_v38, %s6450_s26  ;;  %6131 = vrcp.f32 %v1590_v33 }
 0x7a3   :  { %v1592_v43 = vpop.xlane.xlu1 %1591  ;;  %v1594_v57 = vpop.xlane.xlu0 %1593 }
 0x7a4   :  { %6133 = vrcp.f32 %v1592_v43 }
 0x7a5   :  { %6135 = vrcp.f32 %v1594_v57 }
 0x7a6   :  { %v6126_v24 = vpop.eup %6125 }
 0x7a7   :  { %v1631_v49 = vmul.f32 %v6126_v24, %v1584_v21  ;;  %v1598_v56 = vpop.xlane.xlu1 %1597  ;;  %v6128_v3 = vpop.eup %6127 }
 0x7a8   :  { %v1632_v26 = vmul.f32 %v6128_v3, %v1586_v27 }
 0x7a9   :  { %v1647_v51 = vsub.f32 2.0, %v1631_v49 }
 0x7aa   :  { %v6130_v12 = vpop.eup %6129  ;;  %v1648_v50 = vsub.f32 2.0, %v1632_v26  ;;  %v2553_v26 = vmul.f32 0.35355338, %v7368_v54  ;;  %v2550_v54 = vmul.f32 0.35355338, %v7366_v59 }
 0x7ab   :  { %v1596_v28 = vpop.xlane.xlu1 %1595  ;;  %v1663_v62 = vmul.f32 %v6126_v24, %v1647_v51  ;;  %v6132_v17 = vpop.eup %6131  ;;  %v1633_v44 = vmul.f32 %v6130_v12, %v1588_v40 }
 0x7ac   :  { %6137 = vrcp.f32 %v1596_v28  ;;  %v1634_v34 = vmul.f32 %v6132_v17, %v1590_v33 }
 0x7ad   :  { %v1679_v30 = vmul.f32 %v7402_v0, %v1663_v62  ;;  %6139 = vrcp.f32 %v1598_v56  ;;  %v2549_v0 = vmul.f32 0.35355338, %v7360_v16  ;;  %v1649_v29 = vsub.f32 2.0, %v1633_v44 }
 0x7ae   :  { %v6134_v45 = vpop.eup %6133  ;;  %v1650_v2 = vsub.f32 2.0, %v1634_v34 }
 0x7af   :  { %v7491_v63 = vpop.xlane.xlu1 %1601  ;;  %4914 = vmatprep.mubr.f32.mxu1 %v1679_v30  ;;  %v7493_v4 = vpop.xlane.xlu0 %1603  ;;  %v1635_v21 = vmul.f32 %v6134_v45, %v1592_v43  ;;  %v2548_v30 = vmul.f32 0.35355338, %v7362_v8  ;;  %v7502_v16 = vadd.f32 %v7262_v55, %v2549_v0  ;;  %v1664_v43 = vmul.f32 %v6128_v3, %v1648_v50 }
 0x7b0   :  { %v6136_v38 = vpop.eup %6135  ;;  %v7513_v3 = vadd.f32 %v7286_v35, %v2553_v26  ;;  %v1666_v50 = vmul.f32 %v6132_v17, %v1650_v2  ;;  %v8152_v2 = vld [vmem:[#allocation48_spill] sm:$0xff] }
 0x7b1   :  { %v1636_v61 = vmul.f32 %v6136_v38, %v1594_v57  ;;  %v1651_v22 = vsub.f32 2.0, %v1635_v21  ;;  %v7509_v8 = vadd.f32 %v7267_v58, %v2548_v30  ;;  %v2555_v57 = vmul.f32 0.35355338, %v7372_v18 }
 0x7b2   :  { %v2551_v18 = vmul.f32 0.35355338, %v7364_v46  ;;  %v1682_v17 = vmul.f32 %v7407_v9, %v1666_v50  ;;  %v8153_v46 = vld [vmem:[#allocation35_spill] sm:$0xff]  ;;  %v8156_v9 = vld [vmem:[#allocation50_spill] sm:$0xff] }
 0x7b3   :  { %v1600_v32 = vpop.xlane.xlu1 %1599  ;;  %v7495_v19 = vpop.xlane.xlu0 %1607  ;;  %v1667_v35 = vmul.f32 %v6134_v45, %v1651_v22 }
 0x7b4   :  { %6141 = vrcp.f32 %v1600_v32  ;;  %v7537_v45 = vadd.f32 %v8153_v46, %v2551_v18  ;;  %v8164_v18 = vld [vmem:[#allocation54_spill] sm:$0xff] }
 0x7b5   :  { %6143 = vrcp.f32 %v7491_v63 }
 0x7b6   :  { %6145 = vrcp.f32 %v7493_v4  ;;  %v6138_v62 = vpop.eup %6137 }
 0x7b7   :  { %v5874_v31 = vpop.permute.xlu1 %5873  ;;  %v5879_v27 = vpop.permute.xlu0 %5878  ;;  %v1637_v52 = vmul.f32 %v6138_v62, %v1596_v28  ;;  %v1680_v28 = vmul.f32 %v7400_v15, %v1664_v43  ;;  %v2557_v15 = vmul.f32 0.35355338, %v8152_v2  ;;  %v8158_v43 = vld [vmem:[#allocation47_spill] sm:$0xff]  ;;  %v2563_v2 = vmul.f32 0.35355338, %v8164_v18 }
 0x7b8   :  { %v5876_v24 = vunpack.i.h.bf16 %v5874_v31  ;;  %v5875_v40 = vunpack.i.l.bf16 %v5874_v31  ;;  %v5881_v49 = vunpack.i.h.bf16 %v5879_v27  ;;  %v5880_v51 = vunpack.i.l.bf16 %v5879_v27  ;;  %v6140_v41 = vpop.eup %6139 }
 0x7b9   :  { %v1665_v31 = vmul.f32 %v6130_v12, %v1649_v29  ;;  %v1652_v12 = vsub.f32 2.0, %v1636_v61  ;;  %v1638_v0 = vmul.f32 %v6140_v41, %v1598_v56  ;;  %v1653_v29 = vsub.f32 2.0, %v1637_v52 }
 0x7ba   :  { %v5514_v33 = vpack.c.bf16 %v5881_v49, %v5880_v51  ;;  %v5430_v44 = vpack.c.bf16 %v5876_v24, %v5875_v40  ;;  %v7524_v27 = vadd.f32 %v7279_v48, %v2550_v54  ;;  %v7527_v61 = vadd.f32 %v7298_v10, %v2555_v57  ;;  %v8154_v24 = vld [vmem:[#allocation46_spill] sm:$0xff]  ;;  %v8159_v54 = vld [vmem:[#allocation40_spill] sm:$0xff] }
 0x7bb   :  { %v1681_v58 = vmul.f32 %v7409_v6, %v1665_v31  ;;  %v1654_v52 = vsub.f32 2.0, %v1638_v0  ;;  %v1668_v6 = vmul.f32 %v6136_v38, %v1652_v12  ;;  %v1683_v48 = vmul.f32 %v7417_v7, %v1667_v35  ;;  %v8161_v0 = vld [vmem:[#allocation37_spill] sm:$0xff] }
 0x7bc   :  { %2582 = vmax.xlane.f32.xlu1 %v7502_v16  ;;  %5431 = vmatprep.subr.bf16.mxu1 %v5430_v44  ;;  %v1669_v10 = vmul.f32 %v6138_v62, %v1653_v29  ;;  %v2552_v40 = vmul.f32 0.35355338, %v8154_v24  ;;  %v2559_v38 = vmul.f32 0.35355338, %v8156_v9  ;;  %v2554_v31 = vmul.f32 0.35355338, %v8158_v43 }
 0x7bd   :  { %5516 = vmatprep.subr.msk.bf16.mxu0 %vm6824_vm2, %v5514_v33  ;;  %5433 = vmatpush3.bf16.msra.mxu1 %v5430_v44  ;;  %v1684_v51 = vmul.f32 %v7415_v23, %v1668_v6  ;;  %v1670_v30 = vmul.f32 %v6140_v41, %v1654_v52  ;;  %v8162_v29 = vld [vmem:[#allocation49_spill] sm:$0xff]  ;;  %6147 = vrcp.f32 %v7495_v19 }
 0x7be   :  { %v6142_v55 = vpop.eup %6141  ;;  %5519 = vmatpush3.bf16.xpose.msk.msra.mxu0 %vm6824_vm2, %v5514_v33  ;;  %v1685_v7 = vmul.f32 %v7425_v1, %v1669_v10  ;;  %v8157_v33 = vld [vmem:[#allocation36_spill] sm:$0xff]  ;;  %v7553_v57 = vadd.f32 %v8159_v54, %v2559_v38  ;;  %v7561_v50 = vadd.f32 %v8161_v0, %v2554_v31  ;;  %v8171_v10 = vld [vmem:[#allocation55_spill] sm:$0xff]  ;;  %v8172_v24 = vld [vmem:[#allocation45_spill] sm:$0xff] }
 0x7bf   :  { %v6144_v34 = vpop.eup %6143  ;;  %v1639_v21 = vmul.f32 %v6142_v55, %v1600_v32  ;;  %v7549_v44 = vadd.f32 %v8157_v33, %v2552_v40  ;;  %v1686_v41 = vmul.f32 %v7422_v60, %v1670_v30  ;;  %v2562_v46 = vmul.f32 0.35355338, %v8171_v10 }
 0x7c0   :  { %2590 = vmax.xlane.f32.xlu1 %v7513_v3  ;;  %2580 = vmax.xlane.f32.xlu0 %v7509_v8  ;;  %v6146_v59 = vpop.eup %6145  ;;  %v1640_v56 = vmul.f32 %v6144_v34, %v7491_v63  ;;  %v8155_v63 = vld [vmem:[#allocation38_spill] sm:$0xff] }
 0x7c1   :  { %4915 = vmatmul.mubr.f32.vlgmr.msra.gmra.mrb[16].mxu1 %v1680_v28  ;;  %v1641_v22 = vmul.f32 %v6146_v59, %v7493_v4  ;;  %v1655_v32 = vsub.f32 2.0, %v1639_v21  ;;  %v7541_v49 = vadd.f32 %v8155_v63, %v2557_v15  ;;  %v8160_v28 = vld [vmem:[#allocation52_spill] sm:$0xff]  ;;  %v2556_v21 = vmul.f32 0.35355338, %v8162_v29  ;;  %v8166_v15 = vld [vmem:[#allocation51_spill] sm:$0xff] }
 0x7c2   :  { %4917 = vmatprep.mubr.f32.mxu1 %v1681_v58  ;;  %v1656_v4 = vsub.f32 2.0, %v1640_v56  ;;  %v2561_v23 = vmul.f32 0.35355338, %v8160_v28  ;;  %v8163_v58 = vld [vmem:[#allocation42_spill] sm:$0xff]  ;;  %v2558_v52 = vmul.f32 0.35355338, %v8166_v15  ;;  %v7592_v40 = vadd.f32 %v8172_v24, %v2562_v46 }
 0x7c3   :  { %v1657_v26 = vsub.f32 2.0, %v1641_v22  ;;  %v1671_v62 = vmul.f32 %v6142_v55, %v1655_v32  ;;  %v8167_v56 = vld [vmem:[#allocation44_spill] sm:$0xff]  ;;  %v8169_v22 = vld [vmem:[#allocation53_spill] sm:$0xff] }
 0x7c4   :  { %2594 = vmax.xlane.f32.xlu1 %v7527_v61  ;;  %2584 = vmax.xlane.f32.xlu0 %v7524_v27  ;;  %v1672_v12 = vmul.f32 %v6144_v34, %v1656_v4  ;;  %v7565_v35 = vadd.f32 %v8163_v58, %v2561_v23  ;;  %v8165_v34 = vld [vmem:[#allocation39_spill] sm:$0xff]  ;;  %v2560_v32 = vmul.f32 0.35355338, %v8169_v22 }
 0x7c5   :  { %4918 = vmatmul.mubr.f32.gmra.mrb[18].mxu1 %v1682_v17  ;;  %v1687_v1 = vmul.f32 %v7434_v13, %v1671_v62  ;;  %v1673_v55 = vmul.f32 %v6146_v59, %v1657_v26  ;;  %v7573_v59 = vadd.f32 %v8165_v34, %v2556_v21  ;;  %v7577_v17 = vadd.f32 %v8167_v56, %v2563_v2 }
 0x7c6   :  { %4920 = vmatprep.mubr.f32.mxu1 %v1683_v48  ;;  %v1688_v60 = vmul.f32 %v7428_v47, %v1672_v12  ;;  %v8168_v47 = vld [vmem:[#allocation41_spill] sm:$0xff] }
 0x7c7   :  { %v1689_v13 = vmul.f32 %v7430_v14, %v1673_v55  ;;  %v7582_v6 = vadd.f32 %v8168_v47, %v2558_v52  ;;  %v8170_v14 = vld [vmem:[#allocation43_spill] sm:$0xff]  ;;  %v6148_v38 = vpop.eup %6147 }
 0x7c8   :  { %2598 = vmax.xlane.f32.xlu1 %v7541_v49  ;;  %2586 = vmax.xlane.f32.xlu0 %v7537_v45  ;;  %v7587_v48 = vadd.f32 %v8170_v14, %v2560_v32 }
 0x7c9   :  { %4921 = vmatmul.mubr.f32.gmra.mrb[20].mxu1 %v1684_v51 }
 0x7ca   :  { %4923 = vmatprep.mubr.f32.mxu1 %v1685_v7  ;;  %v1643_v7 = vmul.f32 %v6148_v38, %v7495_v19 }
 0x7cc   :  { %2602 = vmax.xlane.f32.xlu1 %v7553_v57  ;;  %2588 = vmax.xlane.f32.xlu0 %v7549_v44  ;;  %v1659_v54 = vsub.f32 2.0, %v1643_v7 }
 0x7cd   :  { %4924 = vmatmul.mubr.f32.gmra.mrb[22].mxu1 %v1686_v41 }
 0x7ce   :  { %4926 = vmatprep.mubr.f32.mxu1 %v1687_v1 }
 0x7d0   :  { %2606 = vmax.xlane.f32.xlu1 %v7565_v35  ;;  %2592 = vmax.xlane.f32.xlu0 %v7561_v50 }
 0x7d1   :  { %4927 = vmatmul.mubr.f32.gmra.mrb[24].mxu1 %v1688_v60  ;;  %v1675_v60 = vmul.f32 %v6148_v38, %v1659_v54 }
 0x7d2   :  { %4929 = vmatprep.mubr.f32.mxu1 %v1689_v13 }
 0x7d3   :  { %v1691_v32 = vmul.f32 %v7436_v39, %v1675_v60  ;;  %v8175_v39 = vld [vmem:[#allocation58_spill] sm:$0xff] }
 0x7d4   :  { %2610 = vmax.xlane.f32.xlu1 %v7577_v17  ;;  %2596 = vmax.xlane.f32.xlu0 %v7573_v59 }
 0x7d8   :  { %2600 = vmax.xlane.f32.xlu0 %v7582_v6 }
 0x7dc   :  { %2604 = vmax.xlane.f32.xlu0 %v7587_v48 }
 0x7e0   :  { %2608 = vmax.xlane.f32.xlu0 %v7592_v40 }
 0x7e5   :  { %5918 = vrot.lane.b32.xlu1 %v6738_v25, %s6451_s27 }
 0x7e8   :  { %v1606_v63 = vpop.xlane.xlu1 %1605  ;;  %v1612_v9 = vpop.xlane.xlu0 %1611 }
 0x7e9   :  { %6149 = vrcp.f32 %v1606_v63  ;;  %5928 = vrot.lane.b32.xlu1 %v6758_v42, %s6451_s27 }
 0x7ea   :  { %6151 = vrcp.f32 %v1612_v9 }
 0x7ec   :  { %v1610_v4 = vpop.xlane.xlu1 %1609  ;;  %v5884_v51 = vpop.permute.xlu0 %5883 }
 0x7ed   :  { %6153 = vrcp.f32 %v1610_v4  ;;  %v5886_v30 = vunpack.i.h.bf16 %v5884_v51  ;;  %v5885_v26 = vunpack.i.l.bf16 %v5884_v51  ;;  %5933 = vrot.lane.b32.xlu1 %v6768_v36, %s6451_s27 }
 0x7ef   :  { %v5520_v62 = vpack.c.bf16 %v5886_v30, %v5885_v26  ;;  %v8174_v30 = vld [vmem:[#allocation56_spill] sm:$0xff] }
 0x7f0   :  { %v1614_v33 = vpop.xlane.xlu1 %1613  ;;  %v5894_v43 = vpop.permute.xlu0 %5893 }
 0x7f1   :  { %6155 = vrcp.f32 %v1614_v33  ;;  %5943 = vrot.lane.b32.xlu1 %v6788_v37, %s6451_s27  ;;  %5522 = vmatprep.subr.msk.bf16.mxu0 %vm6824_vm2, %v5520_v62  ;;  %v5896_v41 = vunpack.i.h.bf16 %v5894_v43  ;;  %v5895_v55 = vunpack.i.l.bf16 %v5894_v43 }
 0x7f2   :  { %5525 = vmatpush3.bf16.xpose.msk.msra.mxu0 %vm6824_vm2, %v5520_v62 }
 0x7f3   :  { %v6150_v31 = vpop.eup %6149  ;;  %v5532_v52 = vpack.c.bf16 %v5896_v41, %v5895_v55 }
 0x7f4   :  { %v6152_v28 = vpop.eup %6151  ;;  %v1642_v23 = vmul.f32 %v6150_v31, %v1606_v63  ;;  %v5889_v12 = vpop.permute.xlu1 %5888 }
 0x7f5   :  { %v5899_v19 = vpop.permute.xlu0 %5898  ;;  %v1645_v1 = vmul.f32 %v6152_v28, %v1612_v9  ;;  %v5891_v0 = vunpack.i.h.bf16 %v5889_v12  ;;  %v5890_v29 = vunpack.i.l.bf16 %v5889_v12 }
 0x7f6   :  { %v1658_v21 = vsub.f32 2.0, %v1642_v23  ;;  %5923 = vrot.lane.b32.xlu0 %v6748_v20, %s6451_s27  ;;  %v5901_v63 = vunpack.i.h.bf16 %v5899_v19  ;;  %v5900_v9 = vunpack.i.l.bf16 %v5899_v19  ;;  %v1888_v19 = vld [vmem:[#allocation7 + $0x8] sm:$0xff] }
 0x7f7   :  { %v6154_v58 = vpop.eup %6153  ;;  %v1661_v18 = vsub.f32 2.0, %v1645_v1  ;;  %v5526_v2 = vpack.c.bf16 %v5891_v0, %v5890_v29  ;;  %4938 = vmatprep.subr.mxu1 %v1888_v19  ;;  %v7637_v0 = vld [vmem:[#allocation7] sm:$0xff] }
 0x7f8   :  { %v1674_v13 = vmul.f32 %v6150_v31, %v1658_v21  ;;  %v1644_v34 = vmul.f32 %v6154_v58, %v1610_v4  ;;  %v8173_v4 = vld [vmem:[#allocation57_spill] sm:$0xff]  ;;  %v5538_v62 = vpack.c.bf16 %v5901_v63, %v5900_v9  ;;  %v5914_v12 = vpop.permute.xlu1 %5913  ;;  %4939 = vmatpush3.msra.mxu1 %v1888_v19 }
 0x7f9   :  { %v5904_v15 = vpop.permute.xlu0 %5903  ;;  %5528 = vmatprep.subr.msk.bf16.mxu0 %vm6824_vm2, %v5526_v2  ;;  %v1677_v14 = vmul.f32 %v6152_v28, %v1661_v18  ;;  %v5916_v1 = vunpack.i.h.bf16 %v5914_v12  ;;  %v5915_v55 = vunpack.i.l.bf16 %v5914_v12  ;;  %4964 = vmatprep.subr.mxu1 %v7637_v0 }
 0x7fa   :  { %v1660_v56 = vsub.f32 2.0, %v1644_v34  ;;  %5938 = vrot.lane.b32.xlu0 %v6778_v53, %s6451_s27  ;;  %5531 = vmatpush3.bf16.xpose.msk.msra.mxu0 %vm6824_vm2, %v5526_v2  ;;  %v1690_v47 = vmul.f32 %v7448_v11, %v1674_v13  ;;  %v5906_v43 = vunpack.i.h.bf16 %v5904_v15  ;;  %v5905_v31 = vunpack.i.l.bf16 %v5904_v15 }
 0x7fb   :  { %v6156_v22 = vpop.eup %6155  ;;  %5534 = vmatprep.subr.msk.bf16.mxu0 %vm6824_vm2, %v5532_v52  ;;  %v1693_v26 = vmul.f32 %v8174_v30, %v1677_v14  ;;  %v5556_v29 = vpack.c.bf16 %v5916_v1, %v5915_v55 }
 0x7fc   :  { %v1676_v10 = vmul.f32 %v6154_v58, %v1660_v56  ;;  %v1646_v46 = vmul.f32 %v6156_v22, %v1614_v33  ;;  %4930 = vmatmul.mubr.f32.gmra.mrb[26].mxu1 %v1690_v47  ;;  %v5544_v54 = vpack.c.bf16 %v5906_v43, %v5905_v31  ;;  %v3178_v21 = vpop.permute.xlu1 %3177 }
 0x7fd   :  { %v5909_v24 = vpop.permute.xlu0 %5908  ;;  %4932 = vmatprep.mubr.f32.mxu1 %v1691_v32 }
 0x7fe   :  { %v1662_v38 = vsub.f32 2.0, %v1646_v46  ;;  %v1692_v51 = vmul.f32 %v8173_v4, %v1676_v10  ;;  %v5911_v28 = vunpack.i.h.bf16 %v5909_v24  ;;  %v5910_v23 = vunpack.i.l.bf16 %v5909_v24 }
 0x800   :  { %v1678_v11 = vmul.f32 %v6156_v22, %v1662_v38  ;;  %4933 = vmatmul.mubr.f32.gmra.mrb[28].mxu1 %v1692_v51  ;;  %v5550_v41 = vpack.c.bf16 %v5911_v28, %v5910_v23  ;;  %v3182_v18 = vpop.permute.xlu1 %3181 }
 0x801   :  { %v3176_v7 = vpop.permute.xlu0 %3175  ;;  %4935 = vmatprep.mubr.f32.mxu1 %v1693_v26 }
 0x802   :  { %5160 = vmatprep.mubr.msk.f32.mxu0 %vm570_vm1, %v3176_v7  ;;  %5537 = vmatpush3.bf16.xpose.msk.msra.mxu0 %vm6824_vm2, %v5532_v52  ;;  %v1694_v33 = vmul.f32 %v8175_v39, %v1678_v11 }
 0x803   :  { %5540 = vmatprep.subr.msk.bf16.mxu0 %vm6824_vm2, %v5538_v62 }
 0x804   :  { %4936 = vmatmul.mubr.f32.gmra.mrb[30].mxu1 %v1694_v33  ;;  %v3186_v60 = vpop.permute.xlu1 %3185 }
 0x805   :  { %v3180_v58 = vpop.permute.xlu0 %3179 }
 0x808   :  { %v3190_v34 = vpop.permute.xlu1 %3189 }
 0x809   :  { %v3184_v2 = vpop.permute.xlu0 %3183 }
 0x80a   :  { %5543 = vmatpush3.bf16.xpose.msk.msra.mxu0 %vm6824_vm2, %v5538_v62 }
 0x80b   :  { %5546 = vmatprep.subr.msk.bf16.mxu0 %vm6824_vm2, %v5544_v54 }
 0x80c   :  { %v3194_v52 = vpop.permute.xlu1 %3193 }
 0x80d   :  { %v3188_v13 = vpop.permute.xlu0 %3187 }
 0x810   :  { %v3198_v56 = vpop.permute.xlu1 %3197 }
 0x811   :  { %v3192_v15 = vpop.permute.xlu0 %3191 }
 0x812   :  { %5549 = vmatpush3.bf16.xpose.msk.msra.mxu0 %vm6824_vm2, %v5544_v54 }
 0x813   :  { %5552 = vmatprep.subr.msk.bf16.mxu0 %vm6824_vm2, %v5550_v41 }
 0x814   :  { %v3202_v22 = vpop.permute.xlu1 %3201 }
 0x815   :  { %v3196_v5 = vpop.permute.xlu0 %3195 }
 0x818   :  { %v3206_v14 = vpop.permute.xlu1 %3205 }
 0x819   :  { %v3200_v47 = vpop.permute.xlu0 %3199 }
 0x81a   :  { %5555 = vmatpush3.bf16.xpose.msk.msra.mxu0 %vm6824_vm2, %v5550_v41 }
 0x81b   :  { %5558 = vmatprep.subr.msk.bf16.mxu0 %vm6824_vm2, %v5556_v29 }
 0x81d   :  { %v3204_v32 = vpop.permute.xlu0 %3203 }
 0x822   :  { %5561 = vmatpush3.bf16.xpose.msk.msra.mxu0 %vm6824_vm2, %v5556_v29 }
 0x829   :  { %5161 = vmatmul.mubr.msk.f32.vlgmr.msra.gmra.mrb[64].mxu0 %vm570_vm1, %v3178_v21 }
 0x82a   :  { %5163 = vmatprep.mubr.msk.f32.mxu0 %vm570_vm1, %v3180_v58 }
 0x82d   :  { %5164 = vmatmul.mubr.msk.f32.gmra.mrb[66].mxu0 %vm570_vm1, %v3182_v18 }
 0x82e   :  { %5166 = vmatprep.mubr.msk.f32.mxu0 %vm570_vm1, %v3184_v2 }
 0x831   :  { %5167 = vmatmul.mubr.msk.f32.gmra.mrb[68].mxu0 %vm570_vm1, %v3186_v60 }
 0x832   :  { %5169 = vmatprep.mubr.msk.f32.mxu0 %vm570_vm1, %v3188_v13 }
 0x835   :  { %5170 = vmatmul.mubr.msk.f32.gmra.mrb[70].mxu0 %vm570_vm1, %v3190_v34 }
 0x836   :  { %5172 = vmatprep.mubr.msk.f32.mxu0 %vm570_vm1, %v3192_v15 }
 0x839   :  { %5173 = vmatmul.mubr.msk.f32.gmra.mrb[72].mxu0 %vm570_vm1, %v3194_v52 }
 0x83a   :  { %5175 = vmatprep.mubr.msk.f32.mxu0 %vm570_vm1, %v3196_v5 }
 0x83d   :  { %5176 = vmatmul.mubr.msk.f32.gmra.mrb[74].mxu0 %vm570_vm1, %v3198_v56 }
 0x83e   :  { %5178 = vmatprep.mubr.msk.f32.mxu0 %vm570_vm1, %v3200_v47 }
 0x841   :  { %5179 = vmatmul.mubr.msk.f32.gmra.mrb[76].mxu0 %vm570_vm1, %v3202_v22 }
 0x842   :  { %5181 = vmatprep.mubr.msk.f32.mxu0 %vm570_vm1, %v3204_v32  ;;  %v8176_v32 = vld [vmem:[#allocation16_spill] sm:$0xff] }
 0x845   :  { %5182 = vmatmul.mubr.msk.f32.gmra.mrb[78].mxu0 %vm570_vm1, %v3206_v14 }
 0x849   :  { %v2583_v10 = vpop.xlane.xlu1 %2582 }
 0x84a   :  { %v2613_v46 = vsub.f32 %v7502_v16, %v2583_v10  ;;  %v8177_v10 = vld [vmem:[#allocation18_spill] sm:$0xff] }
 0x84c   :  { %v2630_v24 = vmul.f32 1.442695, %v2613_v46 }
 0x84d   :  { %v2581_v63 = vpop.xlane.xlu0 %2580  ;;  %v2591_v38 = vpop.xlane.xlu1 %2590 }
 0x84e   :  { %6157 = vpow2.f32 %v2630_v24  ;;  %v2612_v9 = vsub.f32 %v7509_v8, %v2581_v63  ;;  %v2617_v30 = vsub.f32 %v7513_v3, %v2591_v38 }
 0x850   :  { %v2628_v4 = vmul.f32 1.442695, %v2612_v9  ;;  %v2638_v62 = vmul.f32 1.442695, %v2617_v30 }
 0x851   :  { %v2585_v51 = vpop.xlane.xlu0 %2584  ;;  %v2595_v33 = vpop.xlane.xlu1 %2594 }
 0x852   :  { %v2614_v26 = vsub.f32 %v7524_v27, %v2585_v51  ;;  %6159 = vpow2.f32 %v2628_v4  ;;  %v2619_v3 = vsub.f32 %v7527_v61, %v2595_v33 }
 0x854   :  { %v2632_v11 = vmul.f32 1.442695, %v2614_v26  ;;  %v2642_v23 = vmul.f32 1.442695, %v2619_v3 }
 0x855   :  { %v2587_v7 = vpop.xlane.xlu0 %2586  ;;  %v2599_v56 = vpop.xlane.xlu1 %2598 }
 0x856   :  { %v2615_v39 = vsub.f32 %v7537_v45, %v2587_v7  ;;  %6161 = vpow2.f32 %v2632_v11  ;;  %v2621_v9 = vsub.f32 %v7541_v49, %v2599_v56  ;;  %v8179_v56 = vld [vmem:[#allocation19_spill] sm:$0xff] }
 0x857   :  { %6163 = vpow2.f32 %v2638_v62 }
 0x858   :  { %v7666_v16 = vpop.eup %6157  ;;  %v2634_v43 = vmul.f32 1.442695, %v2615_v39  ;;  %v2646_v30 = vmul.f32 1.442695, %v2621_v9  ;;  %v8181_v9 = vld [vmem:[#allocation21_spill] sm:$0xff] }
 0x859   :  { %2662 = vadd.xlane.f32.xlu0 %v7666_v16  ;;  %v2589_v8 = vpop.xlane.xlu0 %2588  ;;  %v2603_v47 = vpop.xlane.xlu1 %2602 }
 0x85a   :  { %v2616_v31 = vsub.f32 %v7549_v44, %v2589_v8  ;;  %6165 = vpow2.f32 %v2634_v43  ;;  %v2623_v26 = vsub.f32 %v7553_v57, %v2603_v47 }
 0x85c   :  { %v2636_v27 = vmul.f32 1.442695, %v2616_v31  ;;  %v7671_v54 = vpop.eup %6159  ;;  %v2650_v49 = vmul.f32 1.442695, %v2623_v26 }
 0x85d   :  { %v2593_v28 = vpop.xlane.xlu0 %2592  ;;  %2660 = vadd.xlane.f32.xlu0 %v7671_v54  ;;  %v2607_v22 = vpop.xlane.xlu1 %2606 }
 0x85e   :  { %v2618_v45 = vsub.f32 %v7561_v50, %v2593_v28  ;;  %6167 = vpow2.f32 %v2636_v27  ;;  %v2625_v62 = vsub.f32 %v7565_v35, %v2607_v22  ;;  %v8180_v22 = vld [vmem:[#allocation22_spill] sm:$0xff] }
 0x85f   :  { %6169 = vpow2.f32 %v2642_v23 }
 0x860   :  { %v7675_v41 = vpop.eup %6161  ;;  %v2640_v19 = vmul.f32 1.442695, %v2618_v45  ;;  %v2654_v57 = vmul.f32 1.442695, %v2625_v62 }
 0x861   :  { %v2597_v12 = vpop.xlane.xlu0 %2596  ;;  %2664 = vadd.xlane.f32.xlu0 %v7675_v41  ;;  %v7679_v61 = vpop.eup %6163 }
 0x862   :  { %v2620_v44 = vsub.f32 %v7573_v59, %v2597_v12  ;;  %6171 = vpow2.f32 %v2640_v19  ;;  %v2611_v14 = vpop.xlane.xlu1 %2610 }
 0x864   :  { %v2644_v1 = vmul.f32 1.442695, %v2620_v44  ;;  %v7681_v55 = vpop.eup %6165 }
 0x865   :  { %v2601_v29 = vpop.xlane.xlu0 %2600  ;;  %2670 = vadd.xlane.f32.xlu0 %v7679_v61  ;;  %2666 = vadd.xlane.f32.xlu1 %v7681_v55 }
 0x866   :  { %v2622_v50 = vsub.f32 %v7582_v6, %v2601_v29  ;;  %6173 = vpow2.f32 %v2644_v1  ;;  %v5919_v46 = vpop.permute.xlu1 %5918 }
 0x867   :  { %v5921_v24 = vunpack.i.h.bf16 %v5919_v46  ;;  %v5920_v63 = vunpack.i.l.bf16 %v5919_v46 }
 0x868   :  { %v2648_v21 = vmul.f32 1.442695, %v2622_v50  ;;  %v7686_v58 = vpop.eup %6167 }
 0x869   :  { %v2605_v18 = vpop.xlane.xlu0 %2604  ;;  %2668 = vadd.xlane.f32.xlu0 %v7686_v58  ;;  %v7690_v60 = vpop.eup %6169  ;;  %v5482_v51 = vpack.c.bf16 %v5921_v24, %v5920_v63 }
 0x86a   :  { %6175 = vpow2.f32 %v2648_v21  ;;  %v2624_v59 = vsub.f32 %v7587_v48, %v2605_v18  ;;  %v5929_v21 = vpop.permute.xlu1 %5928 }
 0x86c   :  { %v2652_v2 = vmul.f32 1.442695, %v2624_v59  ;;  %v7694_v6 = vpop.eup %6171 }
 0x86d   :  { %v2609_v13 = vpop.xlane.xlu0 %2608  ;;  %2674 = vadd.xlane.f32.xlu0 %v7690_v60 }
 0x86e   :  { %6177 = vpow2.f32 %v2652_v2  ;;  %v2626_v34 = vsub.f32 %v7592_v40, %v2609_v13  ;;  %v8178_v2 = vld [vmem:[#allocation20_spill] sm:$0xff]  ;;  %v5931_v13 = vunpack.i.h.bf16 %v5929_v21  ;;  %v5934_v47 = vpop.permute.xlu1 %5933 }
 0x86f   :  { %v5936_v46 = vunpack.i.h.bf16 %v5934_v47  ;;  %v5935_v24 = vunpack.i.l.bf16 %v5934_v47 }
 0x870   :  { %v2656_v15 = vmul.f32 1.442695, %v2626_v34  ;;  %v7696_v52 = vpop.eup %6173  ;;  %v5930_v34 = vunpack.i.l.bf16 %v5929_v21  ;;  %v8192_v21 = vld [vmem:[#allocation34_spill] sm:$0xff] }
 0x871   :  { %2672 = vadd.xlane.f32.xlu0 %v7694_v6  ;;  %2676 = vadd.xlane.f32.xlu1 %v7696_v52  ;;  %v5924_v1 = vpop.permute.xlu0 %5923 }
 0x872   :  { %6179 = vpow2.f32 %v2656_v15  ;;  %v5926_v18 = vunpack.i.h.bf16 %v5924_v1  ;;  %v5925_v59 = vunpack.i.l.bf16 %v5924_v1  ;;  %v8191_v1 = vld [vmem:[#allocation31_spill] sm:$0xff] }
 0x873   :  { %6181 = vpow2.f32 %v2646_v30 }
 0x874   :  { %v7700_v48 = vpop.eup %6175  ;;  %6183 = vpow2.f32 %v2650_v49  ;;  %v5486_v15 = vpack.c.bf16 %v5926_v18, %v5925_v59  ;;  %v8184_v49 = vld [vmem:[#allocation26_spill] sm:$0xff]  ;;  %v8193_v59 = vld [vmem:[#allocation33_spill] sm:$0xff] }
 0x875   :  { %2680 = vadd.xlane.f32.xlu1 %v7700_v48  ;;  %6185 = vpow2.f32 %v2654_v57  ;;  %v5939_v63 = vpop.permute.xlu0 %5938  ;;  %v8185_v57 = vld [vmem:[#allocation25_spill] sm:$0xff] }
 0x876   :  { %v5941_v30 = vunpack.i.h.bf16 %v5939_v63  ;;  %v5940_v26 = vunpack.i.l.bf16 %v5939_v63 }
 0x878   :  { %v7703_v5 = vpop.eup %6177 }
 0x879   :  { %2684 = vadd.xlane.f32.xlu1 %v7703_v5 }
 0x87c   :  { %v7706_v40 = vpop.eup %6179 }
 0x87d   :  { %2688 = vadd.xlane.f32.xlu1 %v7706_v40  ;;  %v7726_v27 = vpop.eup %6181 }
 0x887   :  { %5948 = vrot.lane.b32.xlu0 %v8176_v32, %s6451_s27 }
 0x88e   :  { %5953 = vrot.lane.b32.xlu1 %v8177_v10, %s6451_s27 }
 0x894   :  { %v4916_v38 = vpop.f32.mrb[16].mxu1 }
 0x895   :  { %v1809_v4 = vpop.f32.mrb[17].mxu1 }
 0x896   :  { %4940 = vmatprep.mubr.msk.f32.mxu1 %vm570_vm1, %v1809_v4  ;;  %v5494_v4 = vpack.c.bf16 %v5936_v46, %v5935_v24  ;;  %v6301_v46 = vld [vmem:[#allocation8 + $0x8] sm:$0xff] }
 0x897   :  { %4941 = vmatmul.mubr.msk.f32.vlgmr.msra.gmra.mrb[32].mxu1 %vm570_vm1, %v4916_v38  ;;  %v8182_v38 = vld [vmem:[#allocation24_spill] sm:$0xff] }
 0x898   :  { %4965 = vmatpush3.msra.mxu1 %v7637_v0  ;;  %v4919_v11 = vpop.f32.mrb[18].mxu1  ;;  %v2627_v0 = vsub.f32 %v7577_v17, %v2611_v14  ;;  %v7731_v17 = vpop.eup %6183  ;;  %v5490_v14 = vpack.c.bf16 %v5931_v13, %v5930_v34 }
 0x899   :  { %5483 = vmatprep.subr.bf16.mxu1 %v5482_v51  ;;  %v1819_v7 = vpop.f32.mrb[19].mxu1  ;;  %v7734_v28 = vpop.eup %6185 }
 0x89a   :  { %4943 = vmatprep.mubr.msk.f32.mxu1 %vm570_vm1, %v1819_v7  ;;  %v2658_v31 = vmul.f32 1.442695, %v2627_v0  ;;  %v5944_v7 = vpop.permute.xlu1 %5943 }
 0x89b   :  { %4944 = vmatmul.mubr.msk.f32.gmra.mrb[34].mxu1 %vm570_vm1, %v4919_v11  ;;  %v8183_v11 = vld [vmem:[#allocation23_spill] sm:$0xff]  ;;  %v5946_v62 = vunpack.i.h.bf16 %v5944_v7 }
 0x89c   :  { %v4922_v39 = vpop.f32.mrb[20].mxu1  ;;  %6187 = vpow2.f32 %v2658_v31  ;;  %v8187_v31 = vld [vmem:[#allocation27_spill] sm:$0xff] }
 0x89d   :  { %v1829_v33 = vpop.f32.mrb[21].mxu1 }
 0x89e   :  { %4946 = vmatprep.mubr.msk.f32.mxu1 %vm570_vm1, %v1829_v33  ;;  %v5498_v33 = vpack.c.bf16 %v5941_v30, %v5940_v26 }
 0x89f   :  { %4947 = vmatmul.mubr.msk.f32.gmra.mrb[36].mxu1 %vm570_vm1, %v4922_v39  ;;  %v5945_v39 = vunpack.i.l.bf16 %v5944_v7 }
 0x8a0   :  { %v4925_v43 = vpop.f32.mrb[22].mxu1 }
 0x8a1   :  { %v1839_v8 = vpop.f32.mrb[23].mxu1 }
 0x8a2   :  { %4949 = vmatprep.mubr.msk.f32.mxu1 %vm570_vm1, %v1839_v8  ;;  %v5502_v8 = vpack.c.bf16 %v5946_v62, %v5945_v39  ;;  %v6303_v62 = vld [vmem:[#allocation8 + $0x10] sm:$0xff] }
 0x8a3   :  { %4950 = vmatmul.mubr.msk.f32.gmra.mrb[38].mxu1 %vm570_vm1, %v4925_v43  ;;  %v8186_v43 = vld [vmem:[#allocation28_spill] sm:$0xff] }
 0x8a4   :  { %v4928_v3 = vpop.f32.mrb[24].mxu1 }
 0x8a5   :  { %v1849_v35 = vpop.f32.mrb[25].mxu1 }
 0x8a6   :  { %4952 = vmatprep.mubr.msk.f32.mxu1 %vm570_vm1, %v1849_v35  ;;  %2678 = vadd.xlane.f32.xlu0 %v7726_v27  ;;  %v7737_v45 = vpop.eup %6187  ;;  %v8188_v35 = vld [vmem:[#allocation30_spill] sm:$0xff] }
 0x8a7   :  { %4953 = vmatmul.mubr.msk.f32.gmra.mrb[40].mxu1 %vm570_vm1, %v4928_v3 }
 0x8aa   :  { %2682 = vadd.xlane.f32.xlu0 %v7731_v17 }
 0x8ae   :  { %2686 = vadd.xlane.f32.xlu0 %v7734_v28 }
 0x8b2   :  { %2690 = vadd.xlane.f32.xlu0 %v7737_v45 }
 0x8cf   :  { %v4931_v23 = vpop.f32.mrb[26].mxu1 }
 0x8d0   :  { %v1859_v12 = vpop.f32.mrb[27].mxu1 }
 0x8d1   :  { %4955 = vmatprep.mubr.msk.f32.mxu1 %vm570_vm1, %v1859_v12 }
 0x8d2   :  { %4956 = vmatmul.mubr.msk.f32.gmra.mrb[42].mxu1 %vm570_vm1, %v4931_v23  ;;  %v8189_v23 = vld [vmem:[#allocation29_spill] sm:$0xff] }
 0x8d3   :  { %v4934_v19 = vpop.f32.mrb[28].mxu1 }
 0x8d4   :  { %v1869_v44 = vpop.f32.mrb[29].mxu1 }
 0x8d5   :  { %4958 = vmatprep.mubr.msk.f32.mxu1 %vm570_vm1, %v1869_v44 }
 0x8d6   :  { %4959 = vmatmul.mubr.msk.f32.gmra.mrb[44].mxu1 %vm570_vm1, %v4934_v19  ;;  %v8190_v19 = vld [vmem:[#allocation32_spill] sm:$0xff] }
 0x8d7   :  { %v4937_v29 = vpop.f32.mrb[30].mxu1 }
 0x8d8   :  { %v1879_v50 = vpop.f32.mrb[31].mxu1 }
 0x8d9   :  { %4961 = vmatprep.mubr.msk.f32.mxu1 %vm570_vm1, %v1879_v50 }
 0x8da   :  { %4962 = vmatmul.mubr.msk.f32.gmra.mrb[46].mxu1 %vm570_vm1, %v4937_v29 }
 0x8db   :  { %4966 = vmatprep.mubr.msk.f32.mxu1 %vm570_vm1, %v8178_v2 }
 0x8de   :  { %4967 = vmatmul.mubr.msk.f32.vlgmr.msra.gmra.mrb[32].mxu1 %vm570_vm1, %v8179_v56 }
 0x8df   :  { %5485 = vmatpush3.bf16.msra.mxu1 %v5482_v51  ;;  %4969 = vmatprep.mubr.msk.f32.mxu1 %vm570_vm1, %v8180_v22 }
 0x8e0   :  { %5487 = vmatprep.subr.bf16.mxu1 %v5486_v15 }
 0x8e2   :  { %4970 = vmatmul.mubr.msk.f32.gmra.mrb[34].mxu1 %vm570_vm1, %v8181_v9 }
 0x8e3   :  { %5489 = vmatpush3.bf16.msra.mxu1 %v5486_v15  ;;  %4972 = vmatprep.mubr.msk.f32.mxu1 %vm570_vm1, %v8182_v38  ;;  %v6302_v38 = vld [vmem:[#allocation8] sm:$0xff] }
 0x8e4   :  { %5491 = vmatprep.subr.bf16.mxu1 %v5490_v14 }
 0x8e6   :  { %v7756_v51 = vpop.xlane.xlu0 %2662  ;;  %4973 = vmatmul.mubr.msk.f32.gmra.mrb[36].mxu1 %vm570_vm1, %v8183_v11 }
 0x8e7   :  { %5493 = vmatpush3.bf16.msra.mxu1 %v5490_v14  ;;  %4975 = vmatprep.mubr.msk.f32.mxu1 %vm570_vm1, %v8184_v49 }
 0x8e8   :  { %5495 = vmatprep.subr.bf16.mxu1 %v5494_v4 }
 0x8ea   :  { %4976 = vmatmul.mubr.msk.f32.gmra.mrb[38].mxu1 %vm570_vm1, %v8185_v57  ;;  %v2661_v0 = vpop.xlane.xlu0 %2660 }
 0x8eb   :  { %5497 = vmatpush3.bf16.msra.mxu1 %v5494_v4  ;;  %4978 = vmatprep.mubr.msk.f32.mxu1 %vm570_vm1, %v8186_v43  ;;  %6189 = vrcp.f32 %v2661_v0 }
 0x8ec   :  { %5499 = vmatprep.subr.bf16.mxu1 %v5498_v33  ;;  %6191 = vrcp.f32 %v7756_v51 }
 0x8ee   :  { %4979 = vmatmul.mubr.msk.f32.gmra.mrb[40].mxu1 %vm570_vm1, %v8187_v31  ;;  %v7768_v3 = vpop.xlane.xlu0 %2664 }
 0x8ef   :  { %5501 = vmatpush3.bf16.msra.mxu1 %v5498_v33  ;;  %4981 = vmatprep.mubr.msk.f32.mxu1 %vm570_vm1, %v8188_v35  ;;  %6193 = vrcp.f32 %v7768_v3 }
 0x8f0   :  { %5503 = vmatprep.subr.bf16.mxu1 %v5502_v8 }
 0x8f2   :  { %4982 = vmatmul.mubr.msk.f32.gmra.mrb[42].mxu1 %vm570_vm1, %v8189_v23  ;;  %v7774_v12 = vpop.xlane.xlu0 %2670  ;;  %v2667_v13 = vpop.xlane.xlu1 %2666 }
 0x8f3   :  { %5505 = vmatpush3.bf16.msra.mxu1 %v5502_v8  ;;  %4984 = vmatprep.mubr.msk.f32.mxu1 %vm570_vm1, %v8190_v19  ;;  %6195 = vrcp.f32 %v2667_v13  ;;  %v6304_v19 = vld [vmem:[#allocation8 + $0x18] sm:$0xff] }
 0x8f5   :  { %v6190_v44 = vpop.eup %6189 }
 0x8f6   :  { %4985 = vmatmul.mubr.msk.f32.gmra.mrb[44].mxu1 %vm570_vm1, %v8191_v1  ;;  %v2708_v29 = vmul.f32 %v6190_v44, %v2661_v0  ;;  %v7780_v50 = vpop.xlane.xlu0 %2668  ;;  %v6192_v8 = vpop.eup %6191 }
 0x8f7   :  { %4987 = vmatprep.mubr.msk.f32.mxu1 %vm570_vm1, %v8192_v21  ;;  %6197 = vrcp.f32 %v7780_v50  ;;  %v2709_v21 = vmul.f32 %v6192_v8, %v7756_v51 }
 0x8f8   :  { %v2724_v18 = vsub.f32 2.0, %v2708_v29  ;;  %6199 = vrcp.f32 %v7774_v12 }
 0x8f9   :  { %v6194_v23 = vpop.eup %6193 }
 0x8fa   :  { %4988 = vmatmul.mubr.msk.f32.gmra.mrb[46].mxu1 %vm570_vm1, %v8193_v59  ;;  %v2740_v2 = vmul.f32 %v6190_v44, %v2724_v18  ;;  %v7786_v34 = vpop.xlane.xlu0 %2674 }
 0x8fc   :  { %v5162_v15 = vpop.f32.mrb[64].mxu0  ;;  %v2756_v22 = vmul.f32 %v7671_v54, %v2740_v2  ;;  %v2710_v2 = vmul.f32 %v6194_v23, %v7768_v3 }
 0x8fd   :  { %v3449_v56 = vmul.f32 0.35355338, %v5162_v15  ;;  %v3369_v47 = vpop.f32.mrb[65].mxu0  ;;  %v6196_v59 = vpop.eup %6195 }
 0x8fe   :  { %v3448_v14 = vmul.f32 0.35355338, %v3369_v47  ;;  %v7793_v63 = vpop.xlane.xlu1 %2676  ;;  %v7795_v9 = vpop.xlane.xlu0 %2672  ;;  %5078 = vmatprep.mubr.f32.mxu1 %v2756_v22  ;;  %v6305_v22 = vld [vmem:[#allocation8 + $0x20] sm:$0xff] }
 0x8ff   :  { %v7791_v24 = vadd.f32 %v6301_v46, %v3449_v56  ;;  %6201 = vrcp.f32 %v7795_v9  ;;  %v2725_v46 = vsub.f32 2.0, %v2709_v21 }
 0x900   :  { %v7797_v4 = vadd.f32 %v6302_v38, %v3448_v14  ;;  %v5165_v30 = vpop.f32.mrb[66].mxu0  ;;  %6203 = vrcp.f32 %v7786_v34 }
 0x901   :  { %3482 = vmax.xlane.f32.xlu0 %v7791_v24  ;;  %v3379_v26 = vpop.f32.mrb[67].mxu0  ;;  %v3451_v49 = vmul.f32 0.35355338, %v5165_v30  ;;  %6205 = vrcp.f32 %v7793_v63  ;;  %v6198_v56 = vpop.eup %6197  ;;  %v2711_v30 = vmul.f32 %v6196_v59, %v2667_v13 }
 0x902   :  { %v3450_v54 = vmul.f32 0.35355338, %v3379_v26  ;;  %3480 = vmax.xlane.f32.xlu1 %v7797_v4  ;;  %v7802_v11 = vpop.xlane.xlu1 %2680  ;;  %v5949_v7 = vpop.permute.xlu0 %5948 }
 0x903   :  { %v5951_v33 = vunpack.i.h.bf16 %v5949_v7  ;;  %v5950_v0 = vunpack.i.l.bf16 %v5949_v7  ;;  %v7811_v44 = vadd.f32 %v6304_v19, %v3451_v49  ;;  %v6200_v26 = vpop.eup %6199  ;;  %v2712_v7 = vmul.f32 %v6198_v56, %v7780_v50 }
 0x904   :  { %v7804_v39 = vadd.f32 %v6303_v62, %v3450_v54  ;;  %v5168_v57 = vpop.f32.mrb[68].mxu0  ;;  %v2726_v54 = vsub.f32 2.0, %v2710_v2  ;;  %v6306_v62 = vld [vmem:[#allocation8 + $0x28] sm:$0xff]  ;;  %v2741_v19 = vmul.f32 %v6192_v8, %v2725_v46  ;;  %v2727_v21 = vsub.f32 2.0, %v2711_v30 }
 0x905   :  { %v3389_v43 = vpop.f32.mrb[69].mxu0  ;;  %v5506_v31 = vpack.c.bf16 %v5951_v33, %v5950_v0  ;;  %8194 = vst [vmem:[#allocation15_spill] sm:$0xff] %v7811_v44  ;;  %v3453_v47 = vmul.f32 0.35355338, %v5168_v57  ;;  %v2713_v13 = vmul.f32 %v6200_v26, %v7774_v12  ;;  %v2728_v10 = vsub.f32 2.0, %v2712_v7 }
 0x906   :  { %3484 = vmax.xlane.f32.xlu0 %v7804_v39  ;;  %v7809_v35 = vpop.xlane.xlu1 %2684  ;;  %v3452_v1 = vmul.f32 0.35355338, %v3389_v43  ;;  %v2742_v2 = vmul.f32 %v6194_v23, %v2726_v54  ;;  %v2757_v12 = vmul.f32 %v7666_v16, %v2741_v19  ;;  %6207 = vrcp.f32 %v7802_v11 }
 0x907   :  { %5507 = vmatprep.subr.bf16.mxu1 %v5506_v31  ;;  %v7826_v33 = vadd.f32 %v6306_v62, %v3453_v47  ;;  %6209 = vrcp.f32 %v7809_v35 }
 0x908   :  { %v5171_v29 = vpop.f32.mrb[70].mxu0  ;;  %5509 = vmatpush3.bf16.msra.mxu1 %v5506_v31  ;;  %v7820_v14 = vadd.f32 %v6305_v22, %v3452_v1 }
 0x909   :  { %v3399_v18 = vpop.f32.mrb[71].mxu0  ;;  %v6202_v3 = vpop.eup %6201 }
 0x90a   :  { %3486 = vmax.xlane.f32.xlu0 %v7811_v44  ;;  %v7818_v15 = vpop.xlane.xlu1 %2688  ;;  %8195 = vst [vmem:[#allocation17_spill] sm:$0xff] %v7820_v14  ;;  %v3454_v57 = vmul.f32 0.35355338, %v3399_v18  ;;  %v6204_v50 = vpop.eup %6203  ;;  %v2714_v47 = vmul.f32 %v6202_v3, %v7795_v9  ;;  %v3455_v18 = vmul.f32 0.35355338, %v5171_v29  ;;  %v6308_v44 = vld [vmem:[#allocation8 + $0x50] sm:$0xff]  ;;  %v2744_v9 = vmul.f32 %v6198_v56, %v2728_v10 }
 0x90b   :  { %v6206_v62 = vpop.eup %6205  ;;  %v2715_v23 = vmul.f32 %v6204_v50, %v7786_v34 }
 0x90c   :  { %v7822_v51 = vpop.f32.mrb[72].mxu0  ;;  %v2716_v29 = vmul.f32 %v6206_v62, %v7793_v63  ;;  %v2760_v56 = vmul.f32 %v7686_v58, %v2744_v9 }
 0x90d   :  { %v3409_v38 = vpop.f32.mrb[73].mxu0 }
 0x90e   :  { %3488 = vmax.xlane.f32.xlu0 %v7820_v14  ;;  %v5954_v49 = vpop.permute.xlu1 %5953  ;;  %v6307_v14 = vld [vmem:[#allocation8 + $0x30] sm:$0xff]  ;;  %v3456_v16 = vmul.f32 0.35355338, %v3409_v38  ;;  %v2732_v10 = vsub.f32 2.0, %v2716_v29  ;;  %v3457_v38 = vmul.f32 0.35355338, %v7822_v51 }
 0x90f   :  { %v5956_v0 = vunpack.i.h.bf16 %v5954_v49  ;;  %v5955_v43 = vunpack.i.l.bf16 %v5954_v49  ;;  %v7833_v49 = vadd.f32 %v6307_v14, %v3454_v57  ;;  %v6309_v14 = vld [vmem:[#allocation8 + $0x38] sm:$0xff]  ;;  %v6310_v57 = vld [vmem:[#allocation8 + $0x60] sm:$0xff] }
 0x910   :  { %v7828_v31 = vpop.f32.mrb[74].mxu0  ;;  %v7843_v7 = vadd.f32 %v6309_v14, %v3455_v18 }
 0x911   :  { %v3419_v1 = vpop.f32.mrb[75].mxu0  ;;  %v5510_v22 = vpack.c.bf16 %v5956_v0, %v5955_v43  ;;  %v2743_v0 = vmul.f32 %v6196_v59, %v2727_v21  ;;  %v2729_v43 = vsub.f32 2.0, %v2713_v13  ;;  %v2731_v21 = vsub.f32 2.0, %v2715_v23 }
 0x912   :  { %v3458_v32 = vmul.f32 0.35355338, %v3419_v1  ;;  %3490 = vmax.xlane.f32.xlu0 %v7826_v33 }
 0x913   :  { %5511 = vmatprep.subr.bf16.mxu1 %v5510_v22  ;;  %v2745_v1 = vmul.f32 %v6200_v26, %v2729_v43  ;;  %v2747_v26 = vmul.f32 %v6204_v50, %v2731_v21  ;;  %v6314_v43 = vld [vmem:[#allocation8 + $0x58] sm:$0xff] }
 0x914   :  { %v7835_v8 = vadd.f32 %v6308_v44, %v3458_v32  ;;  %v5180_v46 = vpop.f32.mrb[76].mxu0  ;;  %5513 = vmatpush3.bf16.msra.mxu1 %v5510_v22  ;;  %v2730_v32 = vsub.f32 2.0, %v2714_v47  ;;  %v2758_v44 = vmul.f32 %v7675_v41, %v2742_v2  ;;  %v2759_v41 = vmul.f32 %v7681_v55, %v2743_v0  ;;  %v6311_v22 = vld [vmem:[#allocation8 + $0x40] sm:$0xff]  ;;  %v6312_v47 = vld [vmem:[#allocation8 + $0x70] sm:$0xff] }
 0x915   :  { %v3429_v30 = vpop.f32.mrb[77].mxu0  ;;  %v7852_v2 = vadd.f32 %v6311_v22, %v3456_v16  ;;  %v2761_v55 = vmul.f32 %v7679_v61, %v2745_v1  ;;  %v2763_v50 = vmul.f32 %v7690_v60, %v2747_v26  ;;  %v3461_v61 = vmul.f32 0.35355338, %v5180_v46  ;;  %v2965_v1 = vld [vmem:[#allocation7 + $0x10] sm:$0xff] }
 0x916   :  { %v3460_v54 = vmul.f32 0.35355338, %v3429_v30  ;;  %3492 = vmax.xlane.f32.xlu0 %v7833_v49  ;;  %3500 = vmax.xlane.f32.xlu1 %v7835_v8  ;;  %v2746_v63 = vmul.f32 %v6202_v3, %v2730_v32  ;;  %v2748_v3 = vmul.f32 %v6206_v62, %v2732_v10  ;;  %v3459_v30 = vmul.f32 0.35355338, %v7828_v31 }
 0x917   :  { %5079 = vmatmul.mubr.f32.vlgmr.msra.gmra.mrb[48].mxu1 %v2757_v12  ;;  %v6313_v12 = vld [vmem:[#allocation8 + $0x48] sm:$0xff]  ;;  %5102 = vmatprep.subr.mxu1 %v2965_v1 }
 0x918   :  { %v7845_v59 = vadd.f32 %v6310_v57, %v3460_v54  ;;  %v5183_v34 = vpop.f32.mrb[78].mxu0  ;;  %5081 = vmatprep.mubr.f32.mxu1 %v2758_v44  ;;  %v2762_v58 = vmul.f32 %v7694_v6, %v2746_v63  ;;  %v7860_v51 = vadd.f32 %v6313_v12, %v3457_v38  ;;  %v2764_v0 = vmul.f32 %v7696_v52, %v2748_v3  ;;  %v6315_v6 = vld [vmem:[#allocation8 + $0x68] sm:$0xff]  ;;  %v6316_v54 = vld [vmem:[#allocation8 + $0x78] sm:$0xff]  ;;  %v6208_v52 = vpop.eup %6207 }
 0x919   :  { %v3439_v19 = vpop.f32.mrb[79].mxu0  ;;  %v7866_v23 = vadd.f32 %v6314_v43, %v3459_v30  ;;  %v7869_v62 = vadd.f32 %v6315_v6, %v3461_v61  ;;  %v3463_v31 = vmul.f32 0.35355338, %v5183_v34  ;;  %v2718_v29 = vmul.f32 %v6208_v52, %v7802_v11  ;;  %v6210_v32 = vpop.eup %6209  ;;  %5103 = vmatpush3.msra.mxu1 %v2965_v1 }
 0x91a   :  { %v3462_v13 = vmul.f32 0.35355338, %v3439_v19  ;;  %3494 = vmax.xlane.f32.xlu0 %v7843_v7  ;;  %3504 = vmax.xlane.f32.xlu1 %v7845_v59 }
 0x91b   :  { %5082 = vmatmul.mubr.f32.gmra.mrb[50].mxu1 %v2759_v41  ;;  %v7872_v9 = vadd.f32 %v6316_v54, %v3463_v31  ;;  %v2734_v16 = vsub.f32 2.0, %v2718_v29 }
 0x91c   :  { %v7854_v18 = vadd.f32 %v6312_v47, %v3462_v13  ;;  %5084 = vmatprep.mubr.f32.mxu1 %v2760_v56 }
 0x91d   :  { %v2750_v13 = vmul.f32 %v6208_v52, %v2734_v16 }
 0x91e   :  { %3496 = vmax.xlane.f32.xlu0 %v7852_v2  ;;  %3508 = vmax.xlane.f32.xlu1 %v7854_v18 }
 0x91f   :  { %5085 = vmatmul.mubr.f32.gmra.mrb[52].mxu1 %v2761_v55  ;;  %v2766_v26 = vmul.f32 %v7700_v48, %v2750_v13 }
 0x920   :  { %5087 = vmatprep.mubr.f32.mxu1 %v2762_v58 }
 0x922   :  { %3498 = vmax.xlane.f32.xlu0 %v7860_v51 }
 0x923   :  { %5088 = vmatmul.mubr.f32.gmra.mrb[54].mxu1 %v2763_v50 }
 0x924   :  { %5090 = vmatprep.mubr.f32.mxu1 %v2764_v0 }
 0x926   :  { %3502 = vmax.xlane.f32.xlu0 %v7866_v23 }
 0x92a   :  { %3506 = vmax.xlane.f32.xlu0 %v7869_v62 }
 0x92e   :  { %3510 = vmax.xlane.f32.xlu0 %v7872_v9 }
 0x92f   :  { %5963 = vrot.lane.b32.xlu1 %v6748_v20, %s6452_s28  ;;  %v2720_v20 = vmul.f32 %v6210_v32, %v7809_v35 }
 0x931   :  { %v2736_v41 = vsub.f32 2.0, %v2720_v20 }
 0x933   :  { %5973 = vrot.lane.b32.xlu1 %v6768_v36, %s6452_s28  ;;  %v2679_v60 = vpop.xlane.xlu0 %2678  ;;  %v2752_v22 = vmul.f32 %v6210_v32, %v2736_v41 }
 0x934   :  { %6211 = vrcp.f32 %v2679_v60 }
 0x935   :  { %6213 = vrcp.f32 %v7818_v15  ;;  %v2768_v30 = vmul.f32 %v7703_v5, %v2752_v22 }
 0x937   :  { %v2683_v46 = vpop.xlane.xlu0 %2682 }
 0x938   :  { %6215 = vrcp.f32 %v2683_v46 }
 0x93b   :  { %v2687_v44 = vpop.xlane.xlu0 %2686 }
 0x93c   :  { %6217 = vrcp.f32 %v2687_v44 }
 0x93e   :  { %v6212_v14 = vpop.eup %6211 }
 0x93f   :  { %v6214_v57 = vpop.eup %6213  ;;  %v2717_v34 = vmul.f32 %v6212_v14, %v2679_v60  ;;  %v2691_v19 = vpop.xlane.xlu0 %2690 }
 0x940   :  { %6219 = vrcp.f32 %v2691_v19  ;;  %v2722_v10 = vmul.f32 %v6214_v57, %v7818_v15 }
 0x941   :  { %v2733_v36 = vsub.f32 2.0, %v2717_v34 }
 0x942   :  { %v6216_v21 = vpop.eup %6215  ;;  %v2738_v47 = vsub.f32 2.0, %v2722_v10 }
 0x943   :  { %v2749_v11 = vmul.f32 %v6212_v14, %v2733_v36  ;;  %v2719_v63 = vmul.f32 %v6216_v21, %v2683_v46 }
 0x944   :  { %5958 = vrot.lane.b32.xlu0 %v6738_v25, %s6452_s28  ;;  %v2754_v12 = vmul.f32 %v6214_v57, %v2738_v47 }
 0x945   :  { %v2735_v56 = vsub.f32 2.0, %v2719_v63  ;;  %v2765_v35 = vmul.f32 %v7726_v27, %v2749_v11 }
 0x946   :  { %v6218_v38 = vpop.eup %6217 }
 0x947   :  { %v2751_v55 = vmul.f32 %v6216_v21, %v2735_v56  ;;  %v2721_v3 = vmul.f32 %v6218_v38, %v2687_v44  ;;  %5091 = vmatmul.mubr.f32.gmra.mrb[56].mxu1 %v2765_v35 }
 0x948   :  { %5968 = vrot.lane.b32.xlu0 %v6758_v42, %s6452_s28  ;;  %5093 = vmatprep.mubr.f32.mxu1 %v2766_v26  ;;  %v2770_v42 = vmul.f32 %v7706_v40, %v2754_v12 }
 0x949   :  { %v2737_v15 = vsub.f32 2.0, %v2721_v3  ;;  %v2767_v58 = vmul.f32 %v7731_v17, %v2751_v55 }
 0x94a   :  { %v6220_v25 = vpop.eup %6219 }
 0x94b   :  { %v2753_v27 = vmul.f32 %v6218_v38, %v2737_v15  ;;  %v2723_v50 = vmul.f32 %v6220_v25, %v2691_v19  ;;  %5094 = vmatmul.mubr.f32.gmra.mrb[58].mxu1 %v2767_v58 }
 0x94c   :  { %5978 = vrot.lane.b32.xlu0 %v6778_v53, %s6452_s28  ;;  %5096 = vmatprep.mubr.f32.mxu1 %v2768_v30 }
 0x94d   :  { %v2739_v48 = vsub.f32 2.0, %v2723_v50  ;;  %v2769_v0 = vmul.f32 %v7734_v28, %v2753_v27 }
 0x94f   :  { %v2755_v43 = vmul.f32 %v6220_v25, %v2739_v48  ;;  %5097 = vmatmul.mubr.f32.gmra.mrb[60].mxu1 %v2769_v0 }
 0x950   :  { %5983 = vrot.lane.b32.xlu0 %v6788_v37, %s6452_s28  ;;  %5099 = vmatprep.mubr.f32.mxu1 %v2770_v42  ;;  %v8196_v37 = vld [vmem:[#allocation15_spill] sm:$0xff] }
 0x951   :  { %v2771_v5 = vmul.f32 %v7737_v45, %v2755_v43 }
 0x953   :  { %5100 = vmatmul.mubr.f32.gmra.mrb[62].mxu1 %v2771_v5 }
 0x98e   :  { %v3483_v17 = vpop.xlane.xlu0 %3482 }
 0x98f   :  { %v3513_v61 = vsub.f32 %v7791_v24, %v3483_v17  ;;  %v3481_v6 = vpop.xlane.xlu1 %3480 }
 0x990   :  { %v3512_v53 = vsub.f32 %v7797_v4, %v3481_v6  ;;  %v8197_v4 = vld [vmem:[#allocation17_spill] sm:$0xff] }
 0x991   :  { %v3530_v31 = vmul.f32 1.442695, %v3513_v61 }
 0x992   :  { %v3528_v28 = vmul.f32 1.442695, %v3512_v53 }
 0x993   :  { %6221 = vpow2.f32 %v3530_v31  ;;  %v3485_v54 = vpop.xlane.xlu0 %3484 }
 0x994   :  { %v3514_v40 = vsub.f32 %v7804_v39, %v3485_v54  ;;  %6223 = vpow2.f32 %v3528_v28 }
 0x996   :  { %v3532_v60 = vmul.f32 1.442695, %v3514_v40 }
 0x997   :  { %v3487_v52 = vpop.xlane.xlu0 %3486 }
 0x998   :  { %v3515_v46 = vsub.f32 %v8196_v37, %v3487_v52  ;;  %6225 = vpow2.f32 %v3532_v60 }
 0x99a   :  { %v3534_v29 = vmul.f32 1.442695, %v3515_v46 }
 0x99b   :  { %v3489_v45 = vpop.xlane.xlu0 %3488 }
 0x99c   :  { %6227 = vpow2.f32 %v3534_v29  ;;  %v3516_v44 = vsub.f32 %v8197_v4, %v3489_v45 }
 0x99d   :  { %v7904_v32 = vpop.eup %6221 }
 0x99e   :  { %3562 = vadd.xlane.f32.xlu1 %v7904_v32  ;;  %v7909_v16 = vpop.eup %6223  ;;  %v3536_v34 = vmul.f32 1.442695, %v3516_v44 }
 0x99f   :  { %v3491_v24 = vpop.xlane.xlu0 %3490 }
 0x9a0   :  { %v3517_v14 = vsub.f32 %v7826_v33, %v3491_v24 }
 0x9a2   :  { %v3538_v39 = vmul.f32 1.442695, %v3517_v14  ;;  %3560 = vadd.xlane.f32.xlu1 %v7909_v16  ;;  %v7913_v36 = vpop.eup %6225 }
 0x9a3   :  { %v3493_v20 = vpop.xlane.xlu0 %3492  ;;  %v3501_v57 = vpop.xlane.xlu1 %3500 }
 0x9a4   :  { %6229 = vpow2.f32 %v3538_v39  ;;  %v3518_v19 = vsub.f32 %v7833_v49, %v3493_v20  ;;  %v3522_v12 = vsub.f32 %v7835_v8, %v3501_v57 }
 0x9a5   :  { %6231 = vpow2.f32 %v3536_v34 }
 0x9a6   :  { %v7915_v1 = vpop.eup %6227  ;;  %3564 = vadd.xlane.f32.xlu1 %v7913_v36  ;;  %v3540_v21 = vmul.f32 1.442695, %v3518_v19  ;;  %v3548_v27 = vmul.f32 1.442695, %v3522_v12  ;;  %v8198_v19 = vld [vmem:[#allocation18_spill] sm:$0xff] }
 0x9a7   :  { %v3495_v13 = vpop.xlane.xlu0 %3494  ;;  %v3505_v33 = vpop.xlane.xlu1 %3504  ;;  %3566 = vadd.xlane.f32.xlu0 %v7915_v1 }
 0x9a8   :  { %v3519_v41 = vsub.f32 %v7843_v7, %v3495_v13  ;;  %v3524_v10 = vsub.f32 %v7845_v59, %v3505_v33  ;;  %6233 = vpow2.f32 %v3540_v21  ;;  %v8199_v21 = vld [vmem:[#allocation16_spill] sm:$0xff] }
 0x9aa   :  { %v3542_v11 = vmul.f32 1.442695, %v3519_v41  ;;  %v3552_v56 = vmul.f32 1.442695, %v3524_v10 }
 0x9ab   :  { %v3497_v63 = vpop.xlane.xlu0 %3496  ;;  %v3509_v49 = vpop.xlane.xlu1 %3508 }
 0x9ac   :  { %6235 = vpow2.f32 %v3542_v11  ;;  %v3526_v35 = vsub.f32 %v7854_v18, %v3509_v49  ;;  %v3520_v26 = vsub.f32 %v7852_v2, %v3497_v63 }
 0x9ad   :  { %6237 = vpow2.f32 %v3552_v56 }
 0x9ae   :  { %v7922_v38 = vpop.eup %6229  ;;  %v3556_v22 = vmul.f32 1.442695, %v3526_v35  ;;  %v3544_v15 = vmul.f32 1.442695, %v3520_v26 }
 0x9af   :  { %v3499_v47 = vpop.xlane.xlu0 %3498  ;;  %3570 = vadd.xlane.f32.xlu1 %v7922_v38  ;;  %v7927_v59 = vpop.eup %6231 }
 0x9b0   :  { %v3521_v7 = vsub.f32 %v7860_v51, %v3499_v47  ;;  %6239 = vpow2.f32 %v3556_v22  ;;  %v5964_v48 = vpop.permute.xlu1 %5963 }
 0x9b1   :  { %v5966_v42 = vunpack.i.h.bf16 %v5964_v48  ;;  %v5965_v43 = vunpack.i.l.bf16 %v5964_v48 }
 0x9b2   :  { %v3546_v55 = vmul.f32 1.442695, %v3521_v7  ;;  %v7931_v58 = vpop.eup %6233 }
 0x9b3   :  { %v3503_v3 = vpop.xlane.xlu0 %3502  ;;  %3568 = vadd.xlane.f32.xlu1 %v7927_v59  ;;  %v5566_v31 = vpack.c.bf16 %v5966_v42, %v5965_v43 }
 0x9b4   :  { %6241 = vpow2.f32 %v3546_v55  ;;  %v3523_v18 = vsub.f32 %v7866_v23, %v3503_v3  ;;  %v5974_v40 = vpop.permute.xlu1 %5973 }
 0x9b5   :  { %6243 = vpow2.f32 %v3544_v15  ;;  %v5976_v37 = vunpack.i.h.bf16 %v5974_v40  ;;  %v5975_v46 = vunpack.i.l.bf16 %v5974_v40 }
 0x9b6   :  { %v7933_v25 = vpop.eup %6235  ;;  %v3550_v51 = vmul.f32 1.442695, %v3523_v18 }
 0x9b7   :  { %v7936_v2 = vpop.xlane.xlu0 %3506  ;;  %3574 = vadd.xlane.f32.xlu0 %v7933_v25  ;;  %3572 = vadd.xlane.f32.xlu1 %v7931_v58  ;;  %v7940_v30 = vpop.eup %6237  ;;  %v5574_v24 = vpack.c.bf16 %v5976_v37, %v5975_v46 }
 0x9b8   :  { %6245 = vpow2.f32 %v3550_v51  ;;  %v3525_v41 = vsub.f32 %v7869_v62, %v7936_v2 }
 0x9b9   :  { %6247 = vpow2.f32 %v3548_v27 }
 0x9ba   :  { %v7945_v50 = vpop.eup %6239  ;;  %v3554_v63 = vmul.f32 1.442695, %v3525_v41 }
 0x9bb   :  { %3584 = vadd.xlane.f32.xlu0 %v7940_v30  ;;  %v7943_v23 = vpop.xlane.xlu0 %3510 }
 0x9bc   :  { %v3527_v49 = vsub.f32 %v7872_v9, %v7943_v23  ;;  %6249 = vpow2.f32 %v3554_v63 }
 0x9be   :  { %v7947_v8 = vpop.eup %6241  ;;  %v3558_v35 = vmul.f32 1.442695, %v3527_v49 }
 0x9bf   :  { %v5959_v0 = vpop.permute.xlu0 %5958  ;;  %3578 = vadd.xlane.f32.xlu1 %v7947_v8  ;;  %3588 = vadd.xlane.f32.xlu0 %v7945_v50  ;;  %v7951_v61 = vpop.eup %6243 }
 0x9c0   :  { %v5961_v5 = vunpack.i.h.bf16 %v5959_v0  ;;  %v5960_v17 = vunpack.i.l.bf16 %v5959_v0  ;;  %6251 = vpow2.f32 %v3558_v35 }
 0x9c2   :  { %v5562_v6 = vpack.c.bf16 %v5961_v5, %v5960_v17  ;;  %v7954_v60 = vpop.eup %6245 }
 0x9c3   :  { %v5969_v53 = vpop.permute.xlu0 %5968  ;;  %3576 = vadd.xlane.f32.xlu1 %v7951_v61  ;;  %v7957_v45 = vpop.eup %6247 }
 0x9c4   :  { %v5971_v28 = vunpack.i.h.bf16 %v5969_v53  ;;  %v5970_v54 = vunpack.i.l.bf16 %v5969_v53  ;;  %5563 = vmatprep.subr.bf16.mxu0 %v5562_v6  ;;  %5594 = vmatprep.subr.bf16.mxu1 %v5562_v6 }
 0x9c5   :  { %5565 = vmatpush3.bf16.msra.mxu0 %v5562_v6 }
 0x9c6   :  { %5567 = vmatprep.subr.bf16.mxu0 %v5566_v31  ;;  %v5570_v29 = vpack.c.bf16 %v5971_v28, %v5970_v54  ;;  %v7976_v9 = vpop.eup %6249 }
 0x9c7   :  { %v5979_v52 = vpop.permute.xlu0 %5978  ;;  %3582 = vadd.xlane.f32.xlu1 %v7954_v60 }
 0x9c8   :  { %v5981_v4 = vunpack.i.h.bf16 %v5979_v52  ;;  %v5980_v44 = vunpack.i.l.bf16 %v5979_v52 }
 0x9c9   :  { %5569 = vmatpush3.bf16.msra.mxu0 %v5566_v31 }
 0x9ca   :  { %5571 = vmatprep.subr.bf16.mxu0 %v5570_v29  ;;  %v5578_v39 = vpack.c.bf16 %v5981_v4, %v5980_v44  ;;  %v7979_v26 = vpop.eup %6251 }
 0x9cb   :  { %3580 = vadd.xlane.f32.xlu1 %v7957_v45  ;;  %v5984_v14 = vpop.permute.xlu0 %5983 }
 0x9cc   :  { %v5986_v20 = vunpack.i.h.bf16 %v5984_v14  ;;  %v5985_v57 = vunpack.i.l.bf16 %v5984_v14 }
 0x9cd   :  { %5573 = vmatpush3.bf16.msra.mxu0 %v5570_v29 }
 0x9ce   :  { %5575 = vmatprep.subr.bf16.mxu0 %v5574_v24  ;;  %v5582_v34 = vpack.c.bf16 %v5986_v20, %v5985_v57 }
 0x9d1   :  { %5577 = vmatpush3.bf16.msra.mxu0 %v5574_v24 }
 0x9d2   :  { %5579 = vmatprep.subr.bf16.mxu0 %v5578_v39 }
 0x9d5   :  { %5993 = vrot.lane.b32.xlu0 %v8198_v19, %s6452_s28  ;;  %5581 = vmatpush3.bf16.msra.mxu0 %v5578_v39 }
 0x9d6   :  { %5583 = vmatprep.subr.bf16.mxu0 %v5582_v34 }
 0x9d9   :  { %5585 = vmatpush3.bf16.msra.mxu0 %v5582_v34 }
 0x9dc   :  { %5988 = vrot.lane.b32.xlu1 %v8199_v21, %s6452_s28 }
 0x9ea   :  { %v5080_v13 = vpop.f32.mrb[48].mxu1 }
 0x9eb   :  { %v2886_v33 = vpop.f32.mrb[49].mxu1 }
 0x9ec   :  { %5104 = vmatprep.mubr.msk.f32.mxu1 %vm570_vm1, %v2886_v33 }
 0x9ed   :  { %5105 = vmatmul.mubr.msk.f32.vlgmr.msra.gmra.mrb[32].mxu1 %vm570_vm1, %v5080_v13 }
 0x9ee   :  { %5602 = vmatpush3.bf16.msra.mxu1 %v5562_v6  ;;  %v5083_v10 = vpop.f32.mrb[50].mxu1 }
 0x9ef   :  { %5595 = vmatprep.subr.bf16.mxu1 %v5566_v31  ;;  %v2896_v11 = vpop.f32.mrb[51].mxu1 }
 0x9f0   :  { %5107 = vmatprep.mubr.msk.f32.mxu1 %vm570_vm1, %v2896_v11 }
 0x9f1   :  { %5108 = vmatmul.mubr.msk.f32.gmra.mrb[34].mxu1 %vm570_vm1, %v5083_v10 }
 0x9f2   :  { %5603 = vmatpush3.bf16.msra.mxu1 %v5566_v31  ;;  %v5086_v56 = vpop.f32.mrb[52].mxu1 }
 0x9f3   :  { %5596 = vmatprep.subr.bf16.mxu1 %v5570_v29  ;;  %v2906_v62 = vpop.f32.mrb[53].mxu1 }
 0x9f4   :  { %5110 = vmatprep.mubr.msk.f32.mxu1 %vm570_vm1, %v2906_v62 }
 0x9f5   :  { %5111 = vmatmul.mubr.msk.f32.gmra.mrb[36].mxu1 %vm570_vm1, %v5086_v56 }
 0x9f6   :  { %5604 = vmatpush3.bf16.msra.mxu1 %v5570_v29  ;;  %v5089_v22 = vpop.f32.mrb[54].mxu1 }
 0x9f7   :  { %5597 = vmatprep.subr.bf16.mxu1 %v5574_v24  ;;  %v2916_v47 = vpop.f32.mrb[55].mxu1 }
 0x9f8   :  { %5113 = vmatprep.mubr.msk.f32.mxu1 %vm570_vm1, %v2916_v47 }
 0x9f9   :  { %5114 = vmatmul.mubr.msk.f32.gmra.mrb[38].mxu1 %vm570_vm1, %v5089_v22 }
 0x9fa   :  { %5605 = vmatpush3.bf16.msra.mxu1 %v5574_v24 }
 0x9fb   :  { %5598 = vmatprep.subr.bf16.mxu1 %v5578_v39 }
 0x9fe   :  { %5606 = vmatpush3.bf16.msra.mxu1 %v5578_v39 }
 0x9ff   :  { %5599 = vmatprep.subr.bf16.mxu1 %v5582_v34 }
 0xa00   :  { %3586 = vadd.xlane.f32.xlu1 %v7976_v9 }
 0xa02   :  { %5607 = vmatpush3.bf16.msra.mxu1 %v5582_v34 }
 0xa04   :  { %3590 = vadd.xlane.f32.xlu1 %v7979_v26 }
 0xa1a   :  { %v5092_v7 = vpop.f32.mrb[56].mxu1 }
 0xa1b   :  { %v2926_v55 = vpop.f32.mrb[57].mxu1 }
 0xa1c   :  { %5116 = vmatprep.mubr.msk.f32.mxu1 %vm570_vm1, %v2926_v55 }
 0xa1d   :  { %5117 = vmatmul.mubr.msk.f32.gmra.mrb[40].mxu1 %vm570_vm1, %v5092_v7 }
 0xa1e   :  { %v5095_v3 = vpop.f32.mrb[58].mxu1 }
 0xa1f   :  { %v2936_v15 = vpop.f32.mrb[59].mxu1 }
 0xa20   :  { %5119 = vmatprep.mubr.msk.f32.mxu1 %vm570_vm1, %v2936_v15 }
 0xa21   :  { %5120 = vmatmul.mubr.msk.f32.gmra.mrb[42].mxu1 %vm570_vm1, %v5095_v3 }
 0xa22   :  { %v5098_v18 = vpop.f32.mrb[60].mxu1 }
 0xa23   :  { %v2946_v12 = vpop.f32.mrb[61].mxu1 }
 0xa24   :  { %5122 = vmatprep.mubr.msk.f32.mxu1 %vm570_vm1, %v2946_v12 }
 0xa25   :  { %5123 = vmatmul.mubr.msk.f32.gmra.mrb[44].mxu1 %vm570_vm1, %v5098_v18 }
 0xa26   :  { %v5101_v2 = vpop.f32.mrb[62].mxu1 }
 0xa27   :  { %v2956_v51 = vpop.f32.mrb[63].mxu1 }
 0xa28   :  { %5125 = vmatprep.mubr.msk.f32.mxu1 %vm570_vm1, %v2956_v51 }
 0xa29   :  { %5126 = vmatmul.mubr.msk.f32.gmra.mrb[46].mxu1 %vm570_vm1, %v5101_v2 }
 0xa2b   :  { %v3563_v27 = vpop.xlane.xlu1 %3562 }
 0xa2f   :  { %v3561_v23 = vpop.xlane.xlu1 %3560 }
 0xa30   :  { %6253 = vrcp.f32 %v3561_v23 }
 0xa33   :  { %v3565_v48 = vpop.xlane.xlu1 %3564 }
 0xa34   :  { %v3567_v6 = vpop.xlane.xlu0 %3566 }
 0xa3a   :  { %v6254_v0 = vpop.eup %6253 }
 0xa3b   :  { %v3608_v42 = vmul.f32 %v6254_v0, %v3561_v23 }
 0xa3c   :  { %v3571_v43 = vpop.xlane.xlu1 %3570 }
 0xa3d   :  { %v3624_v5 = vsub.f32 2.0, %v3608_v42 }
 0xa3f   :  { %v3640_v17 = vmul.f32 %v6254_v0, %v3624_v5 }
 0xa40   :  { %v3569_v31 = vpop.xlane.xlu1 %3568 }
 0xa41   :  { %v3656_v53 = vmul.f32 %v7909_v16, %v3640_v17 }
 0xa43   :  { %5216 = vmatprep.mubr.f32.mxu0 %v3656_v53 }
 0xa44   :  { %v7991_v28 = vpop.xlane.xlu0 %3574  ;;  %v3573_v54 = vpop.xlane.xlu1 %3572 }
 0xa48   :  { %v7993_v40 = vpop.xlane.xlu0 %3584 }
 0xa4c   :  { %v3589_v52 = vpop.xlane.xlu0 %3588  ;;  %v7995_v37 = vpop.xlane.xlu1 %3578 }
 0xa4d   :  { %6255 = vrcp.f32 %v3589_v52 }
 0xa4e   :  { %6257 = vrcp.f32 %v3563_v27 }
 0xa4f   :  { %6259 = vrcp.f32 %v3565_v48 }
 0xa50   :  { %v3577_v46 = vpop.xlane.xlu1 %3576  ;;  %6261 = vrcp.f32 %v3567_v6  ;;  %v5994_v20 = vpop.permute.xlu0 %5993 }
 0xa51   :  { %6263 = vrcp.f32 %v3569_v31  ;;  %v5996_v41 = vunpack.i.h.bf16 %v5994_v20  ;;  %v5995_v10 = vunpack.i.l.bf16 %v5994_v20 }
 0xa52   :  { %6265 = vrcp.f32 %v3571_v43 }
 0xa53   :  { %6267 = vrcp.f32 %v3573_v54  ;;  %v5590_v3 = vpack.c.bf16 %v5996_v41, %v5995_v10 }
 0xa54   :  { %v7997_v29 = vpop.xlane.xlu1 %3582  ;;  %6269 = vrcp.f32 %v7991_v28 }
 0xa55   :  { %6271 = vrcp.f32 %v3577_v46 }
 0xa56   :  { %6273 = vrcp.f32 %v7995_v37 }
 0xa57   :  { %v6256_v16 = vpop.eup %6255 }
 0xa58   :  { %v6258_v24 = vpop.eup %6257  ;;  %v3622_v4 = vmul.f32 %v6256_v16, %v3589_v52  ;;  %v7999_v44 = vpop.xlane.xlu1 %3580 }
 0xa59   :  { %v6260_v14 = vpop.eup %6259  ;;  %v3609_v57 = vmul.f32 %v6258_v24, %v3563_v27  ;;  %6275 = vrcp.f32 %v7999_v44 }
 0xa5a   :  { %v3638_v39 = vsub.f32 2.0, %v3622_v4  ;;  %v6262_v34 = vpop.eup %6261  ;;  %v3610_v19 = vmul.f32 %v6260_v14, %v3565_v48  ;;  %6277 = vrcp.f32 %v7997_v29 }
 0xa5b   :  { %v6264_v33 = vpop.eup %6263  ;;  %v3625_v56 = vsub.f32 2.0, %v3609_v57  ;;  %v3611_v62 = vmul.f32 %v6262_v34, %v3567_v6  ;;  %6279 = vrcp.f32 %v7993_v40 }
 0xa5c   :  { %v3654_v21 = vmul.f32 %v6256_v16, %v3638_v39  ;;  %v5989_v13 = vpop.permute.xlu1 %5988  ;;  %v6266_v22 = vpop.eup %6265  ;;  %v3626_v47 = vsub.f32 2.0, %v3610_v19  ;;  %v3612_v7 = vmul.f32 %v6264_v33, %v3569_v31 }
 0xa5d   :  { %v5991_v11 = vunpack.i.h.bf16 %v5989_v13  ;;  %v5990_v63 = vunpack.i.l.bf16 %v5989_v13  ;;  %v6268_v55 = vpop.eup %6267  ;;  %v3641_v15 = vmul.f32 %v6258_v24, %v3625_v56  ;;  %v3627_v18 = vsub.f32 2.0, %v3611_v62 }
 0xa5e   :  { %v3670_v49 = vmul.f32 %v7945_v50, %v3654_v21  ;;  %v3613_v50 = vmul.f32 %v6266_v22, %v3571_v43  ;;  %v6270_v12 = vpop.eup %6269  ;;  %v3642_v2 = vmul.f32 %v6260_v14, %v3626_v47  ;;  %v3628_v51 = vsub.f32 2.0, %v3612_v7 }
 0xa5f   :  { %v5586_v35 = vpack.c.bf16 %v5991_v11, %v5990_v63  ;;  %v3614_v27 = vmul.f32 %v6268_v55, %v3573_v54  ;;  %v6272_v23 = vpop.eup %6271  ;;  %v3657_v48 = vmul.f32 %v7904_v32, %v3641_v15  ;;  %v3643_v0 = vmul.f32 %v6262_v34, %v3627_v18 }
 0xa60   :  { %5237 = vmatprep.mubr.f32.mxu1 %v3670_v49  ;;  %v3629_v42 = vsub.f32 2.0, %v3613_v50  ;;  %v3615_v5 = vmul.f32 %v6270_v12, %v7991_v28  ;;  %v6274_v17 = vpop.eup %6273  ;;  %v3644_v6 = vmul.f32 %v6264_v33, %v3628_v51  ;;  %v3616_v53 = vmul.f32 %v6272_v23, %v3577_v46 }
 0xa61   :  { %5587 = vmatprep.subr.bf16.mxu0 %v5586_v35  ;;  %5600 = vmatprep.subr.bf16.mxu1 %v5586_v35  ;;  %v3630_v43 = vsub.f32 2.0, %v3614_v27  ;;  %v3658_v31 = vmul.f32 %v7913_v36, %v3642_v2  ;;  %v3617_v24 = vmul.f32 %v6274_v17, %v7995_v37  ;;  %v3659_v4 = vmul.f32 %v7915_v1, %v3643_v0 }
 0xa62   :  { %5589 = vmatpush3.bf16.msra.mxu0 %v5586_v35  ;;  %5608 = vmatpush3.bf16.msra.mxu1 %v5586_v35  ;;  %v3645_v16 = vmul.f32 %v6266_v22, %v3629_v42  ;;  %v3631_v54 = vsub.f32 2.0, %v3615_v5  ;;  %v3632_v39 = vsub.f32 2.0, %v3616_v53  ;;  %v3660_v20 = vmul.f32 %v7927_v59, %v3644_v6 }
 0xa63   :  { %5591 = vmatprep.subr.bf16.mxu0 %v5590_v3  ;;  %5601 = vmatprep.subr.bf16.mxu1 %v5590_v3  ;;  %v6276_v52 = vpop.eup %6275  ;;  %v3646_v14 = vmul.f32 %v6268_v55, %v3630_v43  ;;  %v3633_v46 = vsub.f32 2.0, %v3617_v24 }
 0xa64   :  { %v6278_v32 = vpop.eup %6277  ;;  %v3618_v28 = vmul.f32 %v6276_v52, %v7999_v44  ;;  %v3647_v36 = vmul.f32 %v6270_v12, %v3631_v54  ;;  %v3661_v19 = vmul.f32 %v7922_v38, %v3645_v16  ;;  %v3648_v21 = vmul.f32 %v6272_v23, %v3632_v39 }
 0xa65   :  { %v6280_v57 = vpop.eup %6279  ;;  %v3619_v34 = vmul.f32 %v6278_v32, %v7997_v29  ;;  %v3662_v13 = vmul.f32 %v7931_v58, %v3646_v14  ;;  %v3649_v44 = vmul.f32 %v6274_v17, %v3633_v46 }
 0xa66   :  { %5593 = vmatpush3.bf16.msra.mxu0 %v5590_v3  ;;  %5609 = vmatpush3.bf16.msra.mxu1 %v5590_v3  ;;  %v3620_v37 = vmul.f32 %v6280_v57, %v7993_v40  ;;  %v3634_v1 = vsub.f32 2.0, %v3618_v28  ;;  %v3663_v59 = vmul.f32 %v7933_v25, %v3647_v36  ;;  %v3664_v11 = vmul.f32 %v7951_v61, %v3648_v21  ;;  %v6317_v3 = vld [vmem:[%s8079_s3] ss:$0 sm:$0xff]  ;;  %s6454_s3 = smov [#allocation10]  }
 0xa67   :  { %v3635_v33 = vsub.f32 2.0, %v3619_v34  ;;  %v3665_v38 = vmul.f32 %v7947_v8, %v3649_v44  ;;  %4075 = vrot.lane.b32.xlu0 %v6317_v3, %s6453_s21  ;;  %s4115_s7 = sshll.u32 %s6454_s3, 4  ;;  %s4116_s7 = int_to_ptr.vmem [resolvable:$true] %s4115_s7 }
 0xa68   :  { %v3636_v41 = vsub.f32 2.0, %v3620_v37  ;;  %v3650_v10 = vmul.f32 %v6276_v52, %v3634_v1  ;;  %s6406_s8 = scalar_lea.vmem %s4116_s7, 2048  ;;  %p6411_p5 = scmp.lt.s32.totalorder %s4116_s7, %s4116_s7 }
 0xa69   :  { %5217 = vmatmul.mubr.f32.vlgmr.msra.gmra.mrb[80].mxu0 %v3657_v48  ;;  %v3651_v29 = vmul.f32 %v6278_v32, %v3635_v33  ;;  %p6407_p4 = scmp.ne.s32.totalorder %s4116_s7, %s6406_s8  ;;  %p6412_p6 = scmp.lt.s32.totalorder %s6406_s8, %s6406_s8 }
 0xa6a   :  { %5219 = vmatprep.mubr.f32.mxu0 %v3658_v31  ;;  %v3652_v40 = vmul.f32 %v6280_v57, %v3636_v41  ;;  %v3666_v63 = vmul.f32 %v7957_v45, %v3650_v10 }
 0xa6b   :  { %v3667_v58 = vmul.f32 %v7954_v60, %v3651_v29  ;;  %p6413_p7 = por %p6412_p6, %p6411_p5 }
 0xa6c   :  { %v3668_v49 = vmul.f32 %v7940_v30, %v3652_v40  ;;  %v3865_v30 = vld [vmem:[#allocation7 + $0x18] sm:$0xff] }
 0xa6d   :  { %5220 = vmatmul.mubr.f32.gmra.mrb[82].mxu0 %v3659_v4  ;;  %5240 = vmatprep.subr.mxu1 %v3865_v30  ;;  %p6414_p8 = pnand %p6413_p7, %p6407_p4 }
 0xa6e   :  { %5222 = vmatprep.mubr.f32.mxu0 %v3660_v20 }
 0xa71   :  { %5223 = vmatmul.mubr.f32.gmra.mrb[84].mxu0 %v3661_v19 }
 0xa72   :  { %5225 = vmatprep.mubr.f32.mxu0 %v3662_v13 }
 0xa75   :  { %5226 = vmatmul.mubr.f32.gmra.mrb[86].mxu0 %v3663_v59 }
 0xa76   :  { %5228 = vmatprep.mubr.f32.mxu0 %v3664_v11 }
 0xa79   :  { %5229 = vmatmul.mubr.f32.gmra.mrb[88].mxu0 %v3665_v38 }
 0xa7a   :  { %5231 = vmatprep.mubr.f32.mxu0 %v3666_v63 }
 0xa7d   :  { %5232 = vmatmul.mubr.f32.gmra.mrb[90].mxu0 %v3667_v58 }
 0xa7e   :  { %5234 = vmatprep.mubr.f32.mxu0 %v3668_v49 }
 0xa8d   :  { %v3587_v25 = vpop.xlane.xlu1 %3586 }
 0xa8e   :  { %6281 = vrcp.f32 %v3587_v25 }
 0xa91   :  { %v3591_v56 = vpop.xlane.xlu1 %3590 }
 0xa92   :  { %6283 = vrcp.f32 %v3591_v56 }
 0xa98   :  { %v6282_v61 = vpop.eup %6281 }
 0xa99   :  { %v3621_v62 = vmul.f32 %v6282_v61, %v3587_v25 }
 0xa9b   :  { %v3637_v35 = vsub.f32 2.0, %v3621_v62 }
 0xa9c   :  { %v6284_v22 = vpop.eup %6283 }
 0xa9d   :  { %v3653_v8 = vmul.f32 %v6282_v61, %v3637_v35  ;;  %v3623_v47 = vmul.f32 %v6284_v22, %v3591_v56 }
 0xa9f   :  { %v3639_v7 = vsub.f32 2.0, %v3623_v47  ;;  %v3669_v45 = vmul.f32 %v7976_v9, %v3653_v8 }
 0xaa1   :  { %v3655_v55 = vmul.f32 %v6284_v22, %v3639_v7  ;;  %5235 = vmatmul.mubr.f32.gmra.mrb[92].mxu0 %v3669_v45 }
 0xaa3   :  { %v3671_v60 = vmul.f32 %v7979_v26, %v3655_v55 }
 0xaa5   :  { %5238 = vmatmul.mubr.f32.vlgmr.msra.gmra.mrb[64].mxu1 %v3671_v60 }
 0xaa6   :  { %5241 = vmatpush3.msra.mxu1 %v3865_v30 }
 0xad9   :  { %v4076_v43 = vpop.permute.xlu0 %4075 }
 0xb3c   :  { %v5218_v15 = vpop.f32.mrb[80].mxu0 }
 0xb3d   :  { %v3786_v18 = vpop.f32.mrb[81].mxu0 }
 0xb3e   :  { %5242 = vmatprep.mubr.msk.f32.mxu1 %vm570_vm1, %v3786_v18 }
 0xb3f   :  { %5243 = vmatmul.mubr.msk.f32.vlgmr.msra.gmra.mrb[32].mxu1 %vm570_vm1, %v5218_v15 }
 0xb40   :  { %v5221_v9 = vpop.f32.mrb[82].mxu0 }
 0xb41   :  { %v3796_v50 = vpop.f32.mrb[83].mxu0 }
 0xb42   :  { %5245 = vmatprep.mubr.msk.f32.mxu1 %vm570_vm1, %v3796_v50 }
 0xb43   :  { %5246 = vmatmul.mubr.msk.f32.gmra.mrb[34].mxu1 %vm570_vm1, %v5221_v9 }
 0xb44   :  { %v5224_v26 = vpop.f32.mrb[84].mxu0 }
 0xb45   :  { %v3806_v12 = vpop.f32.mrb[85].mxu0 }
 0xb46   :  { %5248 = vmatprep.mubr.msk.f32.mxu1 %vm570_vm1, %v3806_v12 }
 0xb47   :  { %5249 = vmatmul.mubr.msk.f32.gmra.mrb[36].mxu1 %vm570_vm1, %v5224_v26 }
 0xb48   :  { %v5227_v2 = vpop.f32.mrb[86].mxu0 }
 0xb49   :  { %v3816_v51 = vpop.f32.mrb[87].mxu0 }
 0xb4a   :  { %5251 = vmatprep.mubr.msk.f32.mxu1 %vm570_vm1, %v3816_v51 }
 0xb4b   :  { %5252 = vmatmul.mubr.msk.f32.gmra.mrb[38].mxu1 %vm570_vm1, %v5227_v2 }
 0xb4c   :  { %v5230_v27 = vpop.f32.mrb[88].mxu0 }
 0xb4d   :  { %v3826_v23 = vpop.f32.mrb[89].mxu0 }
 0xb4e   :  { %5254 = vmatprep.mubr.msk.f32.mxu1 %vm570_vm1, %v3826_v23 }
 0xb4f   :  { %5255 = vmatmul.mubr.msk.f32.gmra.mrb[40].mxu1 %vm570_vm1, %v5230_v27 }
 0xb50   :  { %v5233_v48 = vpop.f32.mrb[90].mxu0 }
 0xb51   :  { %v3836_v0 = vpop.f32.mrb[91].mxu0 }
 0xb52   :  { %5257 = vmatprep.mubr.msk.f32.mxu1 %vm570_vm1, %v3836_v0 }
 0xb53   :  { %5258 = vmatmul.mubr.msk.f32.gmra.mrb[42].mxu1 %vm570_vm1, %v5233_v48 }
 0xb74   :  { %v5236_v42 = vpop.f32.mrb[92].mxu0 }
 0xb75   :  { %v3846_v5 = vpop.f32.mrb[93].mxu0 }
 0xb76   :  { %5260 = vmatprep.mubr.msk.f32.mxu1 %vm570_vm1, %v3846_v5 }
 0xb77   :  { %5261 = vmatmul.mubr.msk.f32.gmra.mrb[44].mxu1 %vm570_vm1, %v5236_v42 }
 0xb78   :  { %v5239_v17 = vpop.f32.mrb[64].mxu1 }
 0xb79   :  { %v3856_v6 = vpop.f32.mrb[65].mxu1 }
 0xb7a   :  { %5263 = vmatprep.mubr.msk.f32.mxu1 %vm570_vm1, %v3856_v6 }
 0xb7b   :  { %5264 = vmatmul.mubr.msk.f32.gmra.mrb[46].mxu1 %vm570_vm1, %v5239_v17 }
 0xc12   :  { %v5244_v53 = vpop.f32.mrb[32].mxu1 }
 0xc13   :  { %v4079_v31 = vadd.f32 %v5244_v53, %v4076_v43  ;;  %v3980_v52 = vpop.f32.mrb[33].mxu1 }
 0xc14   :  { %v4078_v16 = vadd.f32 %v4076_v43, %v3980_v52 }
 0xc15   :  { %4095 = vst.msk [vmem:[#allocation10 + $0x8] sm:$0xff] %vm92_vm0, %v4079_v31 }
 0xc16   :  { %4094 = vst.msk [vmem:[#allocation10] sm:$0xff] %vm92_vm0, %v4078_v16  ;;  %v5247_v54 = vpop.f32.mrb[34].mxu1 }
 0xc17   :  { %v4081_v24 = vadd.f32 %v5247_v54, %v4076_v43  ;;  %v3990_v4 = vpop.f32.mrb[35].mxu1 }
 0xc18   :  { %v4080_v32 = vadd.f32 %v4076_v43, %v3990_v4 }
 0xc19   :  { %4097 = vst.msk [vmem:[#allocation10 + $0x18] sm:$0xff] %vm92_vm0, %v4081_v24 }
 0xc1a   :  { %4096 = vst.msk [vmem:[#allocation10 + $0x10] sm:$0xff] %vm92_vm0, %v4080_v32  ;;  %v5250_v14 = vpop.f32.mrb[36].mxu1 }
 0xc1b   :  { %v4083_v39 = vadd.f32 %v5250_v14, %v4076_v43  ;;  %v4000_v28 = vpop.f32.mrb[37].mxu1 }
 0xc1c   :  { %v4082_v20 = vadd.f32 %v4076_v43, %v4000_v28 }
 0xc1d   :  { %4099 = vst.msk [vmem:[#allocation10 + $0x28] sm:$0xff] %vm92_vm0, %v4083_v39 }
 0xc1e   :  { %4098 = vst.msk [vmem:[#allocation10 + $0x20] sm:$0xff] %vm92_vm0, %v4082_v20  ;;  %v5253_v57 = vpop.f32.mrb[38].mxu1 }
 0xc1f   :  { %v4085_v36 = vadd.f32 %v5253_v57, %v4076_v43  ;;  %v4010_v46 = vpop.f32.mrb[39].mxu1 }
 0xc20   :  { %v4084_v34 = vadd.f32 %v4076_v43, %v4010_v46 }
 0xc21   :  { %4101 = vst.msk [vmem:[#allocation10 + $0x38] sm:$0xff] %vm92_vm0, %v4085_v36 }
 0xc22   :  { %4100 = vst.msk [vmem:[#allocation10 + $0x30] sm:$0xff] %vm92_vm0, %v4084_v34  ;;  %v5256_v19 = vpop.f32.mrb[40].mxu1 }
 0xc23   :  { %v4087_v37 = vadd.f32 %v5256_v19, %v4076_v43  ;;  %v4020_v21 = vpop.f32.mrb[41].mxu1 }
 0xc24   :  { %v4086_v1 = vadd.f32 %v4076_v43, %v4020_v21 }
 0xc25   :  { %4103 = vst.msk [vmem:[#allocation10 + $0x48] sm:$0xff] %vm92_vm0, %v4087_v37 }
 0xc26   :  { %4102 = vst.msk [vmem:[#allocation10 + $0x40] sm:$0xff] %vm92_vm0, %v4086_v1  ;;  %v5259_v13 = vpop.f32.mrb[42].mxu1 }
 0xc27   :  { %v4089_v44 = vadd.f32 %v5259_v13, %v4076_v43  ;;  %v4030_v33 = vpop.f32.mrb[43].mxu1 }
 0xc28   :  { %v4088_v59 = vadd.f32 %v4076_v43, %v4030_v33 }
 0xc29   :  { %4105 = vst.msk [vmem:[#allocation10 + $0x58] sm:$0xff] %vm92_vm0, %v4089_v44 }
 0xc2a   :  { %4104 = vst.msk [vmem:[#allocation10 + $0x50] sm:$0xff] %vm92_vm0, %v4088_v59 }
 0xc4a   :  { %v5262_v41 = vpop.f32.mrb[44].mxu1 }
 0xc4b   :  { %v4091_v10 = vadd.f32 %v5262_v41, %v4076_v43  ;;  %v4040_v11 = vpop.f32.mrb[45].mxu1 }
 0xc4c   :  { %v4090_v29 = vadd.f32 %v4076_v43, %v4040_v11 }
 0xc4d   :  { %4107 = vst.msk [vmem:[#allocation10 + $0x68] sm:$0xff] %vm92_vm0, %v4091_v10 }
 0xc4e   :  { %4106 = vst.msk [vmem:[#allocation10 + $0x60] sm:$0xff] %vm92_vm0, %v4090_v29  ;;  %v5265_v38 = vpop.f32.mrb[46].mxu1 }
 0xc4f   :  { %v4093_v40 = vadd.f32 %v5265_v38, %v4076_v43  ;;  %v4050_v63 = vpop.f32.mrb[47].mxu1 }
 0xc50   :  { %v4092_v58 = vadd.f32 %v4076_v43, %v4050_v63 }
 0xc51   :  { %4109 = vst.msk [vmem:[#allocation10 + $0x78] sm:$0xff] %vm92_vm0, %v4093_v40 }
 0xc52   :  { %4108 = vst.msk [vmem:[#allocation10 + $0x70] sm:$0xff] %vm92_vm0, %v4092_v58 }
 0xc53   :  { %6417 = shalt.err (!%p6414_p8)
}
 0xc54   :  { %s6418_s11 = scalar_lea.hbm %s8081_s5, 2048 }
 0xc55   :  { %p6419_p9 = scmp.ne.s32.totalorder %s8081_s5, %s6418_s11  ;;  %p6422_p10 = scmp.lt.u32.totalorder %s6418_s11, %s8081_s5 }
 0xc57   :  { %p6424_p11 = pnand %p6422_p10, %p6419_p9 }
 0xc59   :  { %6427 = shalt.err (!%p6424_p11)
}
 0xc5a   :  { %4121 = dma.vmem_to_hbm [thread:$0]  %s4116_s7, 2048, %s8081_s5, [#allocation4], %s6438_s30, %s6438_s30, %s6439_s6  }
 0xc5b   :  { %6434 = dma.done.wait [#allocation4], 2048  }
 0xc5c   :  { %6435 = vsyncadd [#allocation4], 4294965248 }
 0xc5d   :  { %4125 = vsyncpa [#allocation3], 1 }
 0xc5e   :  { %4126 = vsyncpa [#allocation6], 1 }
 0xc5f   :  { %4127 = vsyncpa [#allocation9], 1 }
 0xc60   :  { %4128 = vsyncpa [#allocation4], 1 }

</bundles_post_ra>
